<compile_context>
chip_gen: v5e
topology: v5e:2x2
jax: 0.10.0
libtpu: 0.0.40
codegen_flags: <defaults>
</compile_context>

<pallas_src>
import functools
import math

import jax
import jax.numpy as jnp
from jax.experimental import pallas as pl
from jax.experimental.pallas import tpu as pltpu


# ------------------------- fused whole-layer kernel --------------------------
def _fused_layer_kernel(x_ref, mkv_ref, mq_ref,
                        g1_ref, bt1_ref, wqkv_ref, bqkv_ref, wo_ref, bo_ref,
                        g2_ref, bt2_ref, w1_ref, b1f_ref, w2_ref, b2f_ref,
                        o_ref, *, G, S, H):
    """One grid step = G chunks (= G*S rows). Computes the full encoder layer:
    LN1 -> fused QKV -> per-head chunk attention -> out-proj -> mask*attn +
    residual -> LN2 -> FFN -> residual."""
    C = x_ref.shape[-1]
    Dh = C // H
    R = G * S
    scale = 1.0 / math.sqrt(Dh)

    def ln(z, g, b):
        mu = jnp.mean(z, axis=-1, keepdims=True)
        zc = z - mu
        var = jnp.mean(zc * zc, axis=-1, keepdims=True)
        return zc * jax.lax.rsqrt(var + 1e-12) * g + b

    x2 = x_ref[...]                                   # (R, C)  residual / input
    xn = ln(x2, g1_ref[...], bt1_ref[...])            # norm1 (pre-norm)

    # Fused QKV projection: one MXU call (R, C) @ (C, 3C).
    qkv = jnp.dot(xn, wqkv_ref[...],
                  preferred_element_type=jnp.float32) + bqkv_ref[...]

    valid = mkv_ref[...] > 0.5                        # (G, 1, S) key-padding mask

    ctx_heads = []
    for h in range(H):                                # static head loop, batched over G chunks
        lo = h * Dh
        qh = qkv[:, lo:lo + Dh].reshape(G, S, Dh)
        kh = qkv[:, C + lo:C + lo + Dh].reshape(G, S, Dh)
        vh = qkv[:, 2 * C + lo:2 * C + lo + Dh].reshape(G, S, Dh)
        sc = jnp.einsum('gqd,gkd->gqk', qh, kh,
                        preferred_element_type=jnp.float32) * scale
        sc = jnp.where(valid, sc, -1e30)
        m = jnp.max(sc, axis=-1, keepdims=True)
        e = jnp.exp(sc - m)
        p = e / jnp.sum(e, axis=-1, keepdims=True)    # exact divide (1e-4 check)
        p = jnp.where(valid, p, 0.0)                  # zero fully-masked rows
        ctx_heads.append(jnp.einsum('gqk,gkd->gqd', p, vh,
                                    preferred_element_type=jnp.float32))
    ctx = jnp.concatenate(ctx_heads, axis=-1).reshape(R, C)
    att = jnp.dot(ctx, wo_ref[...],
                  preferred_element_type=jnp.float32) + bo_ref[...]

    # x = residual + attn * mask_pad   (dropout == identity)
    x1 = x2 + att * mq_ref[...]                       # (R, C), mq is (R, 1)

    # second sub-block: pre-norm FFN + residual
    xn2 = ln(x1, g2_ref[...], bt2_ref[...])
    hid = jnp.dot(xn2, w1_ref[...],
                  preferred_element_type=jnp.float32) + b1f_ref[...]
    hid = jnp.maximum(hid, 0.0)
    y = jnp.dot(hid, w2_ref[...],
                preferred_element_type=jnp.float32) + b2f_ref[...]
    o_ref[...] = (x1 + y).astype(o_ref.dtype)


# ------------------------------- full layer -----------------------------------
def schunk_encoder_layer_forward(x, mask, pos_emb, mask_pad, params, *,
                                 chunk_size, num_heads, chunks_per_block=None):
    """Mirrors SChunkTransformerEncoderLayer.forward (normalize_before=True,
    concat_after=False, shift_size=0, dropout=identity).
    `mask` and `pos_emb` are accepted for signature fidelity but unused
    (the reference module overwrites / ignores them in this code path)."""
    del mask, pos_emb
    # TODO(synk): shift_size > 0 (shifted-chunk roll + attn chunk_mask) path not implemented.
    B, L, C = x.shape
    S = chunk_size
    assert L % S == 0, "sequence length must be a multiple of chunk_size"
    nB = B * (L // S)
    H = num_heads

    if chunks_per_block is None:
        # 1-2 grid steps total; 2 steps lets v7x megacore split the work.
        chunks_per_block = nB // 2 if (nB % 2 == 0 and nB >= 2) else nB
    G = chunks_per_block
    assert nB % G == 0
    n_blocks = nB // G
    R = G * S                                         # rows per grid step

    shifted_mask = mask_pad.reshape(B, L).astype(x.dtype)   # mask_pad.squeeze(1)
    x2d = x.reshape(B * L, C)
    mask_kv = shifted_mask.reshape(nB, 1, S)          # key-padding mask per chunk
    mask_q = shifted_mask.reshape(B * L, 1)           # per-row output mask

    Hff = params["w1"].shape[1]
    wqkv = jnp.concatenate([params["wq"], params["wk"], params["wv"]], axis=1)
    bqkv = jnp.concatenate([params["bq"], params["bk"], params["bv"]]).reshape(1, 3 * C)

    kern = functools.partial(_fused_layer_kernel, G=G, S=S, H=H)
    row_spec = pl.BlockSpec((R, C), lambda i: (i, 0))
    in_specs = [
        row_spec,                                      # x (residual / input)
        pl.BlockSpec((G, 1, S), lambda i: (i, 0, 0)),  # mask_kv
        pl.BlockSpec((R, 1), lambda i: (i, 0)),        # mask_q
        pl.BlockSpec((1, C), lambda i: (0, 0)),        # g1
        pl.BlockSpec((1, C), lambda i: (0, 0)),        # beta1
        pl.BlockSpec((C, 3 * C), lambda i: (0, 0)),    # wqkv
        pl.BlockSpec((1, 3 * C), lambda i: (0, 0)),    # bqkv
        pl.BlockSpec((C, C), lambda i: (0, 0)),        # wo
        pl.BlockSpec((1, C), lambda i: (0, 0)),        # bo
        pl.BlockSpec((1, C), lambda i: (0, 0)),        # g2
        pl.BlockSpec((1, C), lambda i: (0, 0)),        # beta2
        pl.BlockSpec((C, Hff), lambda i: (0, 0)),      # w1
        pl.BlockSpec((1, Hff), lambda i: (0, 0)),      # b1
        pl.BlockSpec((Hff, C), lambda i: (0, 0)),      # w2
        pl.BlockSpec((1, C), lambda i: (0, 0)),        # b2
    ]

    out2d = pl.pallas_call(
        kern,
        out_shape=jax.ShapeDtypeStruct((B * L, C), x.dtype),
        grid=(n_blocks,),
        in_specs=in_specs,
        out_specs=row_spec,
        compiler_params=pltpu.CompilerParams(
            dimension_semantics=("parallel",)),
    )(x2d, mask_kv, mask_q,
      params["g1"].reshape(1, C), params["beta1"].reshape(1, C),
      wqkv, bqkv, params["wo"], params["bo"].reshape(1, C),
      params["g2"].reshape(1, C), params["beta2"].reshape(1, C),
      params["w1"], params["b1"].reshape(1, Hff),
      params["w2"], params["b2"].reshape(1, C))

    fake_cnn_cache = jnp.array([0.0], dtype=x.dtype)
    return out2d.reshape(B, L, C), shifted_mask, fake_cnn_cache


# ------------------------- pure-JAX reference check --------------------------
def _reference(x, mask_pad, p, S, H):
    B, L, C = x.shape
    Dh = C // H

    def ln(z, g, b):
        m = z.mean(-1, keepdims=True)
        v = ((z - m) ** 2).mean(-1, keepdims=True)
        return (z - m) / jnp.sqrt(v + 1e-12) * g + b

    residual = x
    xn = ln(x, p["g1"], p["beta1"])
    m = mask_pad.reshape(B, L).astype(x.dtype)
    xc = xn.reshape(-1, S, C)
    mc = m.reshape(-1, S)
    q = (xc @ p["wq"] + p["bq"]).reshape(-1, S, H, Dh)
    k = (xc @ p["wk"] + p["bk"]).reshape(-1, S, H, Dh)
    v = (xc @ p["wv"] + p["bv"]).reshape(-1, S, H, Dh)
    sc = jnp.einsum("nqhd,nkhd->nhqk", q, k) / math.sqrt(Dh)
    valid = mc[:, None, None, :] > 0.5
    sc = jnp.where(valid, sc, -1e30)
    pz = jax.nn.softmax(sc, axis=-1)
    pz = jnp.where(valid, pz, 0.0)
    ctx = jnp.einsum("nhqk,nkhd->nqhd", pz, v).reshape(-1, S, C)
    att = (ctx @ p["wo"] + p["bo"]).reshape(B, L, C)
    x1 = residual + att * m[..., None]
    xn2 = ln(x1, p["g2"], p["beta2"])
    h = jnp.maximum(xn2 @ p["w1"] + p["b1"], 0.0)
    return x1 + (h @ p["w2"] + p["b2"]), m


# ---------------------------------- main -------------------------------------
if __name__ == "__main__":
    B, L, C = 2, 64, 32          # size = 32
    chunk_size = 16
    num_heads = 4
    ff_hidden = 4 * C

    key = jax.random.PRNGKey(0)
    ks = jax.random.split(key, 16)

    def w(k, shape, scale=0.05):
        return scale * jax.random.normal(k, shape, jnp.float32)

    params = {
        "g1": 1.0 + 0.1 * jax.random.normal(ks[0], (C,), jnp.float32),
        "beta1": 0.1 * jax.random.normal(ks[1], (C,), jnp.float32),
        "g2": 1.0 + 0.1 * jax.random.normal(ks[2], (C,), jnp.float32),
        "beta2": 0.1 * jax.random.normal(ks[3], (C,), jnp.float32),
        "wq": w(ks[4], (C, C)), "bq": w(ks[5], (C,)),
        "wk": w(ks[6], (C, C)), "bk": w(ks[7], (C,)),
        "wv": w(ks[8], (C, C)), "bv": w(ks[9], (C,)),
        "wo": w(ks[10], (C, C)), "bo": w(ks[11], (C,)),
        "w1": w(ks[12], (C, ff_hidden)), "b1": w(ks[13], (ff_hidden,)),
        "w2": w(ks[14], (ff_hidden, C)), "b2": w(ks[15], (C,)),
    }

    x = jax.random.normal(jax.random.PRNGKey(1), (B, L, C), jnp.float32)
    pos_emb = jax.random.normal(jax.random.PRNGKey(2), (1, L, C), jnp.float32)
    mask = jnp.ones((B, 1, L), jnp.float32)          # unused by this code path
    mask_pad = jnp.ones((B, 1, L), jnp.float32)
    mask_pad = mask_pad.at[1, 0, L - 10:].set(0.0)   # pad the tail of batch 1

    out, out_mask, fake_cnn_cache = schunk_encoder_layer_forward(
        x, mask, pos_emb, mask_pad, params,
        chunk_size=chunk_size, num_heads=num_heads)
    out = jax.block_until_ready(out)

    ref_out, ref_mask = _reference(x, mask_pad, params, chunk_size, num_heads)
    assert out.shape == (B, L, C)
    assert out_mask.shape == (B, L)
    assert fake_cnn_cache.shape == (1,)
    assert jnp.allclose(out, ref_out, rtol=1e-4, atol=1e-4)
    assert jnp.allclose(out_mask, ref_mask)

    print("KERNEL_OK")
</pallas_src>

<mosaic_0001>
module attributes {stable_mosaic.version = 11 : i64} {
  func.func @_fused_layer_kernel(%arg0: i32, %arg1: memref<64x32xf32, #tpu.memory_space<vmem>>, %arg2: memref<4x1x16xf32, #tpu.memory_space<vmem>>, %arg3: memref<64x1xf32, #tpu.memory_space<vmem>>, %arg4: memref<1x32xf32, #tpu.memory_space<vmem>>, %arg5: memref<1x32xf32, #tpu.memory_space<vmem>>, %arg6: memref<32x96xf32, #tpu.memory_space<vmem>>, %arg7: memref<1x96xf32, #tpu.memory_space<vmem>>, %arg8: memref<32x32xf32, #tpu.memory_space<vmem>>, %arg9: memref<1x32xf32, #tpu.memory_space<vmem>>, %arg10: memref<1x32xf32, #tpu.memory_space<vmem>>, %arg11: memref<1x32xf32, #tpu.memory_space<vmem>>, %arg12: memref<32x128xf32, #tpu.memory_space<vmem>>, %arg13: memref<1x128xf32, #tpu.memory_space<vmem>>, %arg14: memref<128x32xf32, #tpu.memory_space<vmem>>, %arg15: memref<1x32xf32, #tpu.memory_space<vmem>>, %arg16: memref<64x32xf32, #tpu.memory_space<vmem>>) attributes {dimension_semantics = [#tpu.dimension_semantics<parallel>], iteration_bounds = array<i64: 2>, scalar_prefetch = 0 : i64, scratch_operands = 0 : i64, tpu.core_type = #tpu.core_type<tc>, window_params = [{transform_indices = @transform_0, window_bounds = array<i64: 64, 32>}, {transform_indices = @transform_1, window_bounds = array<i64: 4, 1, 16>}, {transform_indices = @transform_2, window_bounds = array<i64: 64, 1>}, {pipeline_mode = #tpu.pipeline_mode<synchronous>, transform_indices = @transform_3, window_bounds = array<i64: 1, 32>}, {pipeline_mode = #tpu.pipeline_mode<synchronous>, transform_indices = @transform_4, window_bounds = array<i64: 1, 32>}, {pipeline_mode = #tpu.pipeline_mode<synchronous>, transform_indices = @transform_5, window_bounds = array<i64: 32, 96>}, {pipeline_mode = #tpu.pipeline_mode<synchronous>, transform_indices = @transform_6, window_bounds = array<i64: 1, 96>}, {pipeline_mode = #tpu.pipeline_mode<synchronous>, transform_indices = @transform_7, window_bounds = array<i64: 32, 32>}, {pipeline_mode = #tpu.pipeline_mode<synchronous>, transform_indices = @transform_8, window_bounds = array<i64: 1, 32>}, {pipeline_mode = #tpu.pipeline_mode<synchronous>, transform_indices = @transform_9, window_bounds = array<i64: 1, 32>}, {pipeline_mode = #tpu.pipeline_mode<synchronous>, transform_indices = @transform_10, window_bounds = array<i64: 1, 32>}, {pipeline_mode = #tpu.pipeline_mode<synchronous>, transform_indices = @transform_11, window_bounds = array<i64: 32, 128>}, {pipeline_mode = #tpu.pipeline_mode<synchronous>, transform_indices = @transform_12, window_bounds = array<i64: 1, 128>}, {pipeline_mode = #tpu.pipeline_mode<synchronous>, transform_indices = @transform_13, window_bounds = array<i64: 128, 32>}, {pipeline_mode = #tpu.pipeline_mode<synchronous>, transform_indices = @transform_14, window_bounds = array<i64: 1, 32>}, {transform_indices = @transform_15, window_bounds = array<i64: 64, 32>}]} {
    %c0 = arith.constant 0 : index
    %c0_0 = arith.constant 0 : index
    %0 = vector.load %arg1[%c0, %c0_0] : memref<64x32xf32, #tpu.memory_space<vmem>>, vector<64x32xf32>
    %c0_1 = arith.constant 0 : index
    %c0_2 = arith.constant 0 : index
    %1 = vector.load %arg4[%c0_1, %c0_2] : memref<1x32xf32, #tpu.memory_space<vmem>>, vector<1x32xf32>
    %c0_3 = arith.constant 0 : index
    %c0_4 = arith.constant 0 : index
    %2 = vector.load %arg5[%c0_3, %c0_4] : memref<1x32xf32, #tpu.memory_space<vmem>>, vector<1x32xf32>
    %cst = arith.constant dense<0.000000e+00> : vector<64xf32>
    %3 = vector.multi_reduction <add>, %0, %cst [1] : vector<64x32xf32> to vector<64xf32>
    %4 = vector.shape_cast %3 : vector<64xf32> to vector<64x1xf32>
    %cst_5 = arith.constant 3.200000e+01 : f32
    %5 = vector.broadcast %cst_5 : f32 to vector<64x1xf32>
    %6 = arith.divf %4, %5 : vector<64x1xf32>
    %7 = vector.broadcast %6 : vector<64x1xf32> to vector<64x32xf32>
    %8 = arith.subf %0, %7 : vector<64x32xf32>
    %9 = arith.mulf %8, %8 : vector<64x32xf32>
    %cst_6 = arith.constant dense<0.000000e+00> : vector<64xf32>
    %10 = vector.multi_reduction <add>, %9, %cst_6 [1] : vector<64x32xf32> to vector<64xf32>
    %11 = vector.shape_cast %10 : vector<64xf32> to vector<64x1xf32>
    %cst_7 = arith.constant 3.200000e+01 : f32
    %12 = vector.broadcast %cst_7 : f32 to vector<64x1xf32>
    %13 = arith.divf %11, %12 : vector<64x1xf32>
    %cst_8 = arith.constant 9.99999996E-13 : f32
    %14 = vector.broadcast %cst_8 : f32 to vector<64x1xf32>
    %15 = arith.addf %13, %14 : vector<64x1xf32>
    %16 = math.rsqrt %15 : vector<64x1xf32>
    %17 = vector.broadcast %16 : vector<64x1xf32> to vector<64x32xf32>
    %18 = arith.mulf %8, %17 : vector<64x32xf32>
    %19 = vector.broadcast %1 : vector<1x32xf32> to vector<64x32xf32>
    %20 = arith.mulf %18, %19 : vector<64x32xf32>
    %21 = vector.broadcast %2 : vector<1x32xf32> to vector<64x32xf32>
    %22 = arith.addf %20, %21 : vector<64x32xf32>
    %c0_9 = arith.constant 0 : index
    %c0_10 = arith.constant 0 : index
    %23 = vector.load %arg6[%c0_9, %c0_10] : memref<32x96xf32, #tpu.memory_space<vmem>>, vector<32x96xf32>
    %cst_11 = arith.constant dense<0.000000e+00> : vector<64x96xf32>
    %24 = tpu.matmul %22, %23, %cst_11 {dimension_numbers = #tpu.dot_dimension_numbers<[1], [0], [0], [1], [0, 0, 1, 1], [], []>} : vector<64x32xf32>, vector<32x96xf32>, vector<64x96xf32> -> vector<64x96xf32>
    %c0_12 = arith.constant 0 : index
    %c0_13 = arith.constant 0 : index
    %25 = vector.load %arg7[%c0_12, %c0_13] : memref<1x96xf32, #tpu.memory_space<vmem>>, vector<1x96xf32>
    %26 = vector.broadcast %25 : vector<1x96xf32> to vector<64x96xf32>
    %27 = arith.addf %24, %26 : vector<64x96xf32>
    %c0_14 = arith.constant 0 : index
    %c0_15 = arith.constant 0 : index
    %c0_16 = arith.constant 0 : index
    %28 = vector.load %arg2[%c0_14, %c0_15, %c0_16] : memref<4x1x16xf32, #tpu.memory_space<vmem>>, vector<4x1x16xf32>
    %cst_17 = arith.constant 5.000000e-01 : f32
    %29 = vector.broadcast %cst_17 : f32 to vector<4x1x16xf32>
    %30 = arith.cmpf ogt, %28, %29 : vector<4x1x16xf32>
    %31 = vector.extract_strided_slice %27 {offsets = [0, 0], sizes = [64, 8], strides = [1, 1]} : vector<64x96xf32> to vector<64x8xf32>
    %32 = vector.shape_cast %31 : vector<64x8xf32> to vector<4x16x8xf32>
    %33 = vector.extract_strided_slice %27 {offsets = [0, 32], sizes = [64, 8], strides = [1, 1]} : vector<64x96xf32> to vector<64x8xf32>
    %34 = vector.shape_cast %33 : vector<64x8xf32> to vector<4x16x8xf32>
    %35 = vector.extract_strided_slice %27 {offsets = [0, 64], sizes = [64, 8], strides = [1, 1]} : vector<64x96xf32> to vector<64x8xf32>
    %36 = vector.shape_cast %35 : vector<64x8xf32> to vector<4x16x8xf32>
    "tpu.trace_start"() <{level = 10 : i32, message = "gqd,gkd->gqk"}> : () -> ()
    %cst_18 = arith.constant dense<0.000000e+00> : vector<4x16x16xf32>
    %37 = tpu.matmul %32, %34, %cst_18 {dimension_numbers = #tpu.dot_dimension_numbers<[2], [2], [1], [1], [0, 0, 0, 1, 1, 1], [0], [0]>} : vector<4x16x8xf32>, vector<4x16x8xf32>, vector<4x16x16xf32> -> vector<4x16x16xf32>
    "tpu.trace_stop"() : () -> ()
    %cst_19 = arith.constant 0.353553385 : f32
    %38 = vector.broadcast %cst_19 : f32 to vector<4x16x16xf32>
    %39 = arith.mulf %37, %38 : vector<4x16x16xf32>
    %cst_20 = arith.constant -1.000000e+30 : f32
    %40 = vector.shape_cast %30 : vector<4x1x16xi1> to vector<4x1x16xi1>
    %41 = vector.broadcast %40 : vector<4x1x16xi1> to vector<4x16x16xi1>
    %42 = vector.broadcast %cst_20 : f32 to vector<4x16x16xf32>
    %43 = arith.select %41, %39, %42 : vector<4x16x16xi1>, vector<4x16x16xf32>
    %cst_21 = arith.constant dense<0xFF800000> : vector<4x16xf32>
    %44 = vector.multi_reduction <maximumf>, %43, %cst_21 [2] : vector<4x16x16xf32> to vector<4x16xf32>
    %45 = vector.shape_cast %44 : vector<4x16xf32> to vector<4x16x1xf32>
    %46 = vector.broadcast %45 : vector<4x16x1xf32> to vector<4x16x16xf32>
    %47 = arith.subf %43, %46 : vector<4x16x16xf32>
    %48 = math.exp %47 : vector<4x16x16xf32>
    %cst_22 = arith.constant dense<0.000000e+00> : vector<4x16xf32>
    %49 = vector.multi_reduction <add>, %48, %cst_22 [2] : vector<4x16x16xf32> to vector<4x16xf32>
    %50 = vector.shape_cast %49 : vector<4x16xf32> to vector<4x16x1xf32>
    %51 = vector.broadcast %50 : vector<4x16x1xf32> to vector<4x16x16xf32>
    %52 = arith.divf %48, %51 : vector<4x16x16xf32>
    %cst_23 = arith.constant 0.000000e+00 : f32
    %53 = vector.shape_cast %30 : vector<4x1x16xi1> to vector<4x1x16xi1>
    %54 = vector.broadcast %53 : vector<4x1x16xi1> to vector<4x16x16xi1>
    %55 = vector.broadcast %cst_23 : f32 to vector<4x16x16xf32>
    %56 = arith.select %54, %52, %55 : vector<4x16x16xi1>, vector<4x16x16xf32>
    "tpu.trace_start"() <{level = 10 : i32, message = "gqk,gkd->gqd"}> : () -> ()
    %cst_24 = arith.constant dense<0.000000e+00> : vector<4x16x8xf32>
    %57 = tpu.matmul %56, %36, %cst_24 {dimension_numbers = #tpu.dot_dimension_numbers<[2], [1], [1], [2], [0, 0, 0, 1, 1, 2], [0], [0]>} : vector<4x16x16xf32>, vector<4x16x8xf32>, vector<4x16x8xf32> -> vector<4x16x8xf32>
    "tpu.trace_stop"() : () -> ()
    %58 = vector.extract_strided_slice %27 {offsets = [0, 8], sizes = [64, 8], strides = [1, 1]} : vector<64x96xf32> to vector<64x8xf32>
    %59 = vector.shape_cast %58 : vector<64x8xf32> to vector<4x16x8xf32>
    %60 = vector.extract_strided_slice %27 {offsets = [0, 40], sizes = [64, 8], strides = [1, 1]} : vector<64x96xf32> to vector<64x8xf32>
    %61 = vector.shape_cast %60 : vector<64x8xf32> to vector<4x16x8xf32>
    %62 = vector.extract_strided_slice %27 {offsets = [0, 72], sizes = [64, 8], strides = [1, 1]} : vector<64x96xf32> to vector<64x8xf32>
    %63 = vector.shape_cast %62 : vector<64x8xf32> to vector<4x16x8xf32>
    "tpu.trace_start"() <{level = 10 : i32, message = "gqd,gkd->gqk"}> : () -> ()
    %cst_25 = arith.constant dense<0.000000e+00> : vector<4x16x16xf32>
    %64 = tpu.matmul %59, %61, %cst_25 {dimension_numbers = #tpu.dot_dimension_numbers<[2], [2], [1], [1], [0, 0, 0, 1, 1, 1], [0], [0]>} : vector<4x16x8xf32>, vector<4x16x8xf32>, vector<4x16x16xf32> -> vector<4x16x16xf32>
    "tpu.trace_stop"() : () -> ()
    %cst_26 = arith.constant 0.353553385 : f32
    %65 = vector.broadcast %cst_26 : f32 to vector<4x16x16xf32>
    %66 = arith.mulf %64, %65 : vector<4x16x16xf32>
    %cst_27 = arith.constant -1.000000e+30 : f32
    %67 = vector.shape_cast %30 : vector<4x1x16xi1> to vector<4x1x16xi1>
    %68 = vector.broadcast %67 : vector<4x1x16xi1> to vector<4x16x16xi1>
    %69 = vector.broadcast %cst_27 : f32 to vector<4x16x16xf32>
    %70 = arith.select %68, %66, %69 : vector<4x16x16xi1>, vector<4x16x16xf32>
    %cst_28 = arith.constant dense<0xFF800000> : vector<4x16xf32>
    %71 = vector.multi_reduction <maximumf>, %70, %cst_28 [2] : vector<4x16x16xf32> to vector<4x16xf32>
    %72 = vector.shape_cast %71 : vector<4x16xf32> to vector<4x16x1xf32>
    %73 = vector.broadcast %72 : vector<4x16x1xf32> to vector<4x16x16xf32>
    %74 = arith.subf %70, %73 : vector<4x16x16xf32>
    %75 = math.exp %74 : vector<4x16x16xf32>
    %cst_29 = arith.constant dense<0.000000e+00> : vector<4x16xf32>
    %76 = vector.multi_reduction <add>, %75, %cst_29 [2] : vector<4x16x16xf32> to vector<4x16xf32>
    %77 = vector.shape_cast %76 : vector<4x16xf32> to vector<4x16x1xf32>
    %78 = vector.broadcast %77 : vector<4x16x1xf32> to vector<4x16x16xf32>
    %79 = arith.divf %75, %78 : vector<4x16x16xf32>
    %cst_30 = arith.constant 0.000000e+00 : f32
    %80 = vector.shape_cast %30 : vector<4x1x16xi1> to vector<4x1x16xi1>
    %81 = vector.broadcast %80 : vector<4x1x16xi1> to vector<4x16x16xi1>
    %82 = vector.broadcast %cst_30 : f32 to vector<4x16x16xf32>
    %83 = arith.select %81, %79, %82 : vector<4x16x16xi1>, vector<4x16x16xf32>
    "tpu.trace_start"() <{level = 10 : i32, message = "gqk,gkd->gqd"}> : () -> ()
    %cst_31 = arith.constant dense<0.000000e+00> : vector<4x16x8xf32>
    %84 = tpu.matmul %83, %63, %cst_31 {dimension_numbers = #tpu.dot_dimension_numbers<[2], [1], [1], [2], [0, 0, 0, 1, 1, 2], [0], [0]>} : vector<4x16x16xf32>, vector<4x16x8xf32>, vector<4x16x8xf32> -> vector<4x16x8xf32>
    "tpu.trace_stop"() : () -> ()
    %85 = vector.extract_strided_slice %27 {offsets = [0, 16], sizes = [64, 8], strides = [1, 1]} : vector<64x96xf32> to vector<64x8xf32>
    %86 = vector.shape_cast %85 : vector<64x8xf32> to vector<4x16x8xf32>
    %87 = vector.extract_strided_slice %27 {offsets = [0, 48], sizes = [64, 8], strides = [1, 1]} : vector<64x96xf32> to vector<64x8xf32>
    %88 = vector.shape_cast %87 : vector<64x8xf32> to vector<4x16x8xf32>
    %89 = vector.extract_strided_slice %27 {offsets = [0, 80], sizes = [64, 8], strides = [1, 1]} : vector<64x96xf32> to vector<64x8xf32>
    %90 = vector.shape_cast %89 : vector<64x8xf32> to vector<4x16x8xf32>
    "tpu.trace_start"() <{level = 10 : i32, message = "gqd,gkd->gqk"}> : () -> ()
    %cst_32 = arith.constant dense<0.000000e+00> : vector<4x16x16xf32>
    %91 = tpu.matmul %86, %88, %cst_32 {dimension_numbers = #tpu.dot_dimension_numbers<[2], [2], [1], [1], [0, 0, 0, 1, 1, 1], [0], [0]>} : vector<4x16x8xf32>, vector<4x16x8xf32>, vector<4x16x16xf32> -> vector<4x16x16xf32>
    "tpu.trace_stop"() : () -> ()
    %cst_33 = arith.constant 0.353553385 : f32
    %92 = vector.broadcast %cst_33 : f32 to vector<4x16x16xf32>
    %93 = arith.mulf %91, %92 : vector<4x16x16xf32>
    %cst_34 = arith.constant -1.000000e+30 : f32
    %94 = vector.shape_cast %30 : vector<4x1x16xi1> to vector<4x1x16xi1>
    %95 = vector.broadcast %94 : vector<4x1x16xi1> to vector<4x16x16xi1>
    %96 = vector.broadcast %cst_34 : f32 to vector<4x16x16xf32>
    %97 = arith.select %95, %93, %96 : vector<4x16x16xi1>, vector<4x16x16xf32>
    %cst_35 = arith.constant dense<0xFF800000> : vector<4x16xf32>
    %98 = vector.multi_reduction <maximumf>, %97, %cst_35 [2] : vector<4x16x16xf32> to vector<4x16xf32>
    %99 = vector.shape_cast %98 : vector<4x16xf32> to vector<4x16x1xf32>
    %100 = vector.broadcast %99 : vector<4x16x1xf32> to vector<4x16x16xf32>
    %101 = arith.subf %97, %100 : vector<4x16x16xf32>
    %102 = math.exp %101 : vector<4x16x16xf32>
    %cst_36 = arith.constant dense<0.000000e+00> : vector<4x16xf32>
    %103 = vector.multi_reduction <add>, %102, %cst_36 [2] : vector<4x16x16xf32> to vector<4x16xf32>
    %104 = vector.shape_cast %103 : vector<4x16xf32> to vector<4x16x1xf32>
    %105 = vector.broadcast %104 : vector<4x16x1xf32> to vector<4x16x16xf32>
    %106 = arith.divf %102, %105 : vector<4x16x16xf32>
    %cst_37 = arith.constant 0.000000e+00 : f32
    %107 = vector.shape_cast %30 : vector<4x1x16xi1> to vector<4x1x16xi1>
    %108 = vector.broadcast %107 : vector<4x1x16xi1> to vector<4x16x16xi1>
    %109 = vector.broadcast %cst_37 : f32 to vector<4x16x16xf32>
    %110 = arith.select %108, %106, %109 : vector<4x16x16xi1>, vector<4x16x16xf32>
    "tpu.trace_start"() <{level = 10 : i32, message = "gqk,gkd->gqd"}> : () -> ()
    %cst_38 = arith.constant dense<0.000000e+00> : vector<4x16x8xf32>
    %111 = tpu.matmul %110, %90, %cst_38 {dimension_numbers = #tpu.dot_dimension_numbers<[2], [1], [1], [2], [0, 0, 0, 1, 1, 2], [0], [0]>} : vector<4x16x16xf32>, vector<4x16x8xf32>, vector<4x16x8xf32> -> vector<4x16x8xf32>
    "tpu.trace_stop"() : () -> ()
    %112 = vector.extract_strided_slice %27 {offsets = [0, 24], sizes = [64, 8], strides = [1, 1]} : vector<64x96xf32> to vector<64x8xf32>
    %113 = vector.shape_cast %112 : vector<64x8xf32> to vector<4x16x8xf32>
    %114 = vector.extract_strided_slice %27 {offsets = [0, 56], sizes = [64, 8], strides = [1, 1]} : vector<64x96xf32> to vector<64x8xf32>
    %115 = vector.shape_cast %114 : vector<64x8xf32> to vector<4x16x8xf32>
    %116 = vector.extract_strided_slice %27 {offsets = [0, 88], sizes = [64, 8], strides = [1, 1]} : vector<64x96xf32> to vector<64x8xf32>
    %117 = vector.shape_cast %116 : vector<64x8xf32> to vector<4x16x8xf32>
    "tpu.trace_start"() <{level = 10 : i32, message = "gqd,gkd->gqk"}> : () -> ()
    %cst_39 = arith.constant dense<0.000000e+00> : vector<4x16x16xf32>
    %118 = tpu.matmul %113, %115, %cst_39 {dimension_numbers = #tpu.dot_dimension_numbers<[2], [2], [1], [1], [0, 0, 0, 1, 1, 1], [0], [0]>} : vector<4x16x8xf32>, vector<4x16x8xf32>, vector<4x16x16xf32> -> vector<4x16x16xf32>
    "tpu.trace_stop"() : () -> ()
    %cst_40 = arith.constant 0.353553385 : f32
    %119 = vector.broadcast %cst_40 : f32 to vector<4x16x16xf32>
    %120 = arith.mulf %118, %119 : vector<4x16x16xf32>
    %cst_41 = arith.constant -1.000000e+30 : f32
    %121 = vector.shape_cast %30 : vector<4x1x16xi1> to vector<4x1x16xi1>
    %122 = vector.broadcast %121 : vector<4x1x16xi1> to vector<4x16x16xi1>
    %123 = vector.broadcast %cst_41 : f32 to vector<4x16x16xf32>
    %124 = arith.select %122, %120, %123 : vector<4x16x16xi1>, vector<4x16x16xf32>
    %cst_42 = arith.constant dense<0xFF800000> : vector<4x16xf32>
    %125 = vector.multi_reduction <maximumf>, %124, %cst_42 [2] : vector<4x16x16xf32> to vector<4x16xf32>
    %126 = vector.shape_cast %125 : vector<4x16xf32> to vector<4x16x1xf32>
    %127 = vector.broadcast %126 : vector<4x16x1xf32> to vector<4x16x16xf32>
    %128 = arith.subf %124, %127 : vector<4x16x16xf32>
    %129 = math.exp %128 : vector<4x16x16xf32>
    %cst_43 = arith.constant dense<0.000000e+00> : vector<4x16xf32>
    %130 = vector.multi_reduction <add>, %129, %cst_43 [2] : vector<4x16x16xf32> to vector<4x16xf32>
    %131 = vector.shape_cast %130 : vector<4x16xf32> to vector<4x16x1xf32>
    %132 = vector.broadcast %131 : vector<4x16x1xf32> to vector<4x16x16xf32>
    %133 = arith.divf %129, %132 : vector<4x16x16xf32>
    %cst_44 = arith.constant 0.000000e+00 : f32
    %134 = vector.shape_cast %30 : vector<4x1x16xi1> to vector<4x1x16xi1>
    %135 = vector.broadcast %134 : vector<4x1x16xi1> to vector<4x16x16xi1>
    %136 = vector.broadcast %cst_44 : f32 to vector<4x16x16xf32>
    %137 = arith.select %135, %133, %136 : vector<4x16x16xi1>, vector<4x16x16xf32>
    "tpu.trace_start"() <{level = 10 : i32, message = "gqk,gkd->gqd"}> : () -> ()
    %cst_45 = arith.constant dense<0.000000e+00> : vector<4x16x8xf32>
    %138 = tpu.matmul %137, %117, %cst_45 {dimension_numbers = #tpu.dot_dimension_numbers<[2], [1], [1], [2], [0, 0, 0, 1, 1, 2], [0], [0]>} : vector<4x16x16xf32>, vector<4x16x8xf32>, vector<4x16x8xf32> -> vector<4x16x8xf32>
    "tpu.trace_stop"() : () -> ()
    %139 = tpu.concatenate %57, %84, %111, %138 in 2 : vector<4x16x8xf32>, vector<4x16x8xf32>, vector<4x16x8xf32>, vector<4x16x8xf32> -> vector<4x16x32xf32>
    %140 = vector.shape_cast %139 : vector<4x16x32xf32> to vector<64x32xf32>
    %c0_46 = arith.constant 0 : index
    %c0_47 = arith.constant 0 : index
    %141 = vector.load %arg8[%c0_46, %c0_47] : memref<32x32xf32, #tpu.memory_space<vmem>>, vector<32x32xf32>
    %cst_48 = arith.constant dense<0.000000e+00> : vector<64x32xf32>
    %142 = tpu.matmul %140, %141, %cst_48 {dimension_numbers = #tpu.dot_dimension_numbers<[1], [0], [0], [1], [0, 0, 1, 1], [], []>} : vector<64x32xf32>, vector<32x32xf32>, vector<64x32xf32> -> vector<64x32xf32>
    %c0_49 = arith.constant 0 : index
    %c0_50 = arith.constant 0 : index
    %143 = vector.load %arg9[%c0_49, %c0_50] : memref<1x32xf32, #tpu.memory_space<vmem>>, vector<1x32xf32>
    %144 = vector.broadcast %143 : vector<1x32xf32> to vector<64x32xf32>
    %145 = arith.addf %142, %144 : vector<64x32xf32>
    %c0_51 = arith.constant 0 : index
    %c0_52 = arith.constant 0 : index
    %146 = vector.load %arg3[%c0_51, %c0_52] : memref<64x1xf32, #tpu.memory_space<vmem>>, vector<64x1xf32>
    %147 = vector.broadcast %146 : vector<64x1xf32> to vector<64x32xf32>
    %148 = arith.mulf %145, %147 : vector<64x32xf32>
    %149 = arith.addf %0, %148 : vector<64x32xf32>
    %c0_53 = arith.constant 0 : index
    %c0_54 = arith.constant 0 : index
    %150 = vector.load %arg10[%c0_53, %c0_54] : memref<1x32xf32, #tpu.memory_space<vmem>>, vector<1x32xf32>
    %c0_55 = arith.constant 0 : index
    %c0_56 = arith.constant 0 : index
    %151 = vector.load %arg11[%c0_55, %c0_56] : memref<1x32xf32, #tpu.memory_space<vmem>>, vector<1x32xf32>
    %cst_57 = arith.constant dense<0.000000e+00> : vector<64xf32>
    %152 = vector.multi_reduction <add>, %149, %cst_57 [1] : vector<64x32xf32> to vector<64xf32>
    %153 = vector.shape_cast %152 : vector<64xf32> to vector<64x1xf32>
    %cst_58 = arith.constant 3.200000e+01 : f32
    %154 = vector.broadcast %cst_58 : f32 to vector<64x1xf32>
    %155 = arith.divf %153, %154 : vector<64x1xf32>
    %156 = vector.broadcast %155 : vector<64x1xf32> to vector<64x32xf32>
    %157 = arith.subf %149, %156 : vector<64x32xf32>
    %158 = arith.mulf %157, %157 : vector<64x32xf32>
    %cst_59 = arith.constant dense<0.000000e+00> : vector<64xf32>
    %159 = vector.multi_reduction <add>, %158, %cst_59 [1] : vector<64x32xf32> to vector<64xf32>
    %160 = vector.shape_cast %159 : vector<64xf32> to vector<64x1xf32>
    %cst_60 = arith.constant 3.200000e+01 : f32
    %161 = vector.broadcast %cst_60 : f32 to vector<64x1xf32>
    %162 = arith.divf %160, %161 : vector<64x1xf32>
    %cst_61 = arith.constant 9.99999996E-13 : f32
    %163 = vector.broadcast %cst_61 : f32 to vector<64x1xf32>
    %164 = arith.addf %162, %163 : vector<64x1xf32>
    %165 = math.rsqrt %164 : vector<64x1xf32>
    %166 = vector.broadcast %165 : vector<64x1xf32> to vector<64x32xf32>
    %167 = arith.mulf %157, %166 : vector<64x32xf32>
    %168 = vector.broadcast %150 : vector<1x32xf32> to vector<64x32xf32>
    %169 = arith.mulf %167, %168 : vector<64x32xf32>
    %170 = vector.broadcast %151 : vector<1x32xf32> to vector<64x32xf32>
    %171 = arith.addf %169, %170 : vector<64x32xf32>
    %c0_62 = arith.constant 0 : index
    %c0_63 = arith.constant 0 : index
    %172 = vector.load %arg12[%c0_62, %c0_63] : memref<32x128xf32, #tpu.memory_space<vmem>>, vector<32x128xf32>
    %cst_64 = arith.constant dense<0.000000e+00> : vector<64x128xf32>
    %173 = tpu.matmul %171, %172, %cst_64 {dimension_numbers = #tpu.dot_dimension_numbers<[1], [0], [0], [1], [0, 0, 1, 1], [], []>} : vector<64x32xf32>, vector<32x128xf32>, vector<64x128xf32> -> vector<64x128xf32>
    %c0_65 = arith.constant 0 : index
    %c0_66 = arith.constant 0 : index
    %174 = vector.load %arg13[%c0_65, %c0_66] : memref<1x128xf32, #tpu.memory_space<vmem>>, vector<1x128xf32>
    %175 = vector.broadcast %174 : vector<1x128xf32> to vector<64x128xf32>
    %176 = arith.addf %173, %175 : vector<64x128xf32>
    %cst_67 = arith.constant 0.000000e+00 : f32
    %177 = vector.broadcast %cst_67 : f32 to vector<64x128xf32>
    %178 = arith.maximumf %176, %177 : vector<64x128xf32>
    %c0_68 = arith.constant 0 : index
    %c0_69 = arith.constant 0 : index
    %179 = vector.load %arg14[%c0_68, %c0_69] : memref<128x32xf32, #tpu.memory_space<vmem>>, vector<128x32xf32>
    %cst_70 = arith.constant dense<0.000000e+00> : vector<64x32xf32>
    %180 = tpu.matmul %178, %179, %cst_70 {dimension_numbers = #tpu.dot_dimension_numbers<[1], [0], [0], [1], [0, 0, 1, 1], [], []>} : vector<64x128xf32>, vector<128x32xf32>, vector<64x32xf32> -> vector<64x32xf32>
    %c0_71 = arith.constant 0 : index
    %c0_72 = arith.constant 0 : index
    %181 = vector.load %arg15[%c0_71, %c0_72] : memref<1x32xf32, #tpu.memory_space<vmem>>, vector<1x32xf32>
    %182 = vector.broadcast %181 : vector<1x32xf32> to vector<64x32xf32>
    %183 = arith.addf %180, %182 : vector<64x32xf32>
    %184 = arith.addf %149, %183 : vector<64x32xf32>
    %c0_73 = arith.constant 0 : index
    %c0_74 = arith.constant 0 : index
    %185 = vector.load %arg16[%c0_73, %c0_74] : memref<64x32xf32, #tpu.memory_space<vmem>>, vector<64x32xf32>
    tpu.vector_store %arg16[%c0_73, %c0_74], %184 {strides = array<i32>} : memref<64x32xf32, #tpu.memory_space<vmem>>, vector<64x32xf32>,
    return
  }
  func.func @transform_0(%arg0: i32) -> (i32, i32) {
    %c0_i32 = arith.constant 0 : i32
    %c0_i32_0 = arith.constant 0 : i32
    return %arg0, %c0_i32 : i32, i32
  }
  func.func @transform_1(%arg0: i32) -> (i32, i32, i32) {
    %c0_i32 = arith.constant 0 : i32
    %c0_i32_0 = arith.constant 0 : i32
    %c0_i32_1 = arith.constant 0 : i32
    return %arg0, %c0_i32, %c0_i32_0 : i32, i32, i32
  }
  func.func @transform_2(%arg0: i32) -> (i32, i32) {
    %c0_i32 = arith.constant 0 : i32
    %c0_i32_0 = arith.constant 0 : i32
    return %arg0, %c0_i32 : i32, i32
  }
  func.func @transform_3(%arg0: i32) -> (i32, i32) {
    %c0_i32 = arith.constant 0 : i32
    %c0_i32_0 = arith.constant 0 : i32
    %c0_i32_1 = arith.constant 0 : i32
    return %c0_i32, %c0_i32_0 : i32, i32
  }
  func.func @transform_4(%arg0: i32) -> (i32, i32) {
    %c0_i32 = arith.constant 0 : i32
    %c0_i32_0 = arith.constant 0 : i32
    %c0_i32_1 = arith.constant 0 : i32
    return %c0_i32, %c0_i32_0 : i32, i32
  }
  func.func @transform_5(%arg0: i32) -> (i32, i32) {
    %c0_i32 = arith.constant 0 : i32
    %c0_i32_0 = arith.constant 0 : i32
    %c0_i32_1 = arith.constant 0 : i32
    return %c0_i32, %c0_i32_0 : i32, i32
  }
  func.func @transform_6(%arg0: i32) -> (i32, i32) {
    %c0_i32 = arith.constant 0 : i32
    %c0_i32_0 = arith.constant 0 : i32
    %c0_i32_1 = arith.constant 0 : i32
    return %c0_i32, %c0_i32_0 : i32, i32
  }
  func.func @transform_7(%arg0: i32) -> (i32, i32) {
    %c0_i32 = arith.constant 0 : i32
    %c0_i32_0 = arith.constant 0 : i32
    %c0_i32_1 = arith.constant 0 : i32
    return %c0_i32, %c0_i32_0 : i32, i32
  }
  func.func @transform_8(%arg0: i32) -> (i32, i32) {
    %c0_i32 = arith.constant 0 : i32
    %c0_i32_0 = arith.constant 0 : i32
    %c0_i32_1 = arith.constant 0 : i32
    return %c0_i32, %c0_i32_0 : i32, i32
  }
  func.func @transform_9(%arg0: i32) -> (i32, i32) {
    %c0_i32 = arith.constant 0 : i32
    %c0_i32_0 = arith.constant 0 : i32
    %c0_i32_1 = arith.constant 0 : i32
    return %c0_i32, %c0_i32_0 : i32, i32
  }
  func.func @transform_10(%arg0: i32) -> (i32, i32) {
    %c0_i32 = arith.constant 0 : i32
    %c0_i32_0 = arith.constant 0 : i32
    %c0_i32_1 = arith.constant 0 : i32
    return %c0_i32, %c0_i32_0 : i32, i32
  }
  func.func @transform_11(%arg0: i32) -> (i32, i32) {
    %c0_i32 = arith.constant 0 : i32
    %c0_i32_0 = arith.constant 0 : i32
    %c0_i32_1 = arith.constant 0 : i32
    return %c0_i32, %c0_i32_0 : i32, i32
  }
  func.func @transform_12(%arg0: i32) -> (i32, i32) {
    %c0_i32 = arith.constant 0 : i32
    %c0_i32_0 = arith.constant 0 : i32
    %c0_i32_1 = arith.constant 0 : i32
    return %c0_i32, %c0_i32_0 : i32, i32
  }
  func.func @transform_13(%arg0: i32) -> (i32, i32) {
    %c0_i32 = arith.constant 0 : i32
    %c0_i32_0 = arith.constant 0 : i32
    %c0_i32_1 = arith.constant 0 : i32
    return %c0_i32, %c0_i32_0 : i32, i32
  }
  func.func @transform_14(%arg0: i32) -> (i32, i32) {
    %c0_i32 = arith.constant 0 : i32
    %c0_i32_0 = arith.constant 0 : i32
    %c0_i32_1 = arith.constant 0 : i32
    return %c0_i32, %c0_i32_0 : i32, i32
  }
  func.func @transform_15(%arg0: i32) -> (i32, i32) {
    %c0_i32 = arith.constant 0 : i32
    %c0_i32_0 = arith.constant 0 : i32
    return %arg0, %c0_i32 : i32, i32
  }
}

</mosaic_0001>

<bundles_post_ra>
// kernel: tpu_custom_call.1
= control target key start
LH: loop header
LB: loop body
LE: loop exit
PB: predicated region body
PF: predicated region fallthrough
CT: control target
= control target key end

     0   :  { %s4128_s18 = smov 0   ;;  %s5411_s0 = inlined_call_operand.vmem [shape: f32[128,32], index: 0, kind: input, shape index: {}]   ;;  %s5412_s1 = inlined_call_operand.vmem [shape: f32[8,1,16], index: 1, kind: input, shape index: {}]   ;;  %s5413_s2 = inlined_call_operand.vmem [shape: f32[128,1], index: 2, kind: input, shape index: {}]   ;;  %s5414_s3 = inlined_call_operand.vmem [shape: f32[1,32], index: 3, kind: input, shape index: {}]   ;;  %s5415_s4 = inlined_call_operand.vmem [shape: f32[1,32], index: 4, kind: input, shape index: {}]   ;;  %s5416_s5 = inlined_call_operand.vmem [shape: f32[32,96], index: 5, kind: input, shape index: {}]   ;;  %s5417_s6 = inlined_call_operand.vmem [shape: f32[1,96], index: 6, kind: input, shape index: {}]   ;;  %s5418_s7 = inlined_call_operand.vmem [shape: f32[32,32], index: 7, kind: input, shape index: {}]   ;;  %s5419_s8 = inlined_call_operand.vmem [shape: f32[1,32], index: 8, kind: input, shape index: {}]   ;;  %s5420_s9 = inlined_call_operand.vmem [shape: f32[1,32], index: 9, kind: input, shape index: {}]   ;;  %s5421_s10 = inlined_call_operand.vmem [shape: f32[1,32], index: 10, kind: input, shape index: {}]   ;;  %s5422_s11 = inlined_call_operand.vmem [shape: f32[32,128], index: 11, kind: input, shape index: {}]   ;;  %s5423_s12 = inlined_call_operand.vmem [shape: f32[1,128], index: 12, kind: input, shape index: {}]   ;;  %s5424_s13 = inlined_call_operand.vmem [shape: f32[128,32], index: 13, kind: input, shape index: {}]   ;;  %s5425_s14 = inlined_call_operand.vmem [shape: f32[1,32], index: 14, kind: input, shape index: {}]   ;;  %s5426_s15 = inlined_call_operand.vmem [shape: f32[128,32], index: 15, kind: output, shape index: {}]  }
   0x1 LB: > { %s3583_s19 = sadd.s32 4294967295, %s4030_s18   ;;  %p3587_p0 = scmp.ge.s32.totalorder %s4030_s18, 1  ;;  %s4030_s18 = sphi %s4128_s18, %s25_s18  }
   0x2   : > { %p459_p1 = scmp.lt.s32.totalorder %s4030_s18, 3 }
   0x4   : > { %p460_p2 = pnand %p3587_p0, %p459_p1 }
   0x5   : > { %s3588_s20 = sshll.u32 (!%p460_p2), %s3583_s19, 3  ;;  %s4033_s28 = smov (!%p460_p2), 96  }
   0x6   : > { %463 = sbr.rel (%p460_p2) target bundleno = 3267 (0xcc3), region = 80  ;;  %p517_p3 = scmp.lt.s32.totalorder (!%p460_p2), %s3588_s20, 15 }
   0x7   : > { %s4034_s29 = smov (!%p460_p2), 88   ;;  %s4035_s30 = smov (!%p460_p2), 64  }
   0x8   : > { %s4036_s16 = smov (!%p460_p2), 120   ;;  %s3590_s17 = sshll.u32 (!%p460_p2), %s3583_s19, 2 }
   0x9   : > { %p523_p4 = scmp.lt.s32.totalorder (!%p460_p2), %s3590_s17, 7  ;;  %s4038_s19 = smov (!%p460_p2), 56  }
   0xa   : > { %s4039_s25 = smov (!%p460_p2), 80   ;;  %s4040_s26 = smov (!%p460_p2), 112  }
   0xb   : > { %s5438_s20 = smov (!%p517_p3, %s3588_s20), 15  ;;  %vm549_vm0 = vcmask 261120   ;;  %v4032_v16 = vmov 32.0   ;;  %v758_v63 = vld [vmem:[%s5416_s5 + $0x18] sm:$0xff]  ;;  %s5440_s17 = smov (!%p523_p4, %s3590_s17), 7 }
   0xc   : > { %s4138_s21 = sshll.u32 %s5438_s20, 3  ;;  %3854 = vrcp.f32 %v4032_v16  ;;  %799 = vmatpush.msra.mxu0 %v758_v63  ;;  %3717 = vmatpush.msra.mxu3 %v758_v63  ;;  %s525_s23 = scalar_lea.vmem %s5412_s1, %s5440_s17 }
   0xd   : > { %s4144_s24 = scalar_lea.vmem %s5411_s0, %s4138_s21  ;;  %s4041_s27 = smov 48  }
   0xe   : > { %v541_v0 = vld [vmem:[%s4144_s24 + $0x10] sm:$0xff]  ;;  %v539_v1 = vld [vmem:[%s4144_s24] sm:$0xff]  ;;  %v542_v6 = vld [vmem:[%s4144_s24 + $0x18] sm:$0xff]  ;;  %s4046_s17 = smov 8   ;;  %s4047_s20 = smov 24  }
   0xf   : > { %v543_v2 = vld [vmem:[%s4144_s24 + $0x20] sm:$0xff]  ;;  %v556_v3 = vsel %vm549_vm0, %v541_v0, 0.0  ;;  %v550_v4 = vsel %vm549_vm0, %v539_v1, 0.0  ;;  %v540_v7 = vld [vmem:[%s4144_s24 + $0x8] sm:$0xff]  ;;  %v546_v8 = vld [vmem:[%s4144_s24 + $0x38] sm:$0xff]  ;;  %v559_v9 = vsel %vm549_vm0, %v542_v6, 0.0 }
  0x10   : > { %v562_v5 = vsel %vm549_vm0, %v543_v2, 0.0  ;;  %557 = vadd.xlane.f32.xlu1 %v556_v3  ;;  %551 = vadd.xlane.f32.xlu0 %v550_v4  ;;  %v553_v10 = vsel %vm549_vm0, %v540_v7, 0.0  ;;  %v571_v11 = vsel %vm549_vm0, %v546_v8, 0.0  ;;  %v544_v12 = vld [vmem:[%s4144_s24 + $0x28] sm:$0xff]  ;;  %v545_v13 = vld [vmem:[%s4144_s24 + $0x30] sm:$0xff] }
  0x11   : > { %563 = vadd.xlane.f32.xlu2 %v562_v5  ;;  %v565_v14 = vsel %vm549_vm0, %v544_v12, 0.0  ;;  %v568_v15 = vsel %vm549_vm0, %v545_v13, 0.0 }
  0x12   : > { %v3855_v17 = vpop.eup %3854 }
  0x13   : > { %v575_v18 = vmul.f32 32.0, %v3855_v17  ;;  %vm579_vm1 = vweird.f32 %v3855_v17 }
  0x15   : > { %v576_v19 = vsub.f32 1.0, %v575_v18 }
  0x17   : > { %v577_v20 = vmul.f32 %v3855_v17, %v576_v19 }
  0x18   : > { %560 = vadd.xlane.f32.xlu1 %v559_v9  ;;  %554 = vadd.xlane.f32.xlu0 %v553_v10 }
  0x19   : > { %572 = vadd.xlane.f32.xlu2 %v571_v11  ;;  %v578_v21 = vadd.f32 %v3855_v17, %v577_v20 }
  0x1b   : > { %v4162_v22 = vsel %vm579_vm1, %v3855_v17, %v578_v21 }
  0x20   : > { %566 = vadd.xlane.f32.xlu0 %v565_v14 }
  0x21   : > { %569 = vadd.xlane.f32.xlu2 %v568_v15 }
  0x83   : > { %v558_v23 = vpop.xlane.xlu1 %557  ;;  %v552_v24 = vpop.xlane.xlu0 %551 }
  0x84   : > { %v583_v25 = vmul.f32 %v4162_v22, %v558_v23  ;;  %v581_v26 = vmul.f32 %v4162_v22, %v552_v24  ;;  %v564_v27 = vpop.xlane.xlu2 %563 }
  0x85   : > { %v585_v38 = vmul.f32 %v4162_v22, %v564_v27 }
  0x86   : > { %v4166_v28 = vsub.f32 %v539_v1, %v581_v26  ;;  %v4168_v29 = vsub.f32 %v541_v0, %v583_v25  ;;  %v757_v0 = vld [vmem:[%s5416_s5 + $0x10] sm:$0xff]  ;;  %v756_v1 = vld [vmem:[%s5416_s5 + $0x8] sm:$0xff] }
  0x87   : > { %v4190_v46 = vsub.f32 %v543_v2, %v585_v38  ;;  %800 = vmatpush.msra.mxu0 %v757_v0  ;;  %3718 = vmatpush.msra.mxu3 %v757_v0  ;;  %v755_v2 = vld [vmem:[%s5416_s5] sm:$0xff] }
  0x88   : > { %v597_v30 = vmul.f32 %v4166_v28, %v4166_v28  ;;  %v599_v37 = vmul.f32 %v4168_v29, %v4168_v29 }
  0x89   : > { %v601_v54 = vmul.f32 %v4190_v46, %v4190_v46  ;;  %801 = vmatpush.msra.mxu0 %v756_v1  ;;  %3719 = vmatpush.msra.mxu3 %v756_v1 }
  0x8a   : > { %v605_v31 = vsel %vm549_vm0, %v597_v30, 0.0  ;;  %v611_v44 = vsel %vm549_vm0, %v599_v37, 0.0 }
  0x8b   : > { %v561_v32 = vpop.xlane.xlu1 %560  ;;  %606 = vadd.xlane.f32.xlu1 %v605_v31  ;;  %v555_v33 = vpop.xlane.xlu0 %554  ;;  %v617_v59 = vsel %vm549_vm0, %v601_v54, 0.0  ;;  %802 = vmatpush.msra.mxu0 %v755_v2 }
  0x8c   : > { %v584_v34 = vmul.f32 %v4162_v22, %v561_v32  ;;  %v582_v35 = vmul.f32 %v4162_v22, %v555_v33  ;;  %v573_v36 = vpop.xlane.xlu2 %572  ;;  %3720 = vmatpush.msra.mxu3 %v755_v2 }
  0x8d   : > { %v588_v39 = vmul.f32 %v4162_v22, %v573_v36 }
  0x8e   : > { %v4179_v40 = vsub.f32 %v542_v6, %v584_v34  ;;  %v4181_v41 = vsub.f32 %v540_v7, %v582_v35 }
  0x8f   : > { %v4183_v42 = vsub.f32 %v546_v8, %v588_v39  ;;  %v4252_v39 = vld [vmem:[%s5414_s3] ss:$0 sm:$0xff] }
  0x90   : > { %v600_v43 = vmul.f32 %v4179_v40, %v4179_v40  ;;  %v598_v45 = vmul.f32 %v4181_v41, %v4181_v41 }
  0x91   : > { %v604_v52 = vmul.f32 %v4183_v42, %v4183_v42 }
  0x92   : > { %v614_v47 = vsel %vm549_vm0, %v600_v43, 0.0  ;;  %v608_v48 = vsel %vm549_vm0, %v598_v45, 0.0 }
  0x93   : > { %615 = vadd.xlane.f32.xlu2 %v614_v47  ;;  %612 = vadd.xlane.f32.xlu1 %v611_v44  ;;  %v567_v49 = vpop.xlane.xlu0 %566  ;;  %v626_v56 = vsel %vm549_vm0, %v604_v52, 0.0 }
  0x94   : > { %609 = vadd.xlane.f32.xlu0 %v608_v48  ;;  %v586_v50 = vmul.f32 %v4162_v22, %v567_v49  ;;  %v570_v51 = vpop.xlane.xlu2 %569 }
  0x95   : > { %v587_v53 = vmul.f32 %v4162_v22, %v570_v51 }
  0x96   : > { %v4200_v55 = vsub.f32 %v544_v12, %v586_v50 }
  0x97   : > { %v4205_v58 = vsub.f32 %v545_v13, %v587_v53  ;;  %v4262_v53 = vld [vmem:[%s5415_s4] ss:$0 sm:$0xff] }
  0x98   : > { %v602_v57 = vmul.f32 %v4200_v55, %v4200_v55 }
  0x99   : > { %v603_v61 = vmul.f32 %v4205_v58, %v4205_v58 }
  0x9a   : > { %v620_v60 = vsel %vm549_vm0, %v602_v57, 0.0 }
  0x9b   : > { %627 = vadd.xlane.f32.xlu1 %v626_v56  ;;  %621 = vadd.xlane.f32.xlu2 %v620_v60  ;;  %v623_v62 = vsel %vm549_vm0, %v603_v61, 0.0 }
  0x9c   : > { %618 = vadd.xlane.f32.xlu0 %v617_v59 }
  0xa4   : > { %624 = vadd.xlane.f32.xlu0 %v623_v62 }
  0xfe   : > { %v607_v3 = vpop.xlane.xlu1 %606 }
  0xff   : > { %v629_v4 = vmul.f32 %v607_v3, %v4162_v22 }
 0x101   : > { %v637_v5 = vadd.f32 1e-12, %v629_v4 }
 0x103   : > { %3856 = vrsqrt.f32 %v637_v5  ;;  %vm651_vm3 = vweird.f32 %v637_v5 }
 0x106   : > { %v616_v6 = vpop.xlane.xlu2 %615  ;;  %v613_v7 = vpop.xlane.xlu1 %612 }
 0x107   : > { %v632_v8 = vmul.f32 %v616_v6, %v4162_v22  ;;  %v631_v9 = vmul.f32 %v613_v7, %v4162_v22  ;;  %v610_v10 = vpop.xlane.xlu0 %609 }
 0x108   : > { %v630_v11 = vmul.f32 %v610_v10, %v4162_v22 }
 0x109   : > { %v3857_v12 = vpop.eup %3856  ;;  %v4228_v13 = vadd.f32 1e-12, %v632_v8  ;;  %v4230_v14 = vadd.f32 1e-12, %v631_v9 }
 0x10a   : > { %v646_v15 = vmul.f32 %v3857_v12, %v637_v5  ;;  %v638_v16 = vadd.f32 1e-12, %v630_v11  ;;  %vm652_vm2 = vweird.f32 %v3857_v12 }
 0x10b   : > { %3858 = vrsqrt.f32 %v4228_v13  ;;  %vm653_vm4 = vmor %vm651_vm3, %vm652_vm2  ;;  %vm671_vm6 = vweird.f32 %v4230_v14  ;;  %vm681_vm14 = vweird.f32 %v4228_v13 }
 0x10c   : > { %v647_v17 = vmul.f32 %v3857_v12, %v646_v15  ;;  %3860 = vrsqrt.f32 %v4230_v14  ;;  %vm661_vm8 = vweird.f32 %v638_v16 }
 0x10d   : > { %3862 = vrsqrt.f32 %v638_v16 }
 0x10e   : > { %v648_v18 = vmul.f32 0.5, %v647_v17  ;;  %v628_v19 = vpop.xlane.xlu1 %627  ;;  %v622_v27 = vpop.xlane.xlu2 %621 }
 0x10f   : > { %v636_v20 = vmul.f32 %v628_v19, %v4162_v22  ;;  %v619_v21 = vpop.xlane.xlu0 %618  ;;  %v634_v36 = vmul.f32 %v622_v27, %v4162_v22 }
 0x110   : > { %v649_v23 = vsub.f32 1.5, %v648_v18  ;;  %v633_v24 = vmul.f32 %v619_v21, %v4162_v22 }
 0x111   : > { %v4236_v25 = vpop.eup %3858  ;;  %v644_v26 = vadd.f32 1e-12, %v636_v20  ;;  %v4255_v49 = vadd.f32 1e-12, %v634_v36 }
 0x112   : > { %v4238_v30 = vpop.eup %3860  ;;  %v650_v31 = vmul.f32 %v3857_v12, %v649_v23  ;;  %v4240_v32 = vadd.f32 1e-12, %v633_v24  ;;  %v676_v37 = vmul.f32 %v4236_v25, %v4228_v13  ;;  %vm682_vm15 = vweird.f32 %v4236_v25 }
 0x113   : > { %v3863_v33 = vpop.eup %3862  ;;  %v666_v34 = vmul.f32 %v4238_v30, %v4230_v14  ;;  %3864 = vrsqrt.f32 %v644_v26  ;;  %vm672_vm7 = vweird.f32 %v4238_v30  ;;  %vm721_vm9 = vweird.f32 %v644_v26  ;;  %vm683_vm1 = vmor %vm681_vm14, %vm682_vm15 }
 0x114   : > { %v656_v35 = vmul.f32 %v3863_v33, %v638_v16  ;;  %3866 = vrsqrt.f32 %v4240_v32  ;;  %v654_v44 = vsel %vm653_vm4, %v3857_v12, %v650_v31  ;;  %v677_v51 = vmul.f32 %v4236_v25, %v676_v37  ;;  %vm673_vm12 = vmor %vm671_vm6, %vm672_vm7 }
 0x115   : > { %v667_v38 = vmul.f32 %v4238_v30, %v666_v34  ;;  %v725_v47 = vmul.f32 %v654_v44, %v4166_v28  ;;  %vm662_vm5 = vweird.f32 %v3863_v33  ;;  %3868 = vrsqrt.f32 %v4255_v49 }
 0x116   : > { %v657_v43 = vmul.f32 %v3863_v33, %v656_v35  ;;  %v678_v62 = vmul.f32 0.5, %v677_v51  ;;  %vm663_vm10 = vmor %vm661_vm8, %vm662_vm5  ;;  %vm691_vm2 = vweird.f32 %v4240_v32  ;;  %vm701_vm5 = vweird.f32 %v4255_v49 }
 0x117   : > { %v668_v45 = vmul.f32 0.5, %v667_v38  ;;  %v736_v52 = vmul.f32 %v4252_v39, %v725_v47  ;;  %v625_v59 = vpop.xlane.xlu0 %624  ;;  %vm1013_vm14 = vcmask 130048  }
 0x118   : > { %v658_v48 = vmul.f32 0.5, %v657_v43  ;;  %v635_v63 = vmul.f32 %v625_v59, %v4162_v22  ;;  %v679_v10 = vsub.f32 1.5, %v678_v62  ;;  %v3848_v59 = vld [vmem:[%s5417_s6] ss:$0 sm:$0xff] }
 0x119   : > { %v3865_v50 = vpop.eup %3864  ;;  %v669_v54 = vsub.f32 1.5, %v668_v45  ;;  %v747_v0 = vadd.f32 %v4262_v53, %v736_v52 }
 0x11a   : > { %v659_v56 = vsub.f32 1.5, %v658_v48  ;;  %v716_v57 = vmul.f32 %v3865_v50, %v644_v26  ;;  %v4264_v60 = vpop.eup %3866  ;;  %vm722_vm11 = vweird.f32 %v3865_v50  ;;  %v643_v7 = vadd.f32 1e-12, %v635_v63 }
 0x11b   : > { %v670_v1 = vmul.f32 %v4238_v30, %v669_v54  ;;  %v686_v3 = vmul.f32 %v4264_v60, %v4240_v32  ;;  %3595 = vmatmul.msk.f32.vlgmr.msra.gmra.mxu0 %vm549_vm0, %v747_v0  ;;  %vm723_vm13 = vmor %vm721_vm9, %vm722_vm11  ;;  %v3869_v9 = vpop.eup %3868  ;;  %v680_v18 = vmul.f32 %v4236_v25, %v679_v10  ;;  %vm692_vm3 = vweird.f32 %v4264_v60 }
 0x11c   : > { %v660_v28 = vmul.f32 %v3863_v33, %v659_v56  ;;  %v717_v61 = vmul.f32 %v3865_v50, %v716_v57  ;;  %3870 = vrsqrt.f32 %v643_v7  ;;  %v696_v19 = vmul.f32 %v3869_v9, %v4255_v49  ;;  %vm693_vm4 = vmor %vm691_vm2, %vm692_vm3 }
 0x11d   : > { %v687_v12 = vmul.f32 %v4264_v60, %v686_v3  ;;  %v674_v15 = vsel %vm673_vm12, %v4238_v30, %v670_v1  ;;  %vm702_vm6 = vweird.f32 %v3869_v9  ;;  %vm711_vm8 = vweird.f32 %v643_v7 }
 0x11e   : > { %v718_v2 = vmul.f32 0.5, %v717_v61  ;;  %v664_v4 = vsel %vm663_vm10, %v3863_v33, %v660_v28  ;;  %v727_v16 = vmul.f32 %v674_v15, %v4168_v29  ;;  %v697_v24 = vmul.f32 %v3869_v9, %v696_v19  ;;  %vm703_vm7 = vmor %vm701_vm5, %vm702_vm6 }
 0x11f   : > { %v726_v5 = vmul.f32 %v664_v4, %v4181_v41  ;;  %v688_v20 = vmul.f32 0.5, %v687_v12  ;;  %v684_v29 = vsel %vm683_vm1, %v4236_v25, %v680_v18  ;;  %vm842_vm11 = vcmask 64512  }
 0x120   : > { %v719_v6 = vsub.f32 1.5, %v718_v2  ;;  %v738_v13 = vmul.f32 %v4252_v39, %v727_v16  ;;  %v728_v30 = vmul.f32 %v684_v29, %v4179_v40  ;;  %v698_v31 = vmul.f32 0.5, %v697_v24 }
 0x121   : > { %v737_v8 = vmul.f32 %v4252_v39, %v726_v5  ;;  %v689_v26 = vsub.f32 1.5, %v688_v20 }
 0x122   : > { %v720_v11 = vmul.f32 %v3865_v50, %v719_v6  ;;  %v3871_v27 = vpop.eup %3870  ;;  %v739_v25 = vmul.f32 %v4252_v39, %v728_v30  ;;  %v699_v35 = vsub.f32 1.5, %v698_v31  ;;  %v4037_v30 = vmov 0   ;;  %v828_v31 = vld [vmem:[%s525_s23] sm:$0x1] }
 0x123   : > { %v748_v41 = vadd.f32 %v4262_v53, %v737_v8  ;;  %v690_v33 = vmul.f32 %v4264_v60, %v689_v26  ;;  %v706_v34 = vmul.f32 %v3871_v27, %v643_v7  ;;  %vm712_vm9 = vweird.f32 %v3871_v27  ;;  %3843 = vset.pattern.permute.xlu2 %v4037_v30  ;;  %3844 = vset.pattern.permute.xlu1 %v4037_v30 }
 0x124   : > { %v724_v14 = vsel %vm723_vm13, %v3865_v50, %v720_v11  ;;  %v750_v32 = vadd.f32 %v4262_v53, %v739_v25  ;;  %v700_v38 = vmul.f32 %v3869_v9, %v699_v35  ;;  %vm713_vm10 = vmor %vm711_vm8, %vm712_vm9  ;;  %3845 = vset.pattern.permute.xlu0 %v4037_v30  ;;  %vm832_vm12 = vcmp.gt.f32.partialorder %v828_v31, 0.5 }
 0x125   : > { %v732_v17 = vmul.f32 %v724_v14, %v4183_v42  ;;  %3596 = vmatmul.msk.f32.gmra.mxu0 %vm549_vm0, %v748_v41  ;;  %v749_v42 = vadd.f32 %v4262_v53, %v738_v13  ;;  %v707_v36 = vmul.f32 %v3871_v27, %v706_v34  ;;  %v694_v37 = vsel %vm693_vm4, %v4264_v60, %v690_v33 }
 0x126   : > { %v729_v40 = vmul.f32 %v694_v37, %v4190_v46  ;;  %v704_v47 = vsel %vm703_vm7, %v3869_v9, %v700_v38  ;;  %v993_v33 = vsel %vm832_vm12, 1, %v4037_v30 }
 0x127   : > { %v743_v21 = vmul.f32 %v4252_v39, %v732_v17  ;;  %v708_v43 = vmul.f32 0.5, %v707_v36  ;;  %v730_v49 = vmul.f32 %v704_v47, %v4200_v55  ;;  %v997_v34 = vperm.slane %v993_v33, 0 }
 0x128   : > { %v740_v44 = vmul.f32 %v4252_v39, %v729_v40 }
 0x129   : > { %v754_v23 = vadd.f32 %v4262_v53, %v743_v21  ;;  %v709_v45 = vsub.f32 1.5, %v708_v43  ;;  %v741_v46 = vmul.f32 %v4252_v39, %v730_v49  ;;  %vm4404_vm13 = vcmp.eq.s32.totalorder %v997_v34, 1 }
 0x12a   : > { %v751_v48 = vadd.f32 %v4262_v53, %v740_v44 }
 0x12b   : > { %3602 = vmatmul.msk.f32.vlgmr.msra.gmra.mxu3 %vm549_vm0, %v754_v23  ;;  %v710_v50 = vmul.f32 %v3871_v27, %v709_v45  ;;  %v752_v52 = vadd.f32 %v4262_v53, %v741_v46  ;;  %v829_v45 = vld [vmem:[%s525_s23 + $0x1] sm:$0x1] }
 0x12c   : > { %vm833_vm15 = vcmp.gt.f32.partialorder %v829_v45, 0.5 }
 0x12d   : > { %3597 = vmatmul.msk.f32.gmra.mxu0 %vm549_vm0, %v749_v42  ;;  %v714_v51 = vsel %vm713_vm10, %v3871_v27, %v710_v50  ;;  %v994_v47 = vsel %vm833_vm15, 1, %v4037_v30 }
 0x12e   : > { %v731_v54 = vmul.f32 %v714_v51, %v4205_v58  ;;  %v998_v49 = vperm.slane %v994_v47, 0 }
 0x130   : > { %v742_v56 = vmul.f32 %v4252_v39, %v731_v54  ;;  %vm4414_vm2 = vcmp.eq.s32.totalorder %v998_v49, 1 }
 0x132   : > { %v753_v57 = vadd.f32 %v4262_v53, %v742_v56 }
 0x135   : > { %3598 = vmatmul.msk.f32.gmra.mxu0 %vm549_vm0, %v750_v32 }
 0x13d   : > { %3599 = vmatmul.msk.f32.gmra.mxu0 %vm549_vm0, %v751_v48  ;;  %v831_v48 = vld [vmem:[%s525_s23 + $0x3] sm:$0x1] }
 0x13e   : > { %vm835_vm1 = vcmp.gt.f32.partialorder %v831_v48, 0.5 }
 0x13f   : > { %v996_v50 = vsel %vm835_vm1, 1, %v4037_v30 }
 0x140   : > { %v1000_v56 = vperm.slane %v996_v50, 0 }
 0x142   : > { %vm4421_vm3 = vcmp.eq.s32.totalorder %v1000_v56, 1 }
 0x145   : > { %3600 = vmatmul.msk.f32.gmra.mxu0 %vm549_vm0, %v752_v52 }
 0x14d   : > { %3601 = vmatmul.msk.f32.gmra.mxu0 %vm549_vm0, %v753_v57 }
 0x198   : > { %v804_v55 = vpop.f32.mrf.mxu0 }
 0x199   : > { %v4326_v61 = vadd.f32 %v3848_v59, %v804_v55  ;;  %v830_v55 = vld [vmem:[%s525_s23 + $0x2] sm:$0x1] }
 0x19a   : > { %vm834_vm4 = vcmp.gt.f32.partialorder %v830_v55, 0.5 }
 0x1a2   : > { %v807_v60 = vpop.f32.mrf.mxu0 }
 0x1a3   : > { %v4323_v28 = vadd.f32 %v3848_v59, %v807_v60 }
 0x1a5   : > { %840 = vrot.lane.b32.xlu2 %v4323_v28, %s4033_s28  ;;  %v4361_v9 = vpack.i.bf16 %v4326_v61, %v4323_v28 }
 0x1aa   : > { %v810_v58 = vpop.f32.mrf.mxu0 }
 0x1ab   : > { %v4328_v62 = vadd.f32 %v3848_v59, %v810_v58 }
 0x1ad   : > { %876 = vrot.lane.b32.xlu0 %v4328_v62, %s4033_s28  ;;  %838 = vrot.lane.b32.xlu2 %v4326_v61, %s4033_s28 }
 0x1ae   : > { %v825_v63 = vpop.f32.mrf.mxu3 }
 0x1af   : > { %v4335_v1 = vadd.f32 %v3848_v59, %v825_v63 }
 0x1b2   : > { %v813_v39 = vpop.f32.mrf.mxu0 }
 0x1b3   : > { %v4332_v53 = vadd.f32 %v3848_v59, %v813_v39 }
 0x1b5   : > { %878 = vrot.lane.b32.xlu1 %v4332_v53, %s4033_s28  ;;  %v4348_v7 = vpack.i.bf16 %v4328_v62, %v4332_v53 }
 0x1ba   : > { %v816_v0 = vpop.f32.mrf.mxu0 }
 0x1bb   : > { %v4338_v3 = vadd.f32 %v3848_v59, %v816_v0 }
 0x1bd   : > { %952 = vrot.lane.b32.xlu1 %v4335_v1, %s4033_s28 }
 0x1c2   : > { %v819_v2 = vpop.f32.mrf.mxu0 }
 0x1c3   : > { %v4340_v4 = vadd.f32 %v3848_v59, %v819_v2  ;;  %v995_v2 = vsel %vm834_vm4, 1, %v4037_v30 }
 0x1c5   : > { %915 = vrot.lane.b32.xlu0 %v4340_v4, %s4033_s28  ;;  %913 = vrot.lane.b32.xlu1 %v4338_v3, %s4033_s28 }
 0x1ca   : > { %v822_v5 = vpop.f32.mrf.mxu0 }
 0x1cb   : > { %v4344_v6 = vadd.f32 %v3848_v59, %v822_v5 }
 0x1cd   : > { %1358 = vrot.lane.b32.xlu0 %v4326_v61, %s4034_s29  ;;  %3769 = vrot.lane.b32.xlu1 %v4348_v7, %s4035_s30  ;;  %v4357_v8 = vpack.i.bf16 %v4344_v6, %v4335_v1 }
 0x1ce   : > { %950 = vrot.lane.b32.xlu2 %v4344_v6, %s4033_s28  ;;  %s4042_s28 = smov 72  }
 0x1d5   : > { %3774 = vrot.lane.b32.xlu1 %v4357_v8, %s4035_s30 }
 0x1d6   : > { %3764 = vrot.lane.b32.xlu2 %v4361_v9, %s4035_s30 }
 0x1de   : > { %1360 = vrot.lane.b32.xlu2 %v4323_v28, %s4034_s29 }
 0x1e6   : > { %1354 = vrot.lane.b32.xlu2 %v4326_v61, %s4036_s16 }
 0x1ff   : > { %v841_v10 = vpop.permute.xlu2 %840 }
 0x200   : > { %3603 = vmatpush.xpose.msk.msra.mxu1 %vm842_vm11, %v841_v10  ;;  %3721 = vmatpush.xpose.msk.msrb.mxu3 %vm842_vm11, %v841_v10 }
 0x207   : > { %v839_v11 = vpop.permute.xlu2 %838 }
 0x208   : > { %3604 = vmatpush.xpose.msk.msra.mxu1 %vm842_vm11, %v839_v11  ;;  %3722 = vmatpush.xpose.msk.msrb.mxu3 %vm842_vm11, %v839_v11 }
 0x20b   : > { %3605 = vmatmul.msk.f32.vlgmr.msra.gmra.mxu1 %vm842_vm11, %v4326_v61  ;;  %3606 = vmatmul.msk.f32.vlgmr.msrb.gmra.mxu3 %vm842_vm11, %v4323_v28 }
 0x21f   : > { %v877_v41 = vpop.permute.xlu0 %876 }
 0x227   : > { %v879_v12 = vpop.permute.xlu1 %878 }
 0x228   : > { %v951_v15 = vpop.permute.xlu2 %950  ;;  %3607 = vmatpush.xpose.msk.msra.mxu2 %vm842_vm11, %v879_v12 }
 0x22c   : > { %3608 = vmatpush.xpose.msk.msra.mxu2 %vm842_vm11, %v877_v41 }
 0x22f   : > { %v953_v14 = vpop.permute.xlu1 %952  ;;  %3609 = vmatmul.msk.f32.vlgmr.msra.gmra.mxu2 %vm842_vm11, %v4328_v62 }
 0x230   : > { %v3765_v16 = vpop.permute.xlu2 %3764  ;;  %3615 = vmatpush.xpose.msk.msrb.mxu1 %vm842_vm11, %v953_v14 }
 0x231   : > { %v3766_v17 = vunpack.i.l.bf16 %v3765_v16  ;;  %v3767_v18 = vunpack.i.h.bf16 %v3765_v16 }
 0x233   : > { %1240 = vmatpush.msrb.mxu2 %v3766_v17 }
 0x234   : > { %3616 = vmatpush.xpose.msk.msrb.mxu1 %vm842_vm11, %v951_v15  ;;  %v999_v15 = vperm.slane %v995_v2, 0 }
 0x235   : > { %1241 = vmatpush.msrb.mxu2 %v3767_v18 }
 0x236   : > { %vm4434_vm5 = vcmp.eq.s32.totalorder %v999_v15, 1 }
 0x237   : > { %v914_v19 = vpop.permute.xlu1 %913  ;;  %3617 = vmatmul.msk.f32.vlgmr.msrb.gmra.mxu1 %vm842_vm11, %v4344_v6  ;;  %3610 = vmatmul.msk.f32.gmra.mxu2 %vm842_vm11, %v4332_v53  ;;  %v916_v20 = vpop.permute.xlu0 %915 }
 0x238   : > { %3611 = vmatpush.xpose.msk.msra.mxu3 %vm842_vm11, %v916_v20  ;;  %v1361_v24 = vpop.permute.xlu2 %1360 }
 0x23c   : > { %3612 = vmatpush.xpose.msk.msra.mxu3 %vm842_vm11, %v914_v19 }
 0x23f   : > { %v3770_v21 = vpop.permute.xlu1 %3769  ;;  %3618 = vmatmul.msk.f32.gmra.mxu1 %vm842_vm11, %v4335_v1  ;;  %3613 = vmatmul.msk.f32.vlgmr.msra.gmra.mxu3 %vm842_vm11, %v4338_v3  ;;  %v1359_v29 = vpop.permute.xlu0 %1358 }
 0x240   : > { %v3771_v13 = vunpack.i.l.bf16 %v3770_v21  ;;  %v3772_v23 = vunpack.i.h.bf16 %v3770_v21 }
 0x242   : > { %1275 = vmatpush.msrb.mxu3 %v3771_v13 }
 0x244   : > { %1276 = vmatpush.msrb.mxu3 %v3772_v23 }
 0x246   : > { %3627 = vmatpush.xpose.msk.msra.mxu3 %vm842_vm11, %v1361_v24 }
 0x247   : > { %v3775_v26 = vpop.permute.xlu1 %3774  ;;  %3614 = vmatmul.msk.f32.gmra.mxu3 %vm842_vm11, %v4340_v4 }
 0x248   : > { %v3776_v27 = vunpack.i.l.bf16 %v3775_v26  ;;  %v3777_v42 = vunpack.i.h.bf16 %v3775_v26 }
 0x24a   : > { %3628 = vmatpush.xpose.msk.msra.mxu3 %vm842_vm11, %v1359_v29  ;;  %1345 = vmatpush.msra.mxu2 %v3776_v27  ;;  %v4458_v29 = vpack.i.bf16 %v4338_v3, %v4340_v4 }
 0x24c   : > { %1346 = vmatpush.msra.mxu2 %v3777_v42 }
 0x288   : > { %v868_v25 = vpop.f32.mrf.mxu1 }
 0x289   : > { %v985_v36 = vmul.f32 0.35355338, %v868_v25 }
 0x28b   : > { %v1005_v37 = vsel %vm4404_vm13, %v985_v36, -1e+30 }
 0x28c   : > { %v1014_v32 = vsel %vm1013_vm14, %v1005_v37, -inf }
 0x28d   : > { %1015 = vmax.xlane.f32.xlu0 %v1014_v32 }
 0x28e   : > { %v871_v40 = vpop.f32.mrf.mxu3 }
 0x28f   : > { %v986_v38 = vmul.f32 0.35355338, %v871_v40 }
 0x291   : > { %v1006_v43 = vsel %vm4404_vm13, %v986_v38, -1e+30  ;;  %v4472_v38 = vpop.permute.xlu2 %1354 }
 0x292   : > { %v1017_v44 = vsel %vm1013_vm14, %v1006_v43, -inf }
 0x293   : > { %1018 = vmax.xlane.f32.xlu1 %v1017_v44 }
 0x2b2   : > { %v905_v46 = vpop.f32.mrf.mxu2 }
 0x2b3   : > { %v987_v52 = vmul.f32 0.35355338, %v905_v46 }
 0x2b4   : > { %v979_v54 = vpop.f32.mrf.mxu1 }
 0x2b5   : > { %v1007_v57 = vsel %vm4414_vm2, %v987_v52, -1e+30  ;;  %v991_v60 = vmul.f32 0.35355338, %v979_v54  ;;  %v3788_v54 = vpack.i.bf16 %v4332_v53, %v4340_v4 }
 0x2b6   : > { %v1020_v59 = vsel %vm1013_vm14, %v1007_v57, -inf }
 0x2b7   : > { %1021 = vmax.xlane.f32.xlu2 %v1020_v59  ;;  %v4427_v0 = vsel %vm4421_vm3, %v991_v60, -1e+30 }
 0x2b8   : > { %v1032_v11 = vsel %vm1013_vm14, %v4427_v0, -inf }
 0x2ba   : > { %v908_v39 = vpop.f32.mrf.mxu2 }
 0x2bb   : > { %v988_v63 = vmul.f32 0.35355338, %v908_v39 }
 0x2bc   : > { %v982_v5 = vpop.f32.mrf.mxu1 }
 0x2bd   : > { %v1008_v10 = vsel %vm4414_vm2, %v988_v63, -1e+30  ;;  %v992_v41 = vmul.f32 0.35355338, %v982_v5 }
 0x2be   : > { %v1023_v12 = vsel %vm1013_vm14, %v1008_v10, -inf }
 0x2bf   : > { %1033 = vmax.xlane.f32.xlu2 %v1032_v11  ;;  %1024 = vmax.xlane.f32.xlu0 %v1023_v12  ;;  %v4440_v18 = vsel %vm4421_vm3, %v992_v41, -1e+30 }
 0x2c0   : > { %v1035_v20 = vsel %vm1013_vm14, %v4440_v18, -inf }
 0x2c2   : > { %v942_v14 = vpop.f32.mrf.mxu3 }
 0x2c3   : > { %v989_v17 = vmul.f32 0.35355338, %v942_v14 }
 0x2c5   : > { %v4444_v19 = vsel %vm4434_vm5, %v989_v17, -1e+30  ;;  %v3793_v17 = vpack.i.bf16 %v4328_v62, %v4338_v3 }
 0x2c6   : > { %v1026_v21 = vsel %vm1013_vm14, %v4444_v19, -inf }
 0x2c7   : > { %1036 = vmax.xlane.f32.xlu0 %v1035_v20  ;;  %1027 = vmax.xlane.f32.xlu1 %v1026_v21 }
 0x2ca   : > { %v945_v13 = vpop.f32.mrf.mxu3 }
 0x2cb   : > { %v990_v23 = vmul.f32 0.35355338, %v945_v13 }
 0x2cd   : > { %v4452_v24 = vsel %vm4434_vm5, %v990_v23, -1e+30 }
 0x2ce   : > { %v1029_v26 = vsel %vm1013_vm14, %v4452_v24, -inf }
 0x2cf   : > { %1030 = vmax.xlane.f32.xlu2 %v1029_v26 }
 0x2e0   : > { %3779 = vrot.lane.b32.xlu1 %v4458_v29, %s4035_s30  ;;  %s4044_s30 = smov 40  }
 0x2e7   : > { %1438 = vrot.lane.b32.xlu2 %v4340_v4, %s4034_s29 }
 0x300   : > { %v1016_v27 = vpop.xlane.xlu0 %1015 }
 0x301   : > { %v1038_v42 = vsub.f32 %v1005_v37, %v1016_v27 }
 0x303   : > { %v1046_v30 = vmul.f32 1.442695, %v1038_v42 }
 0x305   : > { %3872 = vpow2.f32 %v1046_v30 }
 0x306   : > { %v1019_v31 = vpop.xlane.xlu1 %1018 }
 0x307   : > { %v1039_v33 = vsub.f32 %v1006_v43, %v1019_v31 }
 0x309   : > { %v1048_v34 = vmul.f32 1.442695, %v1039_v33 }
 0x30b   : > { %v4464_v25 = vpop.eup %3872  ;;  %3874 = vpow2.f32 %v1048_v34 }
 0x30c   : > { %v1062_v36 = vsel %vm1013_vm14, %v4464_v25, 0.0 }
 0x30d   : > { %1063 = vadd.xlane.f32.xlu1 %v1062_v36 }
 0x311   : > { %v4468_v32 = vpop.eup %3874 }
 0x312   : > { %v1065_v40 = vsel %vm1013_vm14, %v4468_v32, 0.0 }
 0x313   : > { %1066 = vadd.xlane.f32.xlu2 %v1065_v40 }
 0x32a   : > { %v1022_v37 = vpop.xlane.xlu2 %1021 }
 0x32b   : > { %v1040_v44 = vsub.f32 %v1007_v57, %v1022_v37  ;;  %1436 = vrot.lane.b32.xlu2 %v4338_v3, %s4034_s29 }
 0x32d   : > { %v1050_v43 = vmul.f32 1.442695, %v1040_v44 }
 0x32f   : > { %3876 = vpow2.f32 %v1050_v43 }
 0x332   : > { %v1025_v45 = vpop.xlane.xlu0 %1024  ;;  %v1034_v60 = vpop.xlane.xlu2 %1033 }
 0x333   : > { %v1041_v47 = vsub.f32 %v1008_v10, %v1025_v45  ;;  %1397 = vrot.lane.b32.xlu2 %v4328_v62, %s4034_s29  ;;  %v1044_v39 = vsub.f32 %v4427_v0, %v1034_v60 }
 0x335   : > { %v4478_v48 = vpop.eup %3876  ;;  %v1052_v49 = vmul.f32 1.442695, %v1041_v47  ;;  %v1058_v63 = vmul.f32 1.442695, %v1044_v39 }
 0x336   : > { %v1068_v50 = vsel %vm1013_vm14, %v4478_v48, 0.0 }
 0x337   : > { %1069 = vadd.xlane.f32.xlu0 %v1068_v50  ;;  %3878 = vpow2.f32 %v1052_v49 }
 0x338   : > { %3880 = vpow2.f32 %v1058_v63 }
 0x33a   : > { %v1028_v56 = vpop.xlane.xlu1 %1027  ;;  %v1037_v11 = vpop.xlane.xlu0 %1036 }
 0x33b   : > { %1477 = vrot.lane.b32.xlu2 %v4335_v1, %s4034_s29  ;;  %v1042_v2 = vsub.f32 %v4444_v19, %v1028_v56  ;;  %v1045_v15 = vsub.f32 %v4440_v18, %v1037_v11 }
 0x33d   : > { %v4484_v46 = vpop.eup %3878  ;;  %v1054_v10 = vmul.f32 1.442695, %v1042_v2  ;;  %v1060_v14 = vmul.f32 1.442695, %v1045_v15 }
 0x33e   : > { %v1071_v52 = vsel %vm1013_vm14, %v4484_v46, 0.0  ;;  %v4507_v12 = vpop.eup %3880 }
 0x33f   : > { %1072 = vadd.xlane.f32.xlu1 %v1071_v52  ;;  %3882 = vpow2.f32 %v1054_v10  ;;  %v1080_v0 = vsel %vm1013_vm14, %v4507_v12, 0.0 }
 0x342   : > { %v1031_v5 = vpop.xlane.xlu2 %1030 }
 0x343   : > { %1471 = vrot.lane.b32.xlu2 %v4344_v6, %s4036_s16  ;;  %v1043_v21 = vsub.f32 %v4452_v24, %v1031_v5 }
 0x345   : > { %v4516_v20 = vpop.eup %3882  ;;  %v1056_v26 = vmul.f32 1.442695, %v1043_v21 }
 0x346   : > { %v1074_v18 = vsel %vm1013_vm14, %v4516_v20, 0.0 }
 0x34a   : > { %v1439_v41 = vpop.permute.xlu2 %1438 }
 0x34b   : > { %1432 = vrot.lane.b32.xlu0 %v4338_v3, %s4036_s16  ;;  %3789 = vrot.lane.b32.xlu2 %v3788_v54, %s4038_s19 }
 0x352   : > { %v3780_v57 = vpop.permute.xlu1 %3779 }
 0x353   : > { %v3781_v55 = vunpack.i.l.bf16 %v3780_v57  ;;  %1393 = vrot.lane.b32.xlu0 %v4328_v62, %s4036_s16  ;;  %v3782_v59 = vunpack.i.h.bf16 %v3780_v57 }
 0x355   : > { %1310 = vmatpush.msra.mxu1 %v3781_v55 }
 0x357   : > { %1311 = vmatpush.msra.mxu1 %v3782_v59 }
 0x358   : > { %1356 = vrot.lane.b32.xlu1 %v4323_v28, %s4036_s16 }
 0x360   : > { %1399 = vrot.lane.b32.xlu1 %v4332_v53, %s4034_s29 }
 0x368   : > { %1434 = vrot.lane.b32.xlu1 %v4340_v4, %s4036_s16 }
 0x370   : > { %1395 = vrot.lane.b32.xlu1 %v4332_v53, %s4036_s16 }
 0x378   : > { %3784 = vrot.lane.b32.xlu1 %v4361_v9, %s4038_s19 }
 0x37d   : > { %1081 = vadd.xlane.f32.xlu0 %v1080_v0 }
 0x380   : > { %v1064_v19 = vpop.xlane.xlu1 %1063  ;;  %3794 = vrot.lane.b32.xlu1 %v3793_v17, %s4038_s19 }
 0x381   : > { %3884 = vrcp.f32 %v1064_v19  ;;  %v1097_v31 = vand.u32 2147483648, %v1064_v19  ;;  %v1095_v34 = vand.u32 2147483647, %v1064_v19  ;;  %vm1091_vm7 = vweird.f32 %v1064_v19 }
 0x382   : > { %3886 = vpow2.f32 %v1060_v14 }
 0x383   : > { %v1098_v44 = vor.u32 1.1754944e-38, %v1097_v31  ;;  %vm1096_vm9 = vcmp.eq.f32.partialorder %v1095_v34, 8.507059e+37 }
 0x385   : > { %1075 = vadd.xlane.f32.xlu0 %v1074_v18 }
 0x386   : > { %v1067_v13 = vpop.xlane.xlu2 %1066 }
 0x387   : > { %v3885_v23 = vpop.eup %3884  ;;  %3888 = vrcp.f32 %v1067_v13  ;;  %v1112_v50 = vand.u32 2147483648, %v1067_v13  ;;  %v1110_v56 = vand.u32 2147483647, %v1067_v13  ;;  %vm1106_vm12 = vweird.f32 %v1067_v13 }
 0x388   : > { %v1087_v27 = vmul.f32 %v3885_v23, %v1064_v19  ;;  %v4522_v42 = vpop.eup %3886  ;;  %3890 = vpow2.f32 %v1056_v26  ;;  %vm1092_vm6 = vweird.f32 %v3885_v23 }
 0x389   : > { %v1083_v24 = vsel %vm1013_vm14, %v4522_v42, 0.0  ;;  %vm1093_vm8 = vmor %vm1091_vm7, %vm1092_vm6  ;;  %v1113_v60 = vor.u32 1.1754944e-38, %v1112_v50  ;;  %vm1111_vm1 = vcmp.eq.f32.partialorder %v1110_v56, 8.507059e+37 }
 0x38a   : > { %v1088_v30 = vsub.f32 1.0, %v1087_v27 }
 0x38c   : > { %v1089_v33 = vmul.f32 %v3885_v23, %v1088_v30 }
 0x38d   : > { %v3889_v36 = vpop.eup %3888  ;;  %1084 = vadd.xlane.f32.xlu0 %v1083_v24 }
 0x38e   : > { %v1090_v40 = vadd.f32 %v3885_v23, %v1089_v33  ;;  %v1102_v37 = vmul.f32 %v3889_v36, %v1067_v13  ;;  %v4526_v47 = vpop.eup %3890  ;;  %vm1107_vm10 = vweird.f32 %v3889_v36  ;;  %v1437_v2 = vpop.permute.xlu2 %1436 }
 0x38f   : > { %v1077_v55 = vsel %vm1013_vm14, %v4526_v47, 0.0  ;;  %vm1108_vm15 = vmor %vm1106_vm12, %vm1107_vm10 }
 0x390   : > { %v1103_v43 = vsub.f32 1.0, %v1102_v37  ;;  %v1094_v45 = vsel %vm1093_vm8, %v3885_v23, %v1090_v40 }
 0x391   : > { %v1099_v49 = vsel %vm1096_vm9, %v1098_v44, %v1094_v45 }
 0x392   : > { %v1100_v52 = vmul.f32 %v4464_v25, %v1099_v49  ;;  %v1104_v54 = vmul.f32 %v3889_v36, %v1103_v43 }
 0x394   : > { %v1206_v57 = vsel %vm4404_vm13, %v1100_v52, 0.0  ;;  %v1105_v59 = vadd.f32 %v3889_v36, %v1104_v54 }
 0x395   : > { %3619 = vmatmul.msk.f32.vlgmr.msrb.gmra.mxu2 %vm1013_vm14, %v1206_v57  ;;  %1078 = vadd.xlane.f32.xlu0 %v1077_v55 }
 0x396   : > { %3635 = vmatpush.xpose.msk.msrb.mxu2 %vm842_vm11, %v1439_v41  ;;  %v1109_v39 = vsel %vm1108_vm15, %v3889_v36, %v1105_v59  ;;  %v1398_v41 = vpop.permute.xlu2 %1397 }
 0x397   : > { %v1114_v25 = vsel %vm1111_vm1, %v1113_v60, %v1109_v39 }
 0x398   : > { %v1115_v63 = vmul.f32 %v4468_v32, %v1114_v25 }
 0x39a   : > { %3636 = vmatpush.xpose.msk.msrb.mxu2 %vm842_vm11, %v1437_v2  ;;  %v1207_v5 = vsel %vm4404_vm13, %v1115_v63, 0.0 }
 0x39d   : > { %3620 = vmatmul.msk.f32.gmra.mxu2 %vm1013_vm14, %v1207_v5 }
 0x39e   : > { %v1478_v24 = vpop.permute.xlu2 %1477 }
 0x3a6   : > { %v4568_v39 = vpop.permute.xlu2 %1471 }
 0x3a9   : > { %1475 = vrot.lane.b32.xlu0 %v4344_v6, %s4034_s29  ;;  %s4043_s29 = smov 104  }
 0x3aa   : > { %v1070_v10 = vpop.xlane.xlu0 %1069 }
 0x3ab   : > { %3892 = vrcp.f32 %v1070_v10  ;;  %v1127_v14 = vand.u32 2147483648, %v1070_v10  ;;  %v1125_v19 = vand.u32 2147483647, %v1070_v10  ;;  %vm1121_vm6 = vweird.f32 %v1070_v10 }
 0x3ad   : > { %v1128_v18 = vor.u32 1.1754944e-38, %v1127_v14  ;;  %vm1126_vm8 = vcmp.eq.f32.partialorder %v1125_v19, 8.507059e+37 }
 0x3ae   : > { %v3790_v14 = vpop.permute.xlu2 %3789 }
 0x3b1   : > { %v3893_v11 = vpop.eup %3892  ;;  %1473 = vrot.lane.b32.xlu0 %v4335_v1, %s4036_s16  ;;  %s4045_s16 = smov 16  }
 0x3b2   : > { %v1117_v15 = vmul.f32 %v3893_v11, %v1070_v10  ;;  %v1073_v0 = vpop.xlane.xlu1 %1072  ;;  %vm1122_vm4 = vweird.f32 %v3893_v11 }
 0x3b3   : > { %3894 = vrcp.f32 %v1073_v0  ;;  %vm1123_vm7 = vmor %vm1121_vm6, %vm1122_vm4  ;;  %v1142_v33 = vand.u32 2147483648, %v1073_v0  ;;  %v1140_v40 = vand.u32 2147483647, %v1073_v0  ;;  %vm1136_vm10 = vweird.f32 %v1073_v0 }
 0x3b4   : > { %v1118_v32 = vsub.f32 1.0, %v1117_v15 }
 0x3b5   : > { %v1143_v44 = vor.u32 1.1754944e-38, %v1142_v33  ;;  %vm1141_vm15 = vcmp.eq.f32.partialorder %v1140_v40, 8.507059e+37 }
 0x3b6   : > { %v1119_v17 = vmul.f32 %v3893_v11, %v1118_v32 }
 0x3b8   : > { %v1120_v21 = vadd.f32 %v3893_v11, %v1119_v17 }
 0x3b9   : > { %1872 = vrot.lane.b32.xlu0 %v4323_v28, %s4039_s25  ;;  %v3895_v13 = vpop.eup %3894 }
 0x3ba   : > { %v1124_v23 = vsel %vm1123_vm7, %v3893_v11, %v1120_v21  ;;  %v1132_v26 = vmul.f32 %v3895_v13, %v1073_v0  ;;  %vm1137_vm9 = vweird.f32 %v3895_v13 }
 0x3bb   : > { %v1129_v27 = vsel %vm1126_vm8, %v1128_v18, %v1124_v23  ;;  %vm1138_vm12 = vmor %vm1136_vm10, %vm1137_vm9 }
 0x3bc   : > { %v1130_v30 = vmul.f32 %v4478_v48, %v1129_v27  ;;  %v1133_v31 = vsub.f32 1.0, %v1132_v26  ;;  %v3791_v26 = vunpack.i.l.bf16 %v3790_v14 }
 0x3bd   : > { %v4562_v56 = vpop.permute.xlu0 %1432 }
 0x3be   : > { %v1208_v34 = vsel %vm4414_vm2, %v1130_v30, 0.0  ;;  %v1134_v36 = vmul.f32 %v3895_v13, %v1133_v31 }
 0x3bf   : > { %3621 = vmatmul.msk.f32.vlgmr.msrb.gmra.mxu3 %vm1013_vm14, %v1208_v34 }
 0x3c0   : > { %3639 = vmatpush.xpose.msk.msrb.mxu3 %vm842_vm11, %v1478_v24  ;;  %v1135_v37 = vadd.f32 %v3895_v13, %v1134_v36 }
 0x3c2   : > { %v1139_v43 = vsel %vm1138_vm12, %v3895_v13, %v1135_v37 }
 0x3c3   : > { %v1144_v48 = vsel %vm1141_vm15, %v1143_v44, %v1139_v43 }
 0x3c4   : > { %v1145_v45 = vmul.f32 %v4484_v46, %v1144_v48 }
 0x3c5   : > { %v4566_v57 = vpop.permute.xlu0 %1393 }
 0x3c6   : > { %v1209_v49 = vsel %vm4414_vm2, %v1145_v45, 0.0 }
 0x3c7   : > { %3622 = vmatmul.msk.f32.gmra.mxu3 %vm1013_vm14, %v1209_v49 }
 0x3ca   : > { %v1357_v50 = vpop.permute.xlu1 %1356 }
 0x3cf   : > { %3629 = vmatmul.msk.f32.vlgmr.msra.gmra.mxu3 %vm842_vm11, %v4472_v38 }
 0x3d2   : > { %v1400_v52 = vpop.permute.xlu1 %1399 }
 0x3d3   : > { %3631 = vmatpush.xpose.msk.msrb.mxu1 %vm842_vm11, %v1400_v52 }
 0x3d7   : > { %3630 = vmatmul.msk.f32.gmra.mxu3 %vm842_vm11, %v1357_v50  ;;  %3632 = vmatpush.xpose.msk.msrb.mxu1 %vm842_vm11, %v1398_v41  ;;  %v3792_v50 = vunpack.i.h.bf16 %v3790_v14 }
 0x3da   : > { %v4560_v54 = vpop.permute.xlu1 %1434 }
 0x3e2   : > { %v4564_v46 = vpop.permute.xlu1 %1395 }
 0x3ea   : > { %v3785_v55 = vpop.permute.xlu1 %3784 }
 0x3eb   : > { %v3786_v59 = vunpack.i.l.bf16 %v3785_v55  ;;  %v3787_v60 = vunpack.i.h.bf16 %v3785_v55 }
 0x3ed   : > { %1752 = vmatpush.msrb.mxu0 %v3786_v59 }
 0x3ef   : > { %1753 = vmatpush.msrb.mxu0 %v3787_v60 }
 0x3f0   : > { %v1082_v38 = vpop.xlane.xlu0 %1081 }
 0x3f1   : > { %3896 = vrcp.f32 %v1082_v38  ;;  %v1187_v10 = vand.u32 2147483648, %v1082_v38  ;;  %v1185_v15 = vand.u32 2147483647, %v1082_v38  ;;  %vm1181_vm4 = vweird.f32 %v1082_v38 }
 0x3f2   : > { %v3795_v27 = vpop.permute.xlu1 %3794 }
 0x3f3   : > { %v1188_v41 = vor.u32 1.1754944e-38, %v1187_v10  ;;  %vm1186_vm7 = vcmp.eq.f32.partialorder %v1185_v15, 8.507059e+37  ;;  %v3796_v24 = vunpack.i.l.bf16 %v3795_v27 }
 0x3f7   : > { %v3897_v25 = vpop.eup %3896 }
 0x3f8   : > { %v1177_v63 = vmul.f32 %v3897_v25, %v1082_v38  ;;  %v1076_v2 = vpop.xlane.xlu0 %1075  ;;  %vm1182_vm1 = vweird.f32 %v3897_v25  ;;  %v3797_v38 = vunpack.i.h.bf16 %v3795_v27 }
 0x3f9   : > { %3898 = vrcp.f32 %v1076_v2  ;;  %vm1183_vm6 = vmor %vm1181_vm4, %vm1182_vm1  ;;  %v1157_v30 = vand.u32 2147483648, %v1076_v2  ;;  %v1155_v34 = vand.u32 2147483647, %v1076_v2  ;;  %vm1151_vm9 = vweird.f32 %v1076_v2 }
 0x3fa   : > { %v1178_v5 = vsub.f32 1.0, %v1177_v63 }
 0x3fb   : > { %v1158_v37 = vor.u32 1.1754944e-38, %v1157_v30  ;;  %vm1156_vm12 = vcmp.eq.f32.partialorder %v1155_v34, 8.507059e+37 }
 0x3fc   : > { %v1179_v11 = vmul.f32 %v3897_v25, %v1178_v5 }
 0x3fe   : > { %v1180_v0 = vadd.f32 %v3897_v25, %v1179_v11 }
 0x3ff   : > { %v3899_v32 = vpop.eup %3898 }
 0x400   : > { %v1147_v17 = vmul.f32 %v3899_v32, %v1076_v2  ;;  %v1085_v19 = vpop.xlane.xlu0 %1084  ;;  %v1184_v21 = vsel %vm1183_vm6, %v3897_v25, %v1180_v0  ;;  %vm1152_vm8 = vweird.f32 %v3899_v32 }
 0x401   : > { %3900 = vrcp.f32 %v1085_v19  ;;  %v1189_v18 = vsel %vm1186_vm7, %v1188_v41, %v1184_v21  ;;  %vm1153_vm10 = vmor %vm1151_vm9, %vm1152_vm8  ;;  %v1202_v52 = vand.u32 2147483648, %v1085_v19  ;;  %v1200_v60 = vand.u32 2147483647, %v1085_v19 }
 0x402   : > { %v1148_v13 = vsub.f32 1.0, %v1147_v17  ;;  %v1190_v23 = vmul.f32 %v4507_v12, %v1189_v18  ;;  %vm1196_vm1 = vweird.f32 %v1085_v19 }
 0x403   : > { %v1203_v2 = vor.u32 1.1754944e-38, %v1202_v52  ;;  %vm1201_vm6 = vcmp.eq.f32.partialorder %v1200_v60, 8.507059e+37 }
 0x404   : > { %v1149_v31 = vmul.f32 %v3899_v32, %v1148_v13  ;;  %v1212_v33 = vsel %vm4421_vm3, %v1190_v23, 0.0 }
 0x405   : > { %3625 = vmatmul.msk.f32.vlgmr.msra.gmra.mxu2 %vm1013_vm14, %v1212_v33 }
 0x406   : > { %1822 = vmatpush.msra.mxu2 %v3791_v26  ;;  %v1150_v36 = vadd.f32 %v3899_v32, %v1149_v31 }
 0x407   : > { %v3901_v40 = vpop.eup %3900 }
 0x408   : > { %v1192_v44 = vmul.f32 %v3901_v40, %v1085_v19  ;;  %1823 = vmatpush.msra.mxu2 %v3796_v24  ;;  %v1079_v12 = vpop.xlane.xlu0 %1078  ;;  %v1154_v43 = vsel %vm1153_vm10, %v3899_v32, %v1150_v36  ;;  %vm1197_vm15 = vweird.f32 %v3901_v40 }
 0x409   : > { %3902 = vrcp.f32 %v1079_v12  ;;  %v1159_v48 = vsel %vm1156_vm12, %v1158_v37, %v1154_v43  ;;  %vm1198_vm4 = vmor %vm1196_vm1, %vm1197_vm15  ;;  %v1172_v0 = vand.u32 2147483648, %v1079_v12  ;;  %v1170_v14 = vand.u32 2147483647, %v1079_v12 }
 0x40a   : > { %v1193_v45 = vsub.f32 1.0, %v1192_v44  ;;  %v1160_v49 = vmul.f32 %v4516_v20, %v1159_v48  ;;  %vm1166_vm8 = vweird.f32 %v1079_v12 }
 0x40b   : > { %v1173_v19 = vor.u32 1.1754944e-38, %v1172_v0  ;;  %vm1171_vm10 = vcmp.eq.f32.partialorder %v1170_v14, 8.507059e+37 }
 0x40c   : > { %v1210_v55 = vsel %vm4434_vm5, %v1160_v49, 0.0  ;;  %v1194_v59 = vmul.f32 %v3901_v40, %v1193_v45 }
 0x40d   : > { %3623 = vmatmul.msk.f32.vlgmr.msra.gmra.mxu1 %vm1013_vm14, %v1210_v55 }
 0x40e   : > { %1787 = vmatpush.msra.mxu1 %v3792_v50  ;;  %v1195_v25 = vadd.f32 %v3901_v40, %v1194_v59 }
 0x40f   : > { %v3903_v63 = vpop.eup %3902 }
 0x410   : > { %v1162_v5 = vmul.f32 %v3903_v63, %v1079_v12  ;;  %1788 = vmatpush.msra.mxu1 %v3797_v38  ;;  %v1199_v20 = vsel %vm1198_vm4, %v3901_v40, %v1195_v25  ;;  %vm1167_vm7 = vweird.f32 %v3903_v63 }
 0x411   : > { %v1204_v10 = vsel %vm1201_vm6, %v1203_v2, %v1199_v20  ;;  %vm1168_vm9 = vmor %vm1166_vm8, %vm1167_vm7 }
 0x412   : > { %v1163_v11 = vsub.f32 1.0, %v1162_v5  ;;  %v1205_v15 = vmul.f32 %v4522_v42, %v1204_v10 }
 0x414   : > { %v1213_v32 = vsel %vm4421_vm3, %v1205_v15, 0.0  ;;  %v1164_v41 = vmul.f32 %v3903_v63, %v1163_v11 }
 0x415   : > { %3626 = vmatmul.msk.f32.gmra.mxu2 %vm1013_vm14, %v1213_v32 }
 0x416   : > { %v1165_v17 = vadd.f32 %v3903_v63, %v1164_v41 }
 0x418   : > { %v1169_v21 = vsel %vm1168_vm9, %v3903_v63, %v1165_v17 }
 0x419   : > { %v1174_v18 = vsel %vm1171_vm10, %v1173_v19, %v1169_v21 }
 0x41a   : > { %v1175_v13 = vmul.f32 %v4526_v47, %v1174_v18 }
 0x41b   : > { %v1476_v23 = vpop.permute.xlu0 %1475 }
 0x41c   : > { %3640 = vmatpush.xpose.msk.msrb.mxu3 %vm842_vm11, %v1476_v23  ;;  %v1211_v42 = vsel %vm4434_vm5, %v1175_v13, 0.0 }
 0x41d   : > { %3624 = vmatmul.msk.f32.gmra.mxu1 %vm1013_vm14, %v1211_v42  ;;  %3637 = vmatmul.msk.f32.vlgmr.msrb.gmra.mxu2 %vm842_vm11, %v4562_v56 }
 0x41f   : > { %3641 = vmatmul.msk.f32.vlgmr.msrb.gmra.mxu3 %vm842_vm11, %v4568_v39 }
 0x423   : > { %v1474_v26 = vpop.permute.xlu0 %1473 }
 0x425   : > { %3633 = vmatmul.msk.f32.vlgmr.msrb.gmra.mxu1 %vm842_vm11, %v4566_v57  ;;  %3638 = vmatmul.msk.f32.gmra.mxu2 %vm842_vm11, %v4560_v54 }
 0x427   : > { %3642 = vmatmul.msk.f32.gmra.mxu3 %vm842_vm11, %v1474_v26 }
 0x42b   : > { %v1873_v47 = vpop.permute.xlu0 %1872 }
 0x42c   : > { %3651 = vmatpush.xpose.msk.msra.mxu0 %vm842_vm11, %v1873_v47 }
 0x42d   : > { %3634 = vmatmul.msk.f32.gmra.mxu1 %vm842_vm11, %v4564_v46  ;;  %v4609_v46 = vpop.f32.mrf.mxu2 }
 0x435   : > { %v4611_v36 = vpop.f32.mrf.mxu2 }
 0x442   : > { %v4599_v27 = vpop.f32.mrf.mxu3 }
 0x44a   : > { %v4601_v56 = vpop.f32.mrf.mxu3 }
 0x452   : > { %v1387_v39 = vpop.f32.mrf.mxu3 }
 0x453   : > { %v1510_v30 = vmul.f32 0.35355338, %v1387_v39 }
 0x455   : > { %v1518_v57 = vsel %vm4404_vm13, %v1510_v30, -1e+30 }
 0x456   : > { %v1526_v31 = vsel %vm1013_vm14, %v1518_v57, -inf }
 0x457   : > { %1527 = vmax.xlane.f32.xlu1 %v1526_v31 }
 0x45a   : > { %v1390_v54 = vpop.f32.mrf.mxu3 }
 0x45b   : > { %v1511_v33 = vmul.f32 0.35355338, %v1390_v54 }
 0x45d   : > { %v1519_v34 = vsel %vm4404_vm13, %v1511_v33, -1e+30 }
 0x45e   : > { %v1529_v24 = vsel %vm1013_vm14, %v1519_v34, -inf }
 0x45f   : > { %1530 = vmax.xlane.f32.xlu2 %v1529_v24 }
 0x488   : > { %v4613_v40 = vpop.f32.mrf.mxu2 }
 0x48a   : > { %v4615_v37 = vpop.f32.mrf.mxu1 }
 0x498   : > { %v4617_v44 = vpop.f32.mrf.mxu2 }
 0x49a   : > { %v4619_v12 = vpop.f32.mrf.mxu1 }
 0x4a0   : > { %v1465_v43 = vpop.f32.mrf.mxu2 }
 0x4a1   : > { %v1514_v48 = vmul.f32 0.35355338, %v1465_v43 }
 0x4a2   : > { %v1426_v45 = vpop.f32.mrf.mxu1  ;;  %v1504_v49 = vpop.f32.mrf.mxu3 }
 0x4a3   : > { %v1512_v50 = vmul.f32 0.35355338, %v1426_v45  ;;  %v1522_v52 = vsel %vm4434_vm5, %v1514_v48, -1e+30  ;;  %v1516_v38 = vmul.f32 0.35355338, %v1504_v49 }
 0x4a4   : > { %v1538_v55 = vsel %vm1013_vm14, %v1522_v52, -inf }
 0x4a5   : > { %1539 = vmax.xlane.f32.xlu0 %v1538_v55  ;;  %v4626_v59 = vsel %vm4414_vm2, %v1512_v50, -1e+30  ;;  %v1524_v11 = vsel %vm4421_vm3, %v1516_v38, -1e+30 }
 0x4a6   : > { %v1532_v60 = vsel %vm1013_vm14, %v4626_v59, -inf  ;;  %v1544_v14 = vsel %vm1013_vm14, %v1524_v11, -inf }
 0x4a7   : > { %1533 = vmax.xlane.f32.xlu1 %v1532_v60 }
 0x4a8   : > { %v1468_v25 = vpop.f32.mrf.mxu2 }
 0x4a9   : > { %v1515_v63 = vmul.f32 0.35355338, %v1468_v25 }
 0x4aa   : > { %v1429_v2 = vpop.f32.mrf.mxu1  ;;  %v1507_v5 = vpop.f32.mrf.mxu3 }
 0x4ab   : > { %v1513_v20 = vmul.f32 0.35355338, %v1429_v2  ;;  %v1523_v10 = vsel %vm4434_vm5, %v1515_v63, -1e+30  ;;  %v1517_v0 = vmul.f32 0.35355338, %v1507_v5 }
 0x4ac   : > { %v1541_v15 = vsel %vm1013_vm14, %v1523_v10, -inf }
 0x4ad   : > { %1542 = vmax.xlane.f32.xlu2 %v1541_v15  ;;  %v4637_v32 = vsel %vm4414_vm2, %v1513_v20, -1e+30  ;;  %v1525_v17 = vsel %vm4421_vm3, %v1517_v0, -1e+30 }
 0x4ae   : > { %v1535_v41 = vsel %vm1013_vm14, %v4637_v32, -inf  ;;  %v1547_v19 = vsel %vm1013_vm14, %v1525_v17, -inf }
 0x4af   : > { %1536 = vmax.xlane.f32.xlu0 %v1535_v41  ;;  %1545 = vmax.xlane.f32.xlu1 %v1544_v14 }
 0x4b5   : > { %1548 = vmax.xlane.f32.xlu2 %v1547_v19 }
 0x4ca   : > { %v1528_v21 = vpop.xlane.xlu1 %1527 }
 0x4cb   : > { %v1550_v18 = vsub.f32 %v1518_v57, %v1528_v21 }
 0x4cd   : > { %1868 = vrot.lane.b32.xlu2 %v4323_v28, %s4040_s26  ;;  %v1558_v13 = vmul.f32 1.442695, %v1550_v18 }
 0x4cf   : > { %3904 = vpow2.f32 %v1558_v13 }
 0x4d2   : > { %v1531_v23 = vpop.xlane.xlu2 %1530 }
 0x4d3   : > { %v1551_v42 = vsub.f32 %v1519_v34, %v1531_v23 }
 0x4d5   : > { %3799 = vrot.lane.b32.xlu2 %v4357_v8, %s4038_s19  ;;  %v4649_v26 = vpop.eup %3904  ;;  %v1560_v47 = vmul.f32 1.442695, %v1551_v42 }
 0x4d6   : > { %v1574_v39 = vsel %vm1013_vm14, %v4649_v26, 0.0 }
 0x4d7   : > { %3906 = vpow2.f32 %v1560_v47  ;;  %1575 = vadd.xlane.f32.xlu0 %v1574_v39 }
 0x4dd   : > { %1909 = vrot.lane.b32.xlu2 %v4328_v62, %s4039_s25  ;;  %v4655_v30 = vpop.eup %3906 }
 0x4de   : > { %v1577_v57 = vsel %vm1013_vm14, %v4655_v30, 0.0 }
 0x4df   : > { %1578 = vadd.xlane.f32.xlu1 %v1577_v57 }
 0x4e5   : > { %1905 = vrot.lane.b32.xlu2 %v4328_v62, %s4040_s26 }
 0x4eb   : > { %1866 = vrot.lane.b32.xlu0 %v4326_v61, %s4040_s26 }
 0x4f3   : > { %1950 = vrot.lane.b32.xlu0 %v4340_v4, %s4039_s25 }
 0x4f8   : > { %1870 = vrot.lane.b32.xlu1 %v4326_v61, %s4039_s25 }
 0x4fb   : > { %1911 = vrot.lane.b32.xlu0 %v4332_v53, %s4039_s25 }
 0x503   : > { %1948 = vrot.lane.b32.xlu0 %v4338_v3, %s4039_s25 }
 0x50b   : > { %1944 = vrot.lane.b32.xlu0 %v4338_v3, %s4040_s26 }
 0x513   : > { %1946 = vrot.lane.b32.xlu0 %v4340_v4, %s4040_s26 }
 0x518   : > { %v1540_v31 = vpop.xlane.xlu0 %1539 }
 0x519   : > { %v1554_v54 = vsub.f32 %v1522_v52, %v1540_v31 }
 0x51a   : > { %v1534_v33 = vpop.xlane.xlu1 %1533 }
 0x51b   : > { %v1566_v34 = vmul.f32 1.442695, %v1554_v54  ;;  %v1552_v52 = vsub.f32 %v4626_v59, %v1534_v33 }
 0x51d   : > { %3908 = vpow2.f32 %v1566_v34  ;;  %v1562_v20 = vmul.f32 1.442695, %v1552_v52 }
 0x520   : > { %v1543_v24 = vpop.xlane.xlu2 %1542 }
 0x521   : > { %v1555_v49 = vsub.f32 %v1523_v10, %v1543_v24 }
 0x522   : > { %v1546_v43 = vpop.xlane.xlu1 %1545 }
 0x523   : > { %v4675_v48 = vpop.eup %3908  ;;  %v1556_v45 = vsub.f32 %v1524_v11, %v1546_v43  ;;  %v1568_v60 = vmul.f32 1.442695, %v1555_v49  ;;  %v1537_v11 = vpop.xlane.xlu0 %1536 }
 0x524   : > { %v1586_v50 = vsel %vm1013_vm14, %v4675_v48, 0.0  ;;  %v1553_v41 = vsub.f32 %v4637_v32, %v1537_v11 }
 0x525   : > { %v1570_v55 = vmul.f32 1.442695, %v1556_v45  ;;  %1587 = vadd.xlane.f32.xlu2 %v1586_v50 }
 0x527   : > { %3910 = vpow2.f32 %v1570_v55 }
 0x528   : > { %v1549_v38 = vpop.xlane.xlu2 %1548  ;;  %3912 = vpow2.f32 %v1568_v60 }
 0x529   : > { %v1557_v25 = vsub.f32 %v1525_v17, %v1549_v38  ;;  %v1564_v17 = vmul.f32 1.442695, %v1553_v41 }
 0x52b   : > { %v1572_v63 = vmul.f32 1.442695, %v1557_v25 }
 0x52d   : > { %v4680_v2 = vpop.eup %3910  ;;  %3914 = vpow2.f32 %v1572_v63 }
 0x52e   : > { %v1592_v5 = vsel %vm1013_vm14, %v4680_v2, 0.0  ;;  %v4686_v15 = vpop.eup %3912  ;;  %3916 = vpow2.f32 %v1562_v20 }
 0x52f   : > { %1593 = vadd.xlane.f32.xlu2 %v1592_v5  ;;  %v1589_v14 = vsel %vm1013_vm14, %v4686_v15, 0.0  ;;  %3918 = vpow2.f32 %v1564_v17 }
 0x530   : > { %v4684_v10 = vpop.permute.xlu2 %1868 }
 0x533   : > { %v4688_v0 = vpop.eup %3914 }
 0x534   : > { %v1595_v59 = vsel %vm1013_vm14, %v4688_v0, 0.0  ;;  %v4695_v18 = vpop.eup %3916 }
 0x535   : > { %1596 = vadd.xlane.f32.xlu1 %v1595_v59  ;;  %v1580_v23 = vsel %vm1013_vm14, %v4695_v18, 0.0  ;;  %v4699_v32 = vpop.eup %3918 }
 0x536   : > { %v1583_v42 = vsel %vm1013_vm14, %v4699_v32, 0.0 }
 0x537   : > { %1590 = vadd.xlane.f32.xlu2 %v1589_v14 }
 0x538   : > { %v3800_v19 = vpop.permute.xlu2 %3799 }
 0x539   : > { %v3801_v21 = vunpack.i.l.bf16 %v3800_v19  ;;  %v3802_v13 = vunpack.i.h.bf16 %v3800_v19 }
 0x53b   : > { %1857 = vmatpush.msra.mxu3 %v3801_v21 }
 0x53d   : > { %1858 = vmatpush.msra.mxu3 %v3802_v13  ;;  %1581 = vadd.xlane.f32.xlu0 %v1580_v23 }
 0x540   : > { %v1910_v23 = vpop.permute.xlu2 %1909 }
 0x545   : > { %1584 = vadd.xlane.f32.xlu0 %v1583_v42 }
 0x548   : > { %v4749_v42 = vpop.permute.xlu2 %1905 }
 0x54a   : > { %v1576_v47 = vpop.xlane.xlu0 %1575 }
 0x54b   : > { %3920 = vrcp.f32 %v1576_v47  ;;  %v1609_v33 = vand.u32 2147483648, %v1576_v47  ;;  %v1607_v24 = vand.u32 2147483647, %v1576_v47  ;;  %vm1603_vm15 = vweird.f32 %v1576_v47 }
 0x54d   : > { %v1610_v49 = vor.u32 1.1754944e-38, %v1609_v33  ;;  %vm1608_vm4 = vcmp.eq.f32.partialorder %v1607_v24, 8.507059e+37 }
 0x54e   : > { %1987 = vrot.lane.b32.xlu1 %v4344_v6, %s4039_s25 }
 0x54f   : > { %1989 = vrot.lane.b32.xlu2 %v4335_v1, %s4039_s25 }
 0x551   : > { %v3921_v39 = vpop.eup %3920 }
 0x552   : > { %v1599_v57 = vmul.f32 %v3921_v39, %v1576_v47  ;;  %v1579_v31 = vpop.xlane.xlu1 %1578  ;;  %vm1604_vm12 = vweird.f32 %v3921_v39 }
 0x553   : > { %3922 = vrcp.f32 %v1579_v31  ;;  %vm1605_vm1 = vmor %vm1603_vm15, %vm1604_vm12  ;;  %v1624_v63 = vand.u32 2147483648, %v1579_v31  ;;  %v1622_v11 = vand.u32 2147483647, %v1579_v31  ;;  %vm1618_vm7 = vweird.f32 %v1579_v31 }
 0x554   : > { %v1600_v54 = vsub.f32 1.0, %v1599_v57 }
 0x555   : > { %vm1623_vm9 = vcmp.eq.f32.partialorder %v1622_v11, 8.507059e+37 }
 0x556   : > { %3804 = vrot.lane.b32.xlu1 %v4361_v9, %s4041_s27  ;;  %v1601_v34 = vmul.f32 %v3921_v39, %v1600_v54 }
 0x557   : > { %1983 = vrot.lane.b32.xlu2 %v4344_v6, %s4040_s26 }
 0x558   : > { %v1602_v43 = vadd.f32 %v3921_v39, %v1601_v34 }
 0x559   : > { %v3923_v45 = vpop.eup %3922  ;;  %1907 = vrot.lane.b32.xlu0 %v4332_v53, %s4040_s26 }
 0x55a   : > { %v1614_v50 = vmul.f32 %v3923_v45, %v1579_v31  ;;  %v1606_v55 = vsel %vm1605_vm1, %v3921_v39, %v1602_v43  ;;  %vm1619_vm6 = vweird.f32 %v3923_v45 }
 0x55b   : > { %v1611_v60 = vsel %vm1608_vm4, %v1610_v49, %v1606_v55  ;;  %vm1620_vm8 = vmor %vm1618_vm7, %vm1619_vm6 }
 0x55c   : > { %v1615_v38 = vsub.f32 1.0, %v1614_v50  ;;  %v1612_v25 = vmul.f32 %v4649_v26, %v1611_v60  ;;  %v1625_v26 = vor.u32 1.1754944e-38, %v1624_v63 }
 0x55d   : > { %v1867_v52 = vpop.permute.xlu0 %1866 }
 0x55e   : > { %2382 = vrot.lane.b32.xlu1 %v4326_v61, %s4042_s28  ;;  %v1616_v5 = vmul.f32 %v3923_v45, %v1615_v38  ;;  %v1718_v20 = vsel %vm4404_vm13, %v1612_v25, 0.0 }
 0x55f   : > { %2384 = vrot.lane.b32.xlu2 %v4323_v28, %s4042_s28  ;;  %3643 = vmatmul.msk.f32.vlgmr.msrb.gmra.mxu0 %vm1013_vm14, %v1718_v20 }
 0x560   : > { %v1617_v41 = vadd.f32 %v3923_v45, %v1616_v5 }
 0x561   : > { %1985 = vrot.lane.b32.xlu0 %v4335_v1, %s4040_s26 }
 0x562   : > { %v1621_v59 = vsel %vm1620_vm8, %v3923_v45, %v1617_v41 }
 0x563   : > { %v1626_v14 = vsel %vm1623_vm9, %v1625_v26, %v1621_v59 }
 0x564   : > { %v1627_v17 = vmul.f32 %v4655_v30, %v1626_v14 }
 0x565   : > { %v1951_v19 = vpop.permute.xlu0 %1950 }
 0x566   : > { %2417 = vrot.lane.b32.xlu1 %v4328_v62, %s4043_s29  ;;  %3659 = vmatpush.xpose.msk.msrb.mxu2 %vm842_vm11, %v1951_v19  ;;  %v1719_v21 = vsel %vm4404_vm13, %v1627_v17, 0.0 }
 0x567   : > { %2378 = vrot.lane.b32.xlu2 %v4326_v61, %s4043_s29  ;;  %3644 = vmatmul.msk.f32.gmra.mxu0 %vm1013_vm14, %v1719_v21 }
 0x569   : > { %3809 = vrot.lane.b32.xlu0 %v4348_v7, %s4041_s27 }
 0x56a   : > { %v1871_v13 = vpop.permute.xlu1 %1870 }
 0x56b   : > { %3652 = vmatpush.xpose.msk.msra.mxu0 %vm842_vm11, %v1871_v13 }
 0x56d   : > { %v1912_v30 = vpop.permute.xlu0 %1911 }
 0x56e   : > { %3655 = vmatpush.xpose.msk.msrb.mxu1 %vm842_vm11, %v1912_v30 }
 0x56f   : > { %3653 = vmatmul.msk.f32.vlgmr.msra.gmra.mxu0 %vm842_vm11, %v1867_v52 }
 0x571   : > { %3814 = vrot.lane.b32.xlu0 %v4458_v29, %s4041_s27 }
 0x572   : > { %3656 = vmatpush.xpose.msk.msrb.mxu1 %vm842_vm11, %v1910_v23 }
 0x575   : > { %v1949_v61 = vpop.permute.xlu0 %1948 }
 0x576   : > { %3660 = vmatpush.xpose.msk.msrb.mxu2 %vm842_vm11, %v1949_v61 }
 0x577   : > { %3654 = vmatmul.msk.f32.gmra.mxu0 %vm842_vm11, %v4684_v10 }
 0x579   : > { %2380 = vrot.lane.b32.xlu0 %v4323_v28, %s4043_s29 }
 0x57d   : > { %v4755_v39 = vpop.permute.xlu0 %1944 }
 0x581   : > { %2423 = vrot.lane.b32.xlu0 %v4332_v53, %s4042_s28 }
 0x585   : > { %v4757_v50 = vpop.permute.xlu0 %1946 }
 0x589   : > { %2421 = vrot.lane.b32.xlu0 %v4328_v62, %s4042_s28 }
 0x591   : > { %2462 = vrot.lane.b32.xlu0 %v4340_v4, %s4042_s28 }
 0x598   : > { %v1588_v47 = vpop.xlane.xlu2 %1587 }
 0x599   : > { %3924 = vrcp.f32 %v1588_v47  ;;  %3819 = vrot.lane.b32.xlu0 %v4357_v8, %s4041_s27  ;;  %v1669_v54 = vand.u32 2147483648, %v1588_v47  ;;  %v1667_v62 = vand.u32 2147483647, %v1588_v47  ;;  %vm1663_vm12 = vweird.f32 %v1588_v47 }
 0x59b   : > { %v1670_v24 = vor.u32 1.1754944e-38, %v1669_v54  ;;  %vm1668_vm1 = vcmp.eq.f32.partialorder %v1667_v62, 8.507059e+37 }
 0x59f   : > { %v3925_v10 = vpop.eup %3924 }
 0x5a0   : > { %v1659_v28 = vmul.f32 %v3925_v10, %v1588_v47  ;;  %vm1664_vm10 = vweird.f32 %v3925_v10 }
 0x5a1   : > { %vm1665_vm15 = vmor %vm1663_vm12, %vm1664_vm10 }
 0x5a2   : > { %v1660_v57 = vsub.f32 1.0, %v1659_v28  ;;  %v1594_v31 = vpop.xlane.xlu2 %1593 }
 0x5a3   : > { %3926 = vrcp.f32 %v1594_v31  ;;  %v1699_v20 = vand.u32 2147483648, %v1594_v31  ;;  %v1697_v41 = vand.u32 2147483647, %v1594_v31  ;;  %vm1693_vm6 = vweird.f32 %v1594_v31 }
 0x5a4   : > { %v1661_v33 = vmul.f32 %v3925_v10, %v1660_v57 }
 0x5a5   : > { %v1700_v19 = vor.u32 1.1754944e-38, %v1699_v20  ;;  %vm1698_vm8 = vcmp.eq.f32.partialorder %v1697_v41, 8.507059e+37 }
 0x5a6   : > { %v1662_v34 = vadd.f32 %v3925_v10, %v1661_v33 }
 0x5a8   : > { %v1597_v43 = vpop.xlane.xlu1 %1596  ;;  %v1666_v45 = vsel %vm1665_vm15, %v3925_v10, %v1662_v34 }
 0x5a9   : > { %v3927_v49 = vpop.eup %3926  ;;  %3928 = vrcp.f32 %v1597_v43  ;;  %v1671_v55 = vsel %vm1668_vm1, %v1670_v24, %v1666_v45  ;;  %v1714_v30 = vand.u32 2147483648, %v1597_v43  ;;  %v1712_v61 = vand.u32 2147483647, %v1597_v43 }
 0x5aa   : > { %v1689_v60 = vmul.f32 %v3927_v49, %v1594_v31  ;;  %v1591_v38 = vpop.xlane.xlu2 %1590  ;;  %v1672_v25 = vmul.f32 %v4675_v48, %v1671_v55  ;;  %vm1694_vm4 = vweird.f32 %v3927_v49  ;;  %vm1708_vm10 = vweird.f32 %v1597_v43 }
 0x5ab   : > { %3930 = vrcp.f32 %v1591_v38  ;;  %vm1695_vm7 = vmor %vm1693_vm6, %vm1694_vm4  ;;  %v1684_v57 = vand.u32 2147483648, %v1591_v38  ;;  %v1682_v33 = vand.u32 2147483647, %v1591_v38  ;;  %v1715_v34 = vor.u32 1.1754944e-38, %v1714_v30 }
 0x5ac   : > { %v1690_v63 = vsub.f32 1.0, %v1689_v60  ;;  %v1722_v52 = vsel %vm4434_vm5, %v1672_v25, 0.0  ;;  %vm1678_vm1 = vweird.f32 %v1591_v38  ;;  %vm1713_vm4 = vcmp.eq.f32.partialorder %v1712_v61, 8.507059e+37 }
 0x5ad   : > { %3647 = vmatmul.msk.f32.vlgmr.msra.gmra.mxu2 %vm1013_vm14, %v1722_v52 }
 0x5ae   : > { %v1691_v5 = vmul.f32 %v3927_v49, %v1690_v63 }
 0x5af   : > { %v3929_v11 = vpop.eup %3928 }
 0x5b0   : > { %v1692_v26 = vadd.f32 %v3927_v49, %v1691_v5  ;;  %v1704_v59 = vmul.f32 %v3929_v11, %v1597_v43  ;;  %v1582_v17 = vpop.xlane.xlu0 %1581  ;;  %vm1709_vm9 = vweird.f32 %v3929_v11  ;;  %v1685_v43 = vor.u32 1.1754944e-38, %v1684_v57 }
 0x5b1   : > { %v3931_v14 = vpop.eup %3930  ;;  %3932 = vrcp.f32 %v1582_v17  ;;  %vm1710_vm15 = vmor %vm1708_vm10, %vm1709_vm9  ;;  %v1639_v41 = vand.u32 2147483648, %v1582_v17  ;;  %vm1633_vm9 = vweird.f32 %v1582_v17 }
 0x5b2   : > { %v1705_v48 = vsub.f32 1.0, %v1704_v59  ;;  %v1674_v21 = vmul.f32 %v3931_v14, %v1591_v38  ;;  %v1990_v13 = vpop.permute.xlu2 %1989  ;;  %v1696_v23 = vsel %vm1695_vm7, %v3927_v49, %v1692_v26  ;;  %vm1679_vm12 = vweird.f32 %v3931_v14 }
 0x5b3   : > { %3663 = vmatpush.xpose.msk.msrb.mxu3 %vm842_vm11, %v1990_v13  ;;  %v1701_v28 = vsel %vm1698_vm8, %v1700_v19, %v1696_v23  ;;  %vm1680_vm6 = vmor %vm1678_vm1, %vm1679_vm12  ;;  %vm1683_vm7 = vcmp.eq.f32.partialorder %v1682_v33, 8.507059e+37 }
 0x5b4   : > { %v1706_v47 = vmul.f32 %v3929_v11, %v1705_v48  ;;  %v1675_v10 = vsub.f32 1.0, %v1674_v21  ;;  %v1702_v31 = vmul.f32 %v4680_v2, %v1701_v28  ;;  %v1640_v21 = vor.u32 1.1754944e-38, %v1639_v41 }
 0x5b6   : > { %v1676_v54 = vmul.f32 %v3931_v14, %v1675_v10  ;;  %v1707_v62 = vadd.f32 %v3929_v11, %v1706_v47  ;;  %v1724_v24 = vsel %vm4421_vm3, %v1702_v31, 0.0 }
 0x5b7   : > { %v3933_v45 = vpop.eup %3932  ;;  %3649 = vmatmul.msk.f32.vlgmr.msra.gmra.mxu3 %vm1013_vm14, %v1724_v24 }
 0x5b8   : > { %v1677_v49 = vadd.f32 %v3931_v14, %v1676_v54  ;;  %v1711_v55 = vsel %vm1710_vm15, %v3929_v11, %v1707_v62  ;;  %v1629_v60 = vmul.f32 %v3933_v45, %v1582_v17  ;;  %v1585_v25 = vpop.xlane.xlu0 %1584  ;;  %vm1634_vm8 = vweird.f32 %v3933_v45 }
 0x5b9   : > { %v1716_v2 = vsel %vm1713_vm4, %v1715_v34, %v1711_v55  ;;  %3934 = vrcp.f32 %v1585_v25  ;;  %v1637_v11 = vand.u32 2147483647, %v1582_v17  ;;  %vm1635_vm10 = vmor %vm1633_vm9, %vm1634_vm8  ;;  %v1654_v47 = vand.u32 2147483648, %v1585_v25 }
 0x5ba   : > { %v1681_v63 = vsel %vm1680_vm6, %v3931_v14, %v1677_v49  ;;  %v1630_v52 = vsub.f32 1.0, %v1629_v60  ;;  %v1717_v20 = vmul.f32 %v4688_v0, %v1716_v2  ;;  %v1984_v61 = vpop.permute.xlu2 %1983  ;;  %v1652_v57 = vand.u32 2147483647, %v1585_v25 }
 0x5bb   : > { %v1686_v5 = vsel %vm1683_vm7, %v1685_v43, %v1681_v63  ;;  %vm1638_vm12 = vcmp.eq.f32.partialorder %v1637_v11, 8.507059e+37  ;;  %vm1648_vm1 = vweird.f32 %v1585_v25  ;;  %v1655_v54 = vor.u32 1.1754944e-38, %v1654_v47 }
 0x5bc   : > { %v1687_v38 = vmul.f32 %v4686_v15, %v1686_v5  ;;  %v1631_v26 = vmul.f32 %v3933_v45, %v1630_v52  ;;  %v1725_v14 = vsel %vm4421_vm3, %v1717_v20, 0.0  ;;  %vm1653_vm6 = vcmp.eq.f32.partialorder %v1652_v57, 8.507059e+37 }
 0x5be   : > { %v1723_v59 = vsel %vm4434_vm5, %v1687_v38, 0.0  ;;  %v1632_v19 = vadd.f32 %v3933_v45, %v1631_v26 }
 0x5bf   : > { %3648 = vmatmul.msk.f32.gmra.mxu2 %vm1013_vm14, %v1723_v59  ;;  %v3935_v48 = vpop.eup %3934  ;;  %3650 = vmatmul.msk.f32.gmra.mxu3 %vm1013_vm14, %v1725_v14 }
 0x5c0   : > { %v1988_v0 = vpop.permute.xlu1 %1987  ;;  %v1644_v15 = vmul.f32 %v3935_v48, %v1585_v25  ;;  %v1636_v13 = vsel %vm1635_vm10, %v3933_v45, %v1632_v19  ;;  %vm1649_vm15 = vweird.f32 %v3935_v48 }
 0x5c1   : > { %3664 = vmatpush.xpose.msk.msrb.mxu3 %vm842_vm11, %v1988_v0  ;;  %v1641_v30 = vsel %vm1638_vm12, %v1640_v21, %v1636_v13  ;;  %vm1650_vm4 = vmor %vm1648_vm1, %vm1649_vm15 }
 0x5c2   : > { %v1645_v23 = vsub.f32 1.0, %v1644_v15  ;;  %v1642_v17 = vmul.f32 %v4695_v18, %v1641_v30  ;;  %v2385_v55 = vpop.permute.xlu2 %2384 }
 0x5c4   : > { %v1646_v10 = vmul.f32 %v3935_v48, %v1645_v23  ;;  %v1720_v28 = vsel %vm4414_vm2, %v1642_v17, 0.0 }
 0x5c5   : > { %3645 = vmatmul.msk.f32.vlgmr.msra.gmra.mxu1 %vm1013_vm14, %v1720_v28 }
 0x5c6   : > { %v1647_v31 = vadd.f32 %v3935_v48, %v1646_v10 }
 0x5c7   : > { %3661 = vmatmul.msk.f32.vlgmr.msrb.gmra.mxu2 %vm842_vm11, %v4755_v39  ;;  %3665 = vmatmul.msk.f32.vlgmr.msrb.gmra.mxu3 %vm842_vm11, %v1984_v61 }
 0x5c8   : > { %v3805_v33 = vpop.permute.xlu1 %3804  ;;  %v1651_v62 = vsel %vm1650_vm4, %v3935_v48, %v1647_v31 }
 0x5c9   : > { %v3806_v18 = vunpack.i.l.bf16 %v3805_v33  ;;  %v1656_v34 = vsel %vm1653_vm6, %v1655_v54, %v1651_v62  ;;  %v3807_v24 = vunpack.i.h.bf16 %v3805_v33 }
 0x5ca   : > { %v1657_v45 = vmul.f32 %v4699_v32, %v1656_v34 }
 0x5cb   : > { %2264 = vmatpush.msrb.mxu0 %v3806_v18  ;;  %v1908_v49 = vpop.permute.xlu0 %1907 }
 0x5cc   : > { %v1721_v43 = vsel %vm4414_vm2, %v1657_v45, 0.0 }
 0x5cd   : > { %2265 = vmatpush.msrb.mxu0 %v3807_v24  ;;  %3646 = vmatmul.msk.f32.gmra.mxu1 %vm1013_vm14, %v1721_v43 }
 0x5cf   : > { %3675 = vmatpush.xpose.msk.msra.mxu0 %vm842_vm11, %v2385_v55  ;;  %3662 = vmatmul.msk.f32.gmra.mxu2 %vm842_vm11, %v4757_v50 }
 0x5d0   : > { %v2383_v39 = vpop.permute.xlu1 %2382 }
 0x5d3   : > { %3676 = vmatpush.xpose.msk.msra.mxu0 %vm842_vm11, %v2383_v39  ;;  %v1986_v60 = vpop.permute.xlu0 %1985 }
 0x5d4   : > { %3666 = vmatmul.msk.f32.gmra.mxu3 %vm842_vm11, %v1986_v60 }
 0x5d5   : > { %3657 = vmatmul.msk.f32.vlgmr.msrb.gmra.mxu1 %vm842_vm11, %v4749_v42 }
 0x5db   : > { %v3810_v32 = vpop.permute.xlu0 %3809 }
 0x5dc   : > { %v3811_v25 = vunpack.i.l.bf16 %v3810_v32  ;;  %v4796_v2 = vpop.f32.mrf.mxu0  ;;  %v3812_v63 = vunpack.i.h.bf16 %v3810_v32 }
 0x5dd   : > { %3658 = vmatmul.msk.f32.gmra.mxu1 %vm842_vm11, %v1908_v49 }
 0x5de   : > { %2299 = vmatpush.msra.mxu1 %v3811_v25 }
 0x5e0   : > { %2300 = vmatpush.msra.mxu1 %v3812_v63 }
 0x5e3   : > { %v3815_v52 = vpop.permute.xlu0 %3814 }
 0x5e4   : > { %v3816_v50 = vunpack.i.l.bf16 %v3815_v52  ;;  %v4799_v5 = vpop.f32.mrf.mxu0  ;;  %v3817_v20 = vunpack.i.h.bf16 %v3815_v52 }
 0x5e6   : > { %2334 = vmatpush.msra.mxu2 %v3816_v50 }
 0x5e8   : > { %2335 = vmatpush.msra.mxu2 %v3817_v20  ;;  %v4835_v20 = vpop.permute.xlu2 %2378 }
 0x5eb   : > { %v4801_v41 = vpop.permute.xlu0 %2380 }
 0x5ec   : > { %v1899_v38 = vpop.f32.mrf.mxu0 }
 0x5ed   : > { %v2022_v42 = vmul.f32 0.35355338, %v1899_v38 }
 0x5ef   : > { %v2030_v26 = vsel %vm4404_vm13, %v2022_v42, -1e+30 }
 0x5f0   : > { %v2038_v11 = vsel %vm1013_vm14, %v2030_v26, -inf }
 0x5f1   : > { %2039 = vmax.xlane.f32.xlu2 %v2038_v11 }
 0x5f3   : > { %v2424_v59 = vpop.permute.xlu0 %2423 }
 0x5f4   : > { %v1902_v19 = vpop.f32.mrf.mxu0  ;;  %3679 = vmatpush.xpose.msk.msrb.mxu1 %vm842_vm11, %v2424_v59 }
 0x5f5   : > { %v2023_v14 = vmul.f32 0.35355338, %v1902_v19 }
 0x5f7   : > { %v2031_v48 = vsel %vm4404_vm13, %v2023_v14, -1e+30 }
 0x5f8   : > { %v2041_v21 = vsel %vm1013_vm14, %v2031_v48, -inf }
 0x5f9   : > { %2042 = vmax.xlane.f32.xlu0 %v2041_v21 }
 0x5fb   : > { %v2422_v0 = vpop.permute.xlu0 %2421 }
 0x5fc   : > { %3680 = vmatpush.xpose.msk.msrb.mxu1 %vm842_vm11, %v2422_v0 }
 0x603   : > { %v2463_v15 = vpop.permute.xlu0 %2462 }
 0x604   : > { %3683 = vmatpush.xpose.msk.msrb.mxu2 %vm842_vm11, %v2463_v15 }
 0x60b   : > { %v3820_v13 = vpop.permute.xlu0 %3819 }
 0x60c   : > { %v3821_v30 = vunpack.i.l.bf16 %v3820_v13  ;;  %v3822_v23 = vunpack.i.h.bf16 %v3820_v13 }
 0x60e   : > { %2369 = vmatpush.msra.mxu3 %v3821_v30 }
 0x610   : > { %2370 = vmatpush.msra.mxu3 %v3822_v23 }
 0x630   : > { %v4812_v61 = vpop.f32.mrf.mxu2 }
 0x63a   : > { %v4814_v17 = vpop.f32.mrf.mxu3 }
 0x642   : > { %v4816_v47 = vpop.f32.mrf.mxu2  ;;  %v4818_v10 = vpop.f32.mrf.mxu1 }
 0x643   : > { %v4820_v28 = vpop.f32.mrf.mxu3 }
 0x64a   : > { %v1977_v57 = vpop.f32.mrf.mxu2  ;;  %v4822_v31 = vpop.f32.mrf.mxu1 }
 0x64b   : > { %v2026_v54 = vmul.f32 0.35355338, %v1977_v57  ;;  %v2016_v62 = vpop.f32.mrf.mxu3 }
 0x64c   : > { %v2028_v59 = vmul.f32 0.35355338, %v2016_v62 }
 0x64d   : > { %v2034_v33 = vsel %vm4434_vm5, %v2026_v54, -1e+30 }
 0x64e   : > { %v2050_v18 = vsel %vm1013_vm14, %v2034_v33, -inf  ;;  %v2036_v19 = vsel %vm4421_vm3, %v2028_v59, -1e+30 }
 0x64f   : > { %2051 = vmax.xlane.f32.xlu2 %v2050_v18  ;;  %v2056_v0 = vsel %vm1013_vm14, %v2036_v19, -inf }
 0x652   : > { %v1980_v34 = vpop.f32.mrf.mxu2  ;;  %v1938_v24 = vpop.f32.mrf.mxu1 }
 0x653   : > { %v2027_v45 = vmul.f32 0.35355338, %v1980_v34  ;;  %v2024_v49 = vmul.f32 0.35355338, %v1938_v24  ;;  %v4860_v34 = vpop.permute.xlu1 %2417 }
 0x655   : > { %v2035_v55 = vsel %vm4434_vm5, %v2027_v45, -1e+30  ;;  %v2032_v39 = vsel %vm4414_vm2, %v2024_v49, -1e+30 }
 0x656   : > { %v2053_v43 = vsel %vm1013_vm14, %v2035_v55, -inf  ;;  %v2044_v60 = vsel %vm1013_vm14, %v2032_v39, -inf }
 0x657   : > { %2054 = vmax.xlane.f32.xlu2 %v2053_v43  ;;  %2045 = vmax.xlane.f32.xlu1 %v2044_v60  ;;  %v2019_v32 = vpop.f32.mrf.mxu3 }
 0x658   : > { %v2029_v25 = vmul.f32 0.35355338, %v2019_v32 }
 0x65a   : > { %v1941_v63 = vpop.f32.mrf.mxu1  ;;  %v2037_v52 = vsel %vm4421_vm3, %v2029_v25, -1e+30 }
 0x65b   : > { %v2025_v50 = vmul.f32 0.35355338, %v1941_v63  ;;  %v2059_v42 = vsel %vm1013_vm14, %v2037_v52, -inf }
 0x65d   : > { %v2033_v38 = vsel %vm4414_vm2, %v2025_v50, -1e+30 }
 0x65e   : > { %v2047_v11 = vsel %vm1013_vm14, %v2033_v38, -inf }
 0x65f   : > { %2060 = vmax.xlane.f32.xlu2 %v2059_v42  ;;  %2048 = vmax.xlane.f32.xlu0 %v2047_v11 }
 0x664   : > { %v2040_v14 = vpop.xlane.xlu2 %2039 }
 0x665   : > { %v2062_v21 = vsub.f32 %v2030_v26, %v2040_v14 }
 0x667   : > { %v2070_v15 = vmul.f32 1.442695, %v2062_v21  ;;  %2057 = vmax.xlane.f32.xlu0 %v2056_v0 }
 0x669   : > { %3936 = vpow2.f32 %v2070_v15 }
 0x66c   : > { %v2043_v26 = vpop.xlane.xlu0 %2042 }
 0x66d   : > { %v2063_v23 = vsub.f32 %v2031_v48, %v2043_v26 }
 0x66f   : > { %v4844_v13 = vpop.eup %3936  ;;  %v2072_v57 = vmul.f32 1.442695, %v2063_v23 }
 0x670   : > { %v2086_v30 = vsel %vm1013_vm14, %v4844_v13, 0.0 }
 0x671   : > { %2087 = vadd.xlane.f32.xlu1 %v2086_v30  ;;  %3938 = vpow2.f32 %v2072_v57 }
 0x677   : > { %2460 = vrot.lane.b32.xlu2 %v4338_v3, %s4042_s28  ;;  %v4856_v54 = vpop.eup %3938 }
 0x678   : > { %v2089_v18 = vsel %vm1013_vm14, %v4856_v54, 0.0 }
 0x67b   : > { %2456 = vrot.lane.b32.xlu0 %v4338_v3, %s4043_s29 }
 0x683   : > { %2419 = vrot.lane.b32.xlu0 %v4332_v53, %s4043_s29 }
 0x68a   : > { %2458 = vrot.lane.b32.xlu1 %v4340_v4, %s4043_s29 }
 0x6ad   : > { %2090 = vadd.xlane.f32.xlu0 %v2089_v18 }
 0x6c2   : > { %v2052_v62 = vpop.xlane.xlu2 %2051 }
 0x6c3   : > { %v2066_v3 = vsub.f32 %v2034_v33, %v2052_v62 }
 0x6c5   : > { %v2078_v24 = vmul.f32 1.442695, %v2066_v3 }
 0x6c7   : > { %3940 = vpow2.f32 %v2078_v24 }
 0x6ca   : > { %v2055_v53 = vpop.xlane.xlu2 %2054  ;;  %v2046_v49 = vpop.xlane.xlu1 %2045 }
 0x6cb   : > { %v2067_v45 = vsub.f32 %v2035_v55, %v2055_v53  ;;  %v2064_v4 = vsub.f32 %v2032_v39, %v2046_v49 }
 0x6cd   : > { %v4862_v43 = vpop.eup %3940  ;;  %v2080_v48 = vmul.f32 1.442695, %v2067_v45  ;;  %v2074_v60 = vmul.f32 1.442695, %v2064_v4 }
 0x6ce   : > { %v2098_v32 = vsel %vm1013_vm14, %v4862_v43, 0.0 }
 0x6cf   : > { %3942 = vpow2.f32 %v2080_v48  ;;  %2099 = vadd.xlane.f32.xlu0 %v2098_v32 }
 0x6d0   : > { %3944 = vpow2.f32 %v2074_v60 }
 0x6d2   : > { %v2061_v25 = vpop.xlane.xlu2 %2060  ;;  %v2049_v63 = vpop.xlane.xlu0 %2048 }
 0x6d3   : > { %v2065_v50 = vsub.f32 %v2033_v38, %v2049_v63  ;;  %v2069_v55 = vsub.f32 %v2037_v52, %v2061_v25 }
 0x6d5   : > { %v4866_v33 = vpop.eup %3942  ;;  %v2076_v11 = vmul.f32 1.442695, %v2065_v50  ;;  %v2084_v14 = vmul.f32 1.442695, %v2069_v55 }
 0x6d6   : > { %v4868_v42 = vpop.eup %3944  ;;  %v2101_v39 = vsel %vm1013_vm14, %v4866_v33, 0.0 }
 0x6d7   : > { %v2092_v59 = vsel %vm1013_vm14, %v4868_v42, 0.0  ;;  %2102 = vadd.xlane.f32.xlu0 %v2101_v39  ;;  %3946 = vpow2.f32 %v2076_v11 }
 0x6d8   : > { %2093 = vadd.xlane.f32.xlu2 %v2092_v59  ;;  %3948 = vpow2.f32 %v2084_v14 }
 0x6da   : > { %v2461_v21 = vpop.permute.xlu2 %2460  ;;  %v2058_v0 = vpop.xlane.xlu0 %2057 }
 0x6db   : > { %3684 = vmatpush.xpose.msk.msrb.mxu2 %vm842_vm11, %v2461_v21  ;;  %v2068_v38 = vsub.f32 %v2036_v19, %v2058_v0 }
 0x6dd   : > { %v4875_v15 = vpop.eup %3946  ;;  %v2082_v52 = vmul.f32 1.442695, %v2068_v38 }
 0x6de   : > { %v2095_v30 = vsel %vm1013_vm14, %v4875_v15, 0.0  ;;  %v4879_v26 = vpop.eup %3948 }
 0x6df   : > { %3950 = vpow2.f32 %v2082_v52  ;;  %v2107_v18 = vsel %vm1013_vm14, %v4879_v26, 0.0 }
 0x6e0   : > { %2096 = vadd.xlane.f32.xlu2 %v2095_v30 }
 0x6e4   : > { %v2088_v23 = vpop.xlane.xlu1 %2087 }
 0x6e5   : > { %v4881_v57 = vpop.eup %3950  ;;  %3952 = vrcp.f32 %v2088_v23  ;;  %v2121_v53 = vand.u32 2147483648, %v2088_v23  ;;  %v2119_v49 = vand.u32 2147483647, %v2088_v23  ;;  %vm2115_vm8 = vweird.f32 %v2088_v23 }
 0x6e6   : > { %v2104_v19 = vsel %vm1013_vm14, %v4881_v57, 0.0 }
 0x6e7   : > { %2105 = vadd.xlane.f32.xlu1 %v2104_v19  ;;  %v2122_v48 = vor.u32 1.1754944e-38, %v2121_v53  ;;  %vm2120_vm10 = vcmp.eq.f32.partialorder %v2119_v49, 8.507059e+37 }
 0x6e8   : > { %2108 = vadd.xlane.f32.xlu2 %v2107_v18 }
 0x6eb   : > { %2501 = vrot.lane.b32.xlu0 %v4335_v1, %s4042_s28  ;;  %v3953_v62 = vpop.eup %3952 }
 0x6ec   : > { %v2111_v3 = vmul.f32 %v3953_v62, %v2088_v23  ;;  %vm2116_vm7 = vweird.f32 %v3953_v62 }
 0x6ed   : > { %vm2117_vm9 = vmor %vm2115_vm8, %vm2116_vm7  ;;  %v4899_v50 = vpop.permute.xlu0 %2456 }
 0x6ee   : > { %v2112_v24 = vsub.f32 1.0, %v2111_v3 }
 0x6f0   : > { %v2113_v45 = vmul.f32 %v3953_v62, %v2112_v24 }
 0x6f2   : > { %v2114_v4 = vadd.f32 %v3953_v62, %v2113_v45 }
 0x6f3   : > { %2497 = vrot.lane.b32.xlu0 %v4335_v1, %s4043_s29 }
 0x6f4   : > { %v2118_v60 = vsel %vm2117_vm9, %v3953_v62, %v2114_v4 }
 0x6f5   : > { %v2123_v32 = vsel %vm2120_vm10, %v2122_v48, %v2118_v60  ;;  %v4901_v1 = vpop.permute.xlu0 %2419 }
 0x6f6   : > { %v2124_v25 = vmul.f32 %v4844_v13, %v2123_v32 }
 0x6f8   : > { %v2230_v63 = vsel %vm4404_vm13, %v2124_v25, 0.0 }
 0x6f9   : > { %3667 = vmatmul.msk.f32.vlgmr.msrb.gmra.mxu0 %vm1013_vm14, %v2230_v63 }
 0x6fc   : > { %v4911_v25 = vpop.permute.xlu1 %2458 }
 0x700   : > { %2495 = vrot.lane.b32.xlu2 %v4344_v6, %s4043_s29  ;;  %2499 = vrot.lane.b32.xlu1 %v4344_v6, %s4042_s28 }
 0x720   : > { %v2091_v55 = vpop.xlane.xlu0 %2090 }
 0x721   : > { %3954 = vrcp.f32 %v2091_v55  ;;  %v2136_v59 = vand.u32 2147483648, %v2091_v55  ;;  %v2134_v21 = vand.u32 2147483647, %v2091_v55  ;;  %vm2130_vm15 = vweird.f32 %v2091_v55 }
 0x723   : > { %v2137_v38 = vor.u32 1.1754944e-38, %v2136_v59  ;;  %vm2135_vm4 = vcmp.eq.f32.partialorder %v2134_v21, 8.507059e+37 }
 0x727   : > { %v3955_v11 = vpop.eup %3954 }
 0x728   : > { %v2126_v39 = vmul.f32 %v3955_v11, %v2091_v55  ;;  %vm2131_vm12 = vweird.f32 %v3955_v11 }
 0x729   : > { %vm2132_vm1 = vmor %vm2130_vm15, %vm2131_vm12 }
 0x72a   : > { %v2127_v13 = vsub.f32 1.0, %v2126_v39 }
 0x72c   : > { %v2128_v14 = vmul.f32 %v3955_v11, %v2127_v13 }
 0x72e   : > { %v2129_v0 = vadd.f32 %v3955_v11, %v2128_v14 }
 0x730   : > { %v2133_v52 = vsel %vm2132_vm1, %v3955_v11, %v2129_v0 }
 0x731   : > { %v2138_v6 = vsel %vm2135_vm4, %v2137_v38, %v2133_v52 }
 0x732   : > { %v2139_v30 = vmul.f32 %v4856_v54, %v2138_v6 }
 0x734   : > { %v2231_v23 = vsel %vm4404_vm13, %v2139_v30, 0.0 }
 0x735   : > { %3668 = vmatmul.msk.f32.gmra.mxu0 %vm1013_vm14, %v2231_v23 }
 0x73d   : > { %3677 = vmatmul.msk.f32.vlgmr.msra.gmra.mxu0 %vm842_vm11, %v4835_v20 }
 0x742   : > { %v2100_v18 = vpop.xlane.xlu0 %2099 }
 0x743   : > { %3956 = vrcp.f32 %v2100_v18  ;;  %v2181_v54 = vand.u32 2147483648, %v2100_v18  ;;  %v2179_v49 = vand.u32 2147483647, %v2100_v18  ;;  %vm2175_vm7 = vweird.f32 %v2100_v18 }
 0x745   : > { %3678 = vmatmul.msk.f32.gmra.mxu0 %vm842_vm11, %v4801_v41  ;;  %v2182_v20 = vor.u32 1.1754944e-38, %v2181_v54  ;;  %vm2180_vm9 = vcmp.eq.f32.partialorder %v2179_v49, 8.507059e+37 }
 0x749   : > { %v3957_v19 = vpop.eup %3956 }
 0x74a   : > { %v2171_v62 = vmul.f32 %v3957_v19, %v2100_v18  ;;  %v2103_v3 = vpop.xlane.xlu0 %2102  ;;  %vm2176_vm6 = vweird.f32 %v3957_v19 }
 0x74b   : > { %v2094_v24 = vpop.xlane.xlu2 %2093  ;;  %3958 = vrcp.f32 %v2103_v3  ;;  %vm2177_vm8 = vmor %vm2175_vm7, %vm2176_vm6  ;;  %v2196_v59 = vand.u32 2147483648, %v2103_v3  ;;  %v2194_v0 = vand.u32 2147483647, %v2103_v3  ;;  %vm2190_vm15 = vweird.f32 %v2103_v3 }
 0x74c   : > { %v2172_v53 = vsub.f32 1.0, %v2171_v62  ;;  %3960 = vrcp.f32 %v2094_v24  ;;  %v2151_v6 = vand.u32 2147483648, %v2094_v24  ;;  %vm2145_vm1 = vweird.f32 %v2094_v24 }
 0x74d   : > { %v2149_v18 = vand.u32 2147483647, %v2094_v24  ;;  %vm2195_vm7 = vcmp.eq.f32.partialorder %v2194_v0, 8.507059e+37 }
 0x74e   : > { %v2173_v45 = vmul.f32 %v3957_v19, %v2172_v53 }
 0x750   : > { %v2174_v4 = vadd.f32 %v3957_v19, %v2173_v45 }
 0x751   : > { %v3959_v48 = vpop.eup %3958 }
 0x752   : > { %v3961_v60 = vpop.eup %3960  ;;  %v2186_v32 = vmul.f32 %v3959_v48, %v2103_v3  ;;  %v2178_v41 = vsel %vm2177_vm8, %v3957_v19, %v2174_v4  ;;  %vm2191_vm10 = vweird.f32 %v3959_v48  ;;  %v2197_v19 = vor.u32 1.1754944e-38, %v2196_v59 }
 0x753   : > { %v2141_v63 = vmul.f32 %v3961_v60, %v2094_v24  ;;  %v2097_v55 = vpop.xlane.xlu2 %2096  ;;  %v2183_v11 = vsel %vm2180_vm9, %v2182_v20, %v2178_v41  ;;  %vm2146_vm12 = vweird.f32 %v3961_v60  ;;  %vm2192_vm4 = vmor %vm2190_vm15, %vm2191_vm10  ;;  %v2152_v20 = vor.u32 1.1754944e-38, %v2151_v6 }
 0x754   : > { %v2187_v39 = vsub.f32 1.0, %v2186_v32  ;;  %3962 = vrcp.f32 %v2097_v55  ;;  %v2184_v14 = vmul.f32 %v4862_v43, %v2183_v11  ;;  %vm4917_vm6 = vmor %vm2145_vm1, %vm2146_vm12  ;;  %vm2150_vm8 = vcmp.eq.f32.partialorder %v2149_v18, 8.507059e+37 }
 0x755   : > { %v2142_v13 = vsub.f32 1.0, %v2141_v63  ;;  %v2166_v41 = vand.u32 2147483648, %v2097_v55  ;;  %vm2160_vm10 = vweird.f32 %v2097_v55 }
 0x756   : > { %v2188_v21 = vmul.f32 %v3959_v48, %v2187_v39  ;;  %v2234_v52 = vsel %vm4434_vm5, %v2184_v14, 0.0 }
 0x757   : > { %v2143_v38 = vmul.f32 %v3961_v60, %v2142_v13  ;;  %3671 = vmatmul.msk.f32.vlgmr.msra.gmra.mxu2 %vm1013_vm14, %v2234_v52  ;;  %v2164_v13 = vand.u32 2147483647, %v2097_v55  ;;  %v2167_v0 = vor.u32 1.1754944e-38, %v2166_v41 }
 0x758   : > { %v2189_v30 = vadd.f32 %v3959_v48, %v2188_v21 }
 0x759   : > { %v2144_v23 = vadd.f32 %v3961_v60, %v2143_v38  ;;  %vm2165_vm15 = vcmp.eq.f32.partialorder %v2164_v13, 8.507059e+37 }
 0x75a   : > { %v3963_v62 = vpop.eup %3962  ;;  %v2193_v53 = vsel %vm2192_vm4, %v3959_v48, %v2189_v30  ;;  %v2106_v49 = vpop.xlane.xlu1 %2105 }
 0x75b   : > { %v2156_v54 = vmul.f32 %v3963_v62, %v2097_v55  ;;  %v2109_v45 = vpop.xlane.xlu2 %2108  ;;  %v2148_v3 = vsel %vm4917_vm6, %v3961_v60, %v2144_v23  ;;  %v2198_v4 = vsel %vm2195_vm7, %v2197_v19, %v2193_v53  ;;  %vm2161_vm9 = vweird.f32 %v3963_v62 }
 0x75c   : > { %3964 = vrcp.f32 %v2109_v45  ;;  %v2153_v63 = vsel %vm2150_vm8, %v2152_v20, %v2148_v3  ;;  %v2199_v48 = vmul.f32 %v4866_v33, %v2198_v4  ;;  %vm2162_vm12 = vmor %vm2160_vm10, %vm2161_vm9  ;;  %v2211_v19 = vand.u32 2147483648, %v2106_v49 }
 0x75d   : > { %v2157_v24 = vsub.f32 1.0, %v2156_v54  ;;  %3966 = vrcp.f32 %v2106_v49  ;;  %v2502_v32 = vpop.permute.xlu0 %2501  ;;  %v2154_v39 = vmul.f32 %v4868_v42, %v2153_v63  ;;  %v2209_v54 = vand.u32 2147483647, %v2106_v49 }
 0x75e   : > { %3687 = vmatpush.xpose.msk.msrb.mxu3 %vm842_vm11, %v2502_v32  ;;  %v2235_v60 = vsel %vm4434_vm5, %v2199_v48, 0.0  ;;  %vm2205_vm4 = vweird.f32 %v2106_v49  ;;  %v2226_v4 = vand.u32 2147483648, %v2109_v45  ;;  %vm2220_vm8 = vweird.f32 %v2109_v45 }
 0x75f   : > { %v2158_v11 = vmul.f32 %v3963_v62, %v2157_v24  ;;  %v2232_v59 = vsel %vm4414_vm2, %v2154_v39, 0.0  ;;  %3672 = vmatmul.msk.f32.gmra.mxu2 %vm1013_vm14, %v2235_v60  ;;  %vm2210_vm9 = vcmp.eq.f32.partialorder %v2209_v54, 8.507059e+37  ;;  %v2224_v24 = vand.u32 2147483647, %v2109_v45 }
 0x760   : > { %3669 = vmatmul.msk.f32.vlgmr.msra.gmra.mxu1 %vm1013_vm14, %v2232_v59  ;;  %v2227_v48 = vor.u32 1.1754944e-38, %v2226_v4 }
 0x761   : > { %v2159_v14 = vadd.f32 %v3963_v62, %v2158_v11 }
 0x762   : > { %v3965_v21 = vpop.eup %3964 }
 0x763   : > { %v3967_v33 = vpop.eup %3966  ;;  %v2216_v38 = vmul.f32 %v3965_v21, %v2109_v45  ;;  %v2163_v42 = vsel %vm2162_vm12, %v3963_v62, %v2159_v14  ;;  %vm2221_vm6 = vweird.f32 %v3965_v21  ;;  %vm2225_vm12 = vcmp.eq.f32.partialorder %v2224_v24, 8.507059e+37  ;;  %v2496_v39 = vpop.permute.xlu2 %2495 }
 0x764   : > { %v2201_v52 = vmul.f32 %v3967_v33, %v2106_v49  ;;  %v2168_v6 = vsel %vm2165_vm15, %v2167_v0, %v2163_v42  ;;  %vm2206_vm1 = vweird.f32 %v3967_v33  ;;  %vm2222_vm10 = vmor %vm2220_vm8, %vm2221_vm6 }
 0x765   : > { %v2217_v30 = vsub.f32 1.0, %v2216_v38  ;;  %v2169_v55 = vmul.f32 %v4875_v15, %v2168_v6  ;;  %vm2207_vm7 = vmor %vm2205_vm4, %vm2206_vm1  ;;  %v2212_v15 = vor.u32 1.1754944e-38, %v2211_v19 }
 0x766   : > { %v2202_v23 = vsub.f32 1.0, %v2201_v52 }
 0x767   : > { %v2218_v18 = vmul.f32 %v3965_v21, %v2217_v30  ;;  %v2233_v43 = vsel %vm4414_vm2, %v2169_v55, 0.0  ;;  %3685 = vmatmul.msk.f32.vlgmr.msrb.gmra.mxu2 %vm842_vm11, %v4899_v50 }
 0x768   : > { %v2203_v53 = vmul.f32 %v3967_v33, %v2202_v23  ;;  %3670 = vmatmul.msk.f32.gmra.mxu1 %vm1013_vm14, %v2233_v43 }
 0x769   : > { %v2219_v62 = vadd.f32 %v3965_v21, %v2218_v18 }
 0x76a   : > { %v2204_v3 = vadd.f32 %v3967_v33, %v2203_v53 }
 0x76b   : > { %v2223_v63 = vsel %vm2222_vm10, %v3965_v21, %v2219_v62 }
 0x76c   : > { %v2208_v20 = vsel %vm2207_vm7, %v3967_v33, %v2204_v3  ;;  %v2228_v49 = vsel %vm2225_vm12, %v2227_v48, %v2223_v63 }
 0x76d   : > { %v2213_v32 = vsel %vm2210_vm9, %v2212_v15, %v2208_v20 }
 0x76e   : > { %v2214_v41 = vmul.f32 %v4881_v57, %v2213_v32  ;;  %v2229_v57 = vmul.f32 %v4879_v26, %v2228_v49 }
 0x76f   : > { %3686 = vmatmul.msk.f32.gmra.mxu2 %vm842_vm11, %v4911_v25  ;;  %v2498_v25 = vpop.permute.xlu0 %2497 }
 0x770   : > { %v2236_v50 = vsel %vm4421_vm3, %v2214_v41, 0.0  ;;  %3681 = vmatmul.msk.f32.vlgmr.msrb.gmra.mxu1 %vm842_vm11, %v4860_v34  ;;  %v2237_v11 = vsel %vm4421_vm3, %v2229_v57, 0.0 }
 0x771   : > { %3673 = vmatmul.msk.f32.vlgmr.msra.gmra.mxu3 %vm1013_vm14, %v2236_v50 }
 0x772   : > { %v2500_v45 = vpop.permute.xlu1 %2499 }
 0x773   : > { %3688 = vmatpush.xpose.msk.msrb.mxu3 %vm842_vm11, %v2500_v45 }
 0x776   : > { %v4955_v34 = vpop.f32.mrf.mxu0 }
 0x778   : > { %3682 = vmatmul.msk.f32.gmra.mxu1 %vm842_vm11, %v4901_v1 }
 0x779   : > { %3674 = vmatmul.msk.f32.gmra.mxu3 %vm1013_vm14, %v2237_v11 }
 0x781   : > { %3689 = vmatmul.msk.f32.vlgmr.msrb.gmra.mxu3 %vm842_vm11, %v2496_v39 }
 0x789   : > { %3690 = vmatmul.msk.f32.gmra.mxu3 %vm842_vm11, %v2498_v25 }
 0x7b2   : > { %v4957_v13 = vpop.f32.mrf.mxu0 }
 0x7ba   : > { %v2411_v60 = vpop.f32.mrf.mxu0 }
 0x7bb   : > { %v2534_v26 = vmul.f32 0.35355338, %v2411_v60 }
 0x7bd   : > { %v2542_v59 = vsel %vm4404_vm13, %v2534_v26, -1e+30 }
 0x7be   : > { %v2550_v14 = vsel %vm1013_vm14, %v2542_v59, -inf }
 0x7bf   : > { %2551 = vmax.xlane.f32.xlu1 %v2550_v14 }
 0x7c2   : > { %v2414_v21 = vpop.f32.mrf.mxu0 }
 0x7c3   : > { %v2535_v1 = vmul.f32 0.35355338, %v2414_v21 }
 0x7c5   : > { %v2543_v0 = vsel %vm4404_vm13, %v2535_v1, -1e+30 }
 0x7c6   : > { %v2553_v33 = vsel %vm1013_vm14, %v2543_v0, -inf }
 0x7c7   : > { %2554 = vmax.xlane.f32.xlu2 %v2553_v33 }
 0x7da   : > { %v4965_v38 = vpop.f32.mrf.mxu2 }
 0x7dd   : > { %v4967_v42 = vpop.f32.mrf.mxu1 }
 0x7e2   : > { %v4969_v52 = vpop.f32.mrf.mxu2 }
 0x7e5   : > { %v4971_v6 = vpop.f32.mrf.mxu1 }
 0x7ea   : > { %v2489_v30 = vpop.f32.mrf.mxu2 }
 0x7eb   : > { %v2538_v55 = vmul.f32 0.35355338, %v2489_v30 }
 0x7ed   : > { %v2450_v23 = vpop.f32.mrf.mxu1  ;;  %v2546_v18 = vsel %vm4434_vm5, %v2538_v55, -1e+30 }
 0x7ee   : > { %v2536_v19 = vmul.f32 0.35355338, %v2450_v23  ;;  %v2562_v43 = vsel %vm1013_vm14, %v2546_v18, -inf }
 0x7ef   : > { %2563 = vmax.xlane.f32.xlu2 %v2562_v43 }
 0x7f0   : > { %v2544_v53 = vsel %vm4414_vm2, %v2536_v19, -1e+30 }
 0x7f1   : > { %v2556_v54 = vsel %vm1013_vm14, %v2544_v53, -inf }
 0x7f2   : > { %2557 = vmax.xlane.f32.xlu0 %v2556_v54  ;;  %v2492_v62 = vpop.f32.mrf.mxu2 }
 0x7f3   : > { %v2539_v4 = vmul.f32 0.35355338, %v2492_v62 }
 0x7f4   : > { %v4979_v3 = vpop.f32.mrf.mxu3 }
 0x7f5   : > { %v2453_v15 = vpop.f32.mrf.mxu1  ;;  %v2547_v20 = vsel %vm4434_vm5, %v2539_v4, -1e+30 }
 0x7f6   : > { %v2537_v24 = vmul.f32 0.35355338, %v2453_v15  ;;  %v2565_v41 = vsel %vm1013_vm14, %v2547_v20, -inf }
 0x7f8   : > { %v2545_v32 = vsel %vm4414_vm2, %v2537_v24, -1e+30 }
 0x7f9   : > { %v2559_v63 = vsel %vm1013_vm14, %v2545_v32, -inf }
 0x7fa   : > { %2566 = vmax.xlane.f32.xlu0 %v2565_v41  ;;  %2560 = vmax.xlane.f32.xlu1 %v2559_v63 }
 0x7fc   : > { %v4987_v48 = vpop.f32.mrf.mxu3 }
 0x804   : > { %v2528_v50 = vpop.f32.mrf.mxu3 }
 0x805   : > { %v2540_v49 = vmul.f32 0.35355338, %v2528_v50 }
 0x807   : > { %v2548_v45 = vsel %vm4421_vm3, %v2540_v49, -1e+30 }
 0x808   : > { %v2568_v57 = vsel %vm1013_vm14, %v2548_v45, -inf }
 0x809   : > { %2569 = vmax.xlane.f32.xlu1 %v2568_v57 }
 0x80c   : > { %v2531_v11 = vpop.f32.mrf.mxu3 }
 0x80d   : > { %v2541_v39 = vmul.f32 0.35355338, %v2531_v11 }
 0x80f   : > { %v2549_v25 = vsel %vm4421_vm3, %v2541_v39, -1e+30 }
 0x810   : > { %v2571_v60 = vsel %vm1013_vm14, %v2549_v25, -inf }
 0x811   : > { %2572 = vmax.xlane.f32.xlu2 %v2571_v60 }
 0x832   : > { %v2552_v26 = vpop.xlane.xlu1 %2551 }
 0x833   : > { %v2574_v14 = vsub.f32 %v2542_v59, %v2552_v26 }
 0x835   : > { %v2582_v21 = vmul.f32 1.442695, %v2574_v14 }
 0x837   : > { %3968 = vpow2.f32 %v2582_v21 }
 0x83a   : > { %v2555_v1 = vpop.xlane.xlu2 %2554 }
 0x83b   : > { %v2575_v33 = vsub.f32 %v2543_v0, %v2555_v1 }
 0x83d   : > { %v4995_v30 = vpop.eup %3968  ;;  %v2584_v55 = vmul.f32 1.442695, %v2575_v33 }
 0x83e   : > { %v2598_v23 = vsel %vm1013_vm14, %v4995_v30, 0.0 }
 0x83f   : > { %3970 = vpow2.f32 %v2584_v55  ;;  %2599 = vadd.xlane.f32.xlu0 %v2598_v23 }
 0x845   : > { %v4999_v19 = vpop.eup %3970 }
 0x846   : > { %v2601_v43 = vsel %vm1013_vm14, %v4999_v19, 0.0 }
 0x847   : > { %2602 = vadd.xlane.f32.xlu1 %v2601_v43 }
 0x853   : > { %3824 = vrot.lane.b32.xlu0 %v4361_v9, %s4044_s30 }
 0x85b   : > { %3834 = vrot.lane.b32.xlu0 %v4458_v29, %s4044_s30 }
 0x862   : > { %v2564_v59 = vpop.xlane.xlu2 %2563 }
 0x863   : > { %3839 = vrot.lane.b32.xlu0 %v4357_v8, %s4044_s30  ;;  %v2578_v62 = vsub.f32 %v2546_v18, %v2564_v59 }
 0x865   : > { %v2558_v0 = vpop.xlane.xlu0 %2557  ;;  %v2590_v15 = vmul.f32 1.442695, %v2578_v62 }
 0x866   : > { %v2576_v54 = vsub.f32 %v2544_v53, %v2558_v0 }
 0x868   : > { %v2586_v4 = vmul.f32 1.442695, %v2576_v54 }
 0x86a   : > { %3972 = vpow2.f32 %v2586_v4 }
 0x86b   : > { %2930 = vrot.lane.b32.xlu0 %v4955_v34, %s4045_s16  ;;  %3974 = vpow2.f32 %v2590_v15 }
 0x86d   : > { %v2561_v24 = vpop.xlane.xlu1 %2560  ;;  %v2567_v41 = vpop.xlane.xlu0 %2566 }
 0x86e   : > { %v2577_v9 = vsub.f32 %v2545_v32, %v2561_v24  ;;  %v2579_v50 = vsub.f32 %v2547_v20, %v2567_v41 }
 0x870   : > { %v5011_v63 = vpop.eup %3972  ;;  %v2588_v29 = vmul.f32 1.442695, %v2577_v9  ;;  %v2592_v18 = vmul.f32 1.442695, %v2579_v50 }
 0x871   : > { %v2604_v8 = vsel %vm1013_vm14, %v5011_v63, 0.0  ;;  %v5017_v34 = vpop.eup %3974 }
 0x872   : > { %2605 = vadd.xlane.f32.xlu2 %v2604_v8  ;;  %3976 = vpow2.f32 %v2588_v29  ;;  %v2610_v32 = vsel %vm1013_vm14, %v5017_v34, 0.0 }
 0x873   : > { %2900 = vrot.lane.b32.xlu0 %v4799_v5, %s4046_s17  ;;  %3978 = vpow2.f32 %v2592_v18 }
 0x878   : > { %v5019_v53 = vpop.eup %3976 }
 0x879   : > { %v2607_v20 = vsel %vm1013_vm14, %v5019_v53, 0.0  ;;  %v5025_v39 = vpop.eup %3978 }
 0x87a   : > { %2611 = vadd.xlane.f32.xlu2 %v2610_v32  ;;  %2608 = vadd.xlane.f32.xlu1 %v2607_v20  ;;  %v2613_v5 = vsel %vm1013_vm14, %v5025_v39, 0.0 }
 0x87c   : > { %v2570_v49 = vpop.xlane.xlu1 %2569 }
 0x87d   : > { %v2580_v57 = vsub.f32 %v2548_v45, %v2570_v49 }
 0x87f   : > { %v2594_v11 = vmul.f32 1.442695, %v2580_v57 }
 0x881   : > { %3980 = vpow2.f32 %v2594_v11 }
 0x882   : > { %2614 = vadd.xlane.f32.xlu1 %v2613_v5 }
 0x884   : > { %v2573_v60 = vpop.xlane.xlu2 %2572 }
 0x885   : > { %v2581_v26 = vsub.f32 %v2549_v25, %v2573_v60 }
 0x887   : > { %v2596_v14 = vmul.f32 1.442695, %v2581_v26  ;;  %v5029_v21 = vpop.eup %3980 }
 0x888   : > { %v2616_v1 = vsel %vm1013_vm14, %v5029_v21, 0.0 }
 0x889   : > { %3982 = vpow2.f32 %v2596_v14 }
 0x88a   : > { %2617 = vadd.xlane.f32.xlu1 %v2616_v1 }
 0x88f   : > { %v5033_v33 = vpop.eup %3982 }
 0x890   : > { %v2619_v45 = vsel %vm1013_vm14, %v5033_v33, 0.0 }
 0x892   : > { %3829 = vrot.lane.b32.xlu2 %v4348_v7, %s4044_s30  ;;  %2620 = vadd.xlane.f32.xlu1 %v2619_v45 }
 0x8ab   : > { %2898 = vrot.lane.b32.xlu1 %v4796_v2, %s4046_s17 }
 0x8b2   : > { %v2600_v25 = vpop.xlane.xlu0 %2599 }
 0x8b3   : > { %3984 = vrcp.f32 %v2600_v25  ;;  %2934 = vrot.lane.b32.xlu1 %v4967_v42, %s4045_s16  ;;  %v2633_v0 = vand.u32 2147483648, %v2600_v25  ;;  %v2631_v54 = vand.u32 2147483647, %v2600_v25  ;;  %vm2627_vm1 = vweird.f32 %v2600_v25 }
 0x8b5   : > { %v2634_v4 = vor.u32 1.1754944e-38, %v2633_v0  ;;  %vm2632_vm6 = vcmp.eq.f32.partialorder %v2631_v54, 8.507059e+37 }
 0x8b9   : > { %v3985_v55 = vpop.eup %3984 }
 0x8ba   : > { %v2623_v23 = vmul.f32 %v3985_v55, %v2600_v25  ;;  %v2603_v43 = vpop.xlane.xlu1 %2602  ;;  %vm2628_vm15 = vweird.f32 %v3985_v55 }
 0x8bb   : > { %3986 = vrcp.f32 %v2603_v43  ;;  %2936 = vrot.lane.b32.xlu1 %v4971_v6, %s4045_s16  ;;  %vm2629_vm4 = vmor %vm2627_vm1, %vm2628_vm15  ;;  %v2648_v9 = vand.u32 2147483648, %v2603_v43  ;;  %v2646_v50 = vand.u32 2147483647, %v2603_v43  ;;  %vm2642_vm8 = vweird.f32 %v2603_v43 }
 0x8bc   : > { %v2624_v59 = vsub.f32 1.0, %v2623_v23 }
 0x8bd   : > { %v2649_v49 = vor.u32 1.1754944e-38, %v2648_v9  ;;  %vm2647_vm10 = vcmp.eq.f32.partialorder %v2646_v50, 8.507059e+37 }
 0x8be   : > { %v2625_v7 = vmul.f32 %v3985_v55, %v2624_v59 }
 0x8c0   : > { %v2626_v62 = vadd.f32 %v3985_v55, %v2625_v7 }
 0x8c1   : > { %v3987_v2 = vpop.eup %3986 }
 0x8c2   : > { %v2638_v15 = vmul.f32 %v3987_v2, %v2603_v43  ;;  %v2630_v42 = vsel %vm2629_vm4, %v3985_v55, %v2626_v62  ;;  %vm2643_vm7 = vweird.f32 %v3987_v2 }
 0x8c3   : > { %v2635_v24 = vsel %vm2632_vm6, %v2634_v4, %v2630_v42  ;;  %2938 = vrot.lane.b32.xlu1 %v4965_v38, %s4045_s16  ;;  %vm2644_vm9 = vmor %vm2642_vm8, %vm2643_vm7 }
 0x8c4   : > { %v2639_v41 = vsub.f32 1.0, %v2638_v15  ;;  %v2636_v18 = vmul.f32 %v4995_v30, %v2635_v24 }
 0x8c5   : > { %v3825_v29 = vpop.permute.xlu0 %3824 }
 0x8c6   : > { %v2640_v6 = vmul.f32 %v3987_v2, %v2639_v41  ;;  %v3826_v8 = vunpack.i.l.bf16 %v3825_v29  ;;  %v3827_v32 = vunpack.i.h.bf16 %v3825_v29  ;;  %v2742_v57 = vsel %vm4404_vm13, %v2636_v18, 0.0 }
 0x8c8   : > { %2776 = vmatpush.msrb.mxu0 %v3826_v8  ;;  %v2641_v20 = vadd.f32 %v3987_v2, %v2640_v6 }
 0x8ca   : > { %2777 = vmatpush.msrb.mxu0 %v3827_v32  ;;  %v2645_v11 = vsel %vm2644_vm9, %v3987_v2, %v2641_v20 }
 0x8cb   : > { %3691 = vmatmul.msk.f32.vlgmr.msrb.gmra.mxu0 %vm1013_vm14, %v2742_v57  ;;  %v2650_v38 = vsel %vm2647_vm10, %v2649_v49, %v2645_v11  ;;  %2940 = vrot.lane.b32.xlu1 %v4969_v52, %s4045_s16 }
 0x8cc   : > { %v2651_v60 = vmul.f32 %v4999_v19, %v2650_v38 }
 0x8cd   : > { %v3835_v30 = vpop.permute.xlu0 %3834 }
 0x8ce   : > { %v3836_v5 = vunpack.i.l.bf16 %v3835_v30  ;;  %v3837_v26 = vunpack.i.h.bf16 %v3835_v30  ;;  %v2743_v14 = vsel %vm4404_vm13, %v2651_v60, 0.0 }
 0x8d0   : > { %2846 = vmatpush.msra.mxu2 %v3836_v5 }
 0x8d2   : > { %2847 = vmatpush.msra.mxu2 %v3837_v26 }
 0x8d3   : > { %3692 = vmatmul.msk.f32.gmra.mxu0 %vm1013_vm14, %v2743_v14  ;;  %2942 = vrot.lane.b32.xlu1 %v4979_v3, %s4045_s16 }
 0x8d5   : > { %v3840_v1 = vpop.permute.xlu0 %3839 }
 0x8d6   : > { %v3841_v45 = vunpack.i.l.bf16 %v3840_v1  ;;  %v3842_v25 = vunpack.i.h.bf16 %v3840_v1 }
 0x8d8   : > { %2881 = vmatpush.msra.mxu3 %v3841_v45 }
 0x8da   : > { %2882 = vmatpush.msra.mxu3 %v3842_v25 }
 0x8db   : > { %2944 = vrot.lane.b32.xlu1 %v4987_v48, %s4045_s16 }
 0x8e5   : > { %v2606_v52 = vpop.xlane.xlu2 %2605 }
 0x8e6   : > { %3988 = vrcp.f32 %v2606_v52  ;;  %v2663_v59 = vand.u32 2147483648, %v2606_v52  ;;  %v2661_v3 = vand.u32 2147483647, %v2606_v52  ;;  %vm2657_vm12 = vweird.f32 %v2606_v52 }
 0x8e8   : > { %v2664_v62 = vor.u32 1.1754944e-38, %v2663_v59  ;;  %vm2662_vm1 = vcmp.eq.f32.partialorder %v2661_v3, 8.507059e+37 }
 0x8ec   : > { %v3989_v19 = vpop.eup %3988 }
 0x8ed   : > { %v2653_v55 = vmul.f32 %v3989_v19, %v2606_v52  ;;  %v2612_v23 = vpop.xlane.xlu2 %2611  ;;  %v2609_v35 = vpop.xlane.xlu1 %2608  ;;  %vm2658_vm13 = vweird.f32 %v3989_v19 }
 0x8ee   : > { %3990 = vrcp.f32 %v2612_v23  ;;  %vm2659_vm15 = vmor %vm2657_vm12, %vm2658_vm13  ;;  %v2693_v50 = vand.u32 2147483648, %v2612_v23  ;;  %v2691_v20 = vand.u32 2147483647, %v2612_v23  ;;  %v2678_v57 = vand.u32 2147483648, %v2609_v35 }
 0x8ef   : > { %v2654_v43 = vsub.f32 1.0, %v2653_v55  ;;  %3992 = vrcp.f32 %v2609_v35  ;;  %vm2687_vm7 = vweird.f32 %v2612_v23  ;;  %v2676_v30 = vand.u32 2147483647, %v2609_v35 }
 0x8f0   : > { %v2694_v5 = vor.u32 1.1754944e-38, %v2693_v50  ;;  %vm2672_vm9 = vweird.f32 %v2609_v35  ;;  %vm2692_vm10 = vcmp.eq.f32.partialorder %v2691_v20, 8.507059e+37  ;;  %v2679_v14 = vor.u32 1.1754944e-38, %v2678_v57 }
 0x8f1   : > { %v2655_v0 = vmul.f32 %v3989_v19, %v2654_v43  ;;  %vm2677_vm12 = vcmp.eq.f32.partialorder %v2676_v30, 8.507059e+37 }
 0x8f3   : > { %v2656_v7 = vadd.f32 %v3989_v19, %v2655_v0 }
 0x8f4   : > { %v3991_v54 = vpop.eup %3990 }
 0x8f5   : > { %v3993_v2 = vpop.eup %3992  ;;  %v2683_v48 = vmul.f32 %v3991_v54, %v2612_v23  ;;  %v3830_v4 = vpop.permute.xlu2 %3829  ;;  %v2660_v15 = vsel %vm2659_vm15, %v3989_v19, %v2656_v7  ;;  %vm2688_vm4 = vweird.f32 %v3991_v54 }
 0x8f6   : > { %v2668_v42 = vmul.f32 %v3993_v2, %v2609_v35  ;;  %v3831_v24 = vunpack.i.l.bf16 %v3830_v4  ;;  %v2615_v41 = vpop.xlane.xlu1 %2614  ;;  %v2665_v9 = vsel %vm2662_vm1, %v2664_v62, %v2660_v15  ;;  %v3832_v8 = vunpack.i.h.bf16 %v3830_v4  ;;  %vm2689_vm8 = vmor %vm2687_vm7, %vm2688_vm4 }
 0x8f7   : > { %v2684_v29 = vsub.f32 1.0, %v2683_v48  ;;  %3994 = vrcp.f32 %v2615_v41  ;;  %v2666_v18 = vmul.f32 %v5011_v63, %v2665_v9  ;;  %vm2673_vm6 = vweird.f32 %v3993_v2 }
 0x8f8   : > { %v2669_v6 = vsub.f32 1.0, %v2668_v42  ;;  %2811 = vmatpush.msra.mxu1 %v3831_v24  ;;  %vm2674_vm13 = vmor %vm2672_vm9, %vm2673_vm6  ;;  %v2708_v43 = vand.u32 2147483648, %v2615_v41  ;;  %v2706_v3 = vand.u32 2147483647, %v2615_v41  ;;  %vm2702_vm1 = vweird.f32 %v2615_v41 }
 0x8f9   : > { %v2685_v32 = vmul.f32 %v3991_v54, %v2684_v29  ;;  %v2744_v11 = vsel %vm4414_vm2, %v2666_v18, 0.0 }
 0x8fa   : > { %v2670_v49 = vmul.f32 %v3993_v2, %v2669_v6  ;;  %2812 = vmatpush.msra.mxu1 %v3832_v8  ;;  %v2709_v62 = vor.u32 1.1754944e-38, %v2708_v43  ;;  %vm2707_vm6 = vcmp.eq.f32.partialorder %v2706_v3, 8.507059e+37 }
 0x8fb   : > { %v2686_v38 = vadd.f32 %v3991_v54, %v2685_v32  ;;  %3693 = vmatmul.msk.f32.vlgmr.msra.gmra.mxu1 %vm1013_vm14, %v2744_v11 }
 0x8fc   : > { %v2671_v60 = vadd.f32 %v3993_v2, %v2670_v49 }
 0x8fd   : > { %v3995_v63 = vpop.eup %3994  ;;  %v2690_v26 = vsel %vm2689_vm8, %v3991_v54, %v2686_v38 }
 0x8fe   : > { %v2698_v1 = vmul.f32 %v3995_v63, %v2615_v41  ;;  %v2618_v45 = vpop.xlane.xlu1 %2617  ;;  %v2695_v25 = vsel %vm2692_vm10, %v2694_v5, %v2690_v26  ;;  %v2675_v52 = vsel %vm2674_vm13, %v3993_v2, %v2671_v60  ;;  %vm2703_vm15 = vweird.f32 %v3995_v63 }
 0x8ff   : > { %3996 = vrcp.f32 %v2618_v45  ;;  %v2696_v55 = vmul.f32 %v5017_v34, %v2695_v25  ;;  %v2680_v23 = vsel %vm2677_vm12, %v2679_v14, %v2675_v52  ;;  %vm2704_vm4 = vmor %vm2702_vm1, %vm2703_vm15  ;;  %v2723_v24 = vand.u32 2147483648, %v2618_v45  ;;  %v2931_v52 = vpop.permute.xlu0 %2930 }
 0x900   : > { %v2699_v19 = vsub.f32 1.0, %v2698_v1  ;;  %v2681_v59 = vmul.f32 %v5019_v53, %v2680_v23  ;;  %v2721_v51 = vand.u32 2147483647, %v2618_v45 }
 0x901   : > { %v2746_v0 = vsel %vm4434_vm5, %v2696_v55, 0.0  ;;  %v2724_v6 = vor.u32 1.1754944e-38, %v2723_v24 }
 0x902   : > { %v2700_v35 = vmul.f32 %v3995_v63, %v2699_v19  ;;  %3695 = vmatmul.msk.f32.vlgmr.msra.gmra.mxu2 %vm1013_vm14, %v2746_v0  ;;  %v2745_v7 = vsel %vm4414_vm2, %v2681_v59, 0.0  ;;  %vm2717_vm2 = vweird.f32 %v2618_v45  ;;  %vm2722_vm9 = vcmp.eq.f32.partialorder %v2721_v51, 8.507059e+37 }
 0x903   : > { %3694 = vmatmul.msk.f32.gmra.mxu1 %vm1013_vm14, %v2745_v7 }
 0x904   : > { %v2701_v54 = vadd.f32 %v3995_v63, %v2700_v35 }
 0x905   : > { %v3997_v34 = vpop.eup %3996 }
 0x906   : > { %v2713_v2 = vmul.f32 %v3997_v34, %v2618_v45  ;;  %v2621_v53 = vpop.xlane.xlu1 %2620  ;;  %v2705_v48 = vsel %vm2704_vm4, %v3995_v63, %v2701_v54  ;;  %vm2718_vm7 = vweird.f32 %v3997_v34 }
 0x907   : > { %3998 = vrcp.f32 %v2621_v53  ;;  %v2710_v4 = vsel %vm2707_vm6, %v2709_v62, %v2705_v48  ;;  %vm2719_vm8 = vmor %vm2717_vm2, %vm2718_vm7  ;;  %v2738_v49 = vand.u32 2147483648, %v2621_v53  ;;  %v2736_v11 = vand.u32 2147483647, %v2621_v53 }
 0x908   : > { %v2714_v15 = vsub.f32 1.0, %v2713_v2  ;;  %v2711_v42 = vmul.f32 %v5025_v39, %v2710_v4  ;;  %vm2732_vm10 = vweird.f32 %v2621_v53 }
 0x909   : > { %v2739_v30 = vor.u32 1.1754944e-38, %v2738_v49  ;;  %vm2737_vm12 = vcmp.eq.f32.partialorder %v2736_v11, 8.507059e+37 }
 0x90a   : > { %v2715_v9 = vmul.f32 %v3997_v34, %v2714_v15  ;;  %v2747_v41 = vsel %vm4434_vm5, %v2711_v42, 0.0 }
 0x90b   : > { %3696 = vmatmul.msk.f32.gmra.mxu2 %vm1013_vm14, %v2747_v41 }
 0x90c   : > { %v2716_v29 = vadd.f32 %v3997_v34, %v2715_v9 }
 0x90d   : > { %v3999_v50 = vpop.eup %3998 }
 0x90e   : > { %v2728_v8 = vmul.f32 %v3999_v50, %v2621_v53  ;;  %v2720_v18 = vsel %vm2719_vm8, %v3997_v34, %v2716_v29  ;;  %vm2733_vm5 = vweird.f32 %v3999_v50 }
 0x90f   : > { %v2725_v32 = vsel %vm2722_vm9, %v2724_v6, %v2720_v18  ;;  %vm2734_vm13 = vmor %vm2732_vm10, %vm2733_vm5 }
 0x910   : > { %v2729_v20 = vsub.f32 1.0, %v2728_v8  ;;  %v2726_v39 = vmul.f32 %v5029_v21, %v2725_v32 }
 0x912   : > { %v2730_v57 = vmul.f32 %v3999_v50, %v2729_v20  ;;  %v2748_v16 = vsel %vm4421_vm3, %v2726_v39, 0.0 }
 0x913   : > { %3697 = vmatmul.msk.f32.vlgmr.msra.gmra.mxu3 %vm1013_vm14, %v2748_v16 }
 0x914   : > { %v2731_v38 = vadd.f32 %v3999_v50, %v2730_v57 }
 0x916   : > { %v2735_v5 = vsel %vm2734_vm13, %v3999_v50, %v2731_v38 }
 0x917   : > { %v2740_v60 = vsel %vm2737_vm12, %v2739_v30, %v2735_v5 }
 0x918   : > { %v2741_v63 = vmul.f32 %v5033_v33, %v2740_v60 }
 0x91a   : > { %v2749_v21 = vsel %vm4421_vm3, %v2741_v63, 0.0  ;;  %vm3002_vm3 = vcmask 195584  }
 0x91b   : > { %3698 = vmatmul.msk.f32.gmra.mxu3 %vm1013_vm14, %v2749_v21 }
 0x91d   : > { %v2899_v1 = vpop.permute.xlu1 %2898 }
 0x91e   : > { %v2986_v25 = vsel %vm842_vm11, %v4609_v46, %v2899_v1  ;;  %v2901_v46 = vpop.permute.xlu0 %2900  ;;  %v4016_v1 = vld [vmem:[%s4144_s24] sm:$0xff] }
 0x91f   : > { %v2994_v23 = vsel %vm1013_vm14, %v2986_v25, %v2931_v52  ;;  %v2987_v7 = vsel %vm842_vm11, %v4611_v36, %v2901_v46 }
 0x925   : > { %v2935_v4 = vpop.permute.xlu1 %2934 }
 0x92d   : > { %v2937_v36 = vpop.permute.xlu1 %2936 }
 0x948   : > { %v2779_v26 = vpop.f32.mrf.mxu0 }
 0x949   : > { %2962 = vrot.lane.b32.xlu2 %v2779_v26, %s4047_s20 }
 0x950   : > { %v2782_v14 = vpop.f32.mrf.mxu0 }
 0x951   : > { %2932 = vrot.lane.b32.xlu2 %v4957_v13, %s4045_s16  ;;  %2964 = vrot.lane.b32.xlu0 %v2782_v14, %s4047_s20  ;;  %v3014_v13 = vld [vmem:[%s5418_s7 + $0x18] sm:$0xff] }
 0x952   : > { %3055 = vmatpush.msra.mxu0 %v3014_v13 }
 0x959   : > { %2902 = vrot.lane.b32.xlu2 %v4818_v10, %s4046_s17  ;;  %v3013_v10 = vld [vmem:[%s5418_s7 + $0x10] sm:$0xff] }
 0x95a   : > { %3056 = vmatpush.msra.mxu0 %v3013_v10 }
 0x961   : > { %2904 = vrot.lane.b32.xlu2 %v4822_v31, %s4046_s17 }
 0x969   : > { %2906 = vrot.lane.b32.xlu2 %v4812_v61, %s4046_s17 }
 0x971   : > { %2908 = vrot.lane.b32.xlu2 %v4816_v47, %s4046_s17  ;;  %v3011_v47 = vld [vmem:[%s5418_s7] sm:$0xff] }
 0x978   : > { %v2814_v58 = vpop.f32.mrf.mxu1 }
 0x979   : > { %2910 = vrot.lane.b32.xlu2 %v4814_v17, %s4046_s17  ;;  %2966 = vrot.lane.b32.xlu0 %v2814_v58, %s4047_s20  ;;  %v3012_v17 = vld [vmem:[%s5418_s7 + $0x8] sm:$0xff] }
 0x97a   : > { %3057 = vmatpush.msra.mxu0 %v3012_v17 }
 0x97c   : > { %3058 = vmatpush.msra.mxu0 %v3011_v47 }
 0x980   : > { %v2817_v61 = vpop.f32.mrf.mxu1 }
 0x981   : > { %2912 = vrot.lane.b32.xlu2 %v4820_v28, %s4046_s17  ;;  %2968 = vrot.lane.b32.xlu0 %v2817_v61, %s4047_s20  ;;  %s5122_s17 = scalar_lea.vmem %s5413_s2, %s4138_s21 }
 0x982   : > { %v3084_v45 = vld [vmem:[%s5122_s17] sm:$0xff]  ;;  %v3087_v59 = vld [vmem:[%s5122_s17 + $0x18] sm:$0xff]  ;;  %v3085_v35 = vld [vmem:[%s5122_s17 + $0x8] sm:$0xff] }
 0x983   : > { %3099 = vperm.xlu1 %3844, %v3085_v35   ;;  %v3089_v0 = vld [vmem:[%s5122_s17 + $0x28] sm:$0xff]  ;;  %v3086_v2 = vld [vmem:[%s5122_s17 + $0x10] sm:$0xff]  ;;  %v3088_v53 = vld [vmem:[%s5122_s17 + $0x20] sm:$0xff] }
 0x984   : > { %v3090_v24 = vld [vmem:[%s5122_s17 + $0x30] sm:$0xff]  ;;  %v3091_v50 = vld [vmem:[%s5122_s17 + $0x38] sm:$0xff] }
 0x985   : > { %v2849_v31 = vpop.f32.mrf.mxu2 }
 0x989   : > { %2970 = vrot.lane.b32.xlu0 %v2849_v31, %s4047_s20  ;;  %3094 = vperm.xlu2 %3843, %v3084_v45  }
 0x98b   : > { %3114 = vperm.xlu1 %3844, %v3088_v53  }
 0x98e   : > { %v2852_v33 = vpop.f32.mrf.mxu2 }
 0x991   : > { %2972 = vrot.lane.b32.xlu0 %v2852_v33, %s4047_s20  ;;  %3109 = vperm.xlu2 %3843, %v3087_v59  }
 0x996   : > { %v2884_v28 = vpop.f32.mrf.mxu3 }
 0x999   : > { %2974 = vrot.lane.b32.xlu0 %v2884_v28, %s4047_s20  ;;  %3119 = vperm.xlu2 %3843, %v3089_v0  }
 0x99e   : > { %v2887_v19 = vpop.f32.mrf.mxu3 }
 0x9a1   : > { %2976 = vrot.lane.b32.xlu0 %v2887_v19, %s4047_s20  ;;  %s537_s20 = scalar_lea.vmem %s5426_s15, %s4138_s21 }
 0x9a3   : > { %v2963_v55 = vpop.permute.xlu2 %2962 }
 0x9a4   : > { %v3003_v43 = vsel %vm3002_vm3, %v2994_v23, %v2963_v55  ;;  %v4017_v23 = vld [vmem:[%s4144_s24 + $0x8] sm:$0xff] }
 0x9a5   : > { %3699 = vmatmul.msk.f32.vlgmr.msra.gmra.mxu0 %vm549_vm0, %v3003_v43 }
 0x9a9   : > { %3104 = vperm.xlu0 %3845, %v3086_v2  }
 0x9ab   : > { %v2933_v3 = vpop.permute.xlu2 %2932 }
 0x9ac   : > { %v2995_v54 = vsel %vm1013_vm14, %v2987_v7, %v2933_v3  ;;  %v4018_v7 = vld [vmem:[%s4144_s24 + $0x10] sm:$0xff] }
 0x9b1   : > { %3124 = vperm.xlu0 %3845, %v3090_v24  }
 0x9b3   : > { %v2903_v48 = vpop.permute.xlu2 %2902 }
 0x9b4   : > { %v2988_v42 = vsel %vm842_vm11, %v4599_v27, %v2903_v48  ;;  %v2939_v27 = vpop.permute.xlu1 %2938 }
 0x9b5   : > { %v2996_v51 = vsel %vm1013_vm14, %v2988_v42, %v2935_v4  ;;  %v4019_v4 = vld [vmem:[%s4144_s24 + $0x18] sm:$0xff] }
 0x9b9   : > { %3129 = vperm.xlu0 %3845, %v3091_v50  }
 0x9bb   : > { %v2905_v15 = vpop.permute.xlu2 %2904 }
 0x9bc   : > { %v2989_v6 = vsel %vm842_vm11, %v4601_v56, %v2905_v15  ;;  %v2941_v56 = vpop.permute.xlu1 %2940 }
 0x9bd   : > { %v2997_v18 = vsel %vm1013_vm14, %v2989_v6, %v2937_v36 }
 0x9c3   : > { %v2965_v34 = vpop.permute.xlu0 %2964  ;;  %v2907_v29 = vpop.permute.xlu2 %2906 }
 0x9c4   : > { %v3004_v62 = vsel %vm3002_vm3, %v2995_v54, %v2965_v34  ;;  %v2990_v20 = vsel %vm842_vm11, %v4615_v37, %v2907_v29  ;;  %v2943_v37 = vpop.permute.xlu1 %2942 }
 0x9c5   : > { %3700 = vmatmul.msk.f32.gmra.mxu0 %vm549_vm0, %v3004_v62  ;;  %v2998_v57 = vsel %vm1013_vm14, %v2990_v20, %v2939_v27 }
 0x9cb   : > { %v2909_v39 = vpop.permute.xlu2 %2908 }
 0x9cc   : > { %v2991_v11 = vsel %vm842_vm11, %v4619_v12, %v2909_v39  ;;  %v2945_v13 = vpop.permute.xlu1 %2944 }
 0x9cd   : > { %v2999_v5 = vsel %vm1013_vm14, %v2991_v11, %v2941_v56  ;;  %v4022_v11 = vld [vmem:[%s4144_s24 + $0x30] sm:$0xff] }
 0x9d3   : > { %v2911_v38 = vpop.permute.xlu2 %2910 }
 0x9d4   : > { %v2992_v63 = vsel %vm842_vm11, %v4613_v40, %v2911_v38  ;;  %v3849_v40 = vld [vmem:[%s5419_s8] ss:$0 sm:$0xff] }
 0x9d5   : > { %v3000_v26 = vsel %vm1013_vm14, %v2992_v63, %v2943_v37 }
 0x9db   : > { %v2913_v58 = vpop.permute.xlu2 %2912 }
 0x9dc   : > { %v2993_v12 = vsel %vm842_vm11, %v4617_v44, %v2913_v58 }
 0x9dd   : > { %v3001_v61 = vsel %vm1013_vm14, %v2993_v12, %v2945_v13  ;;  %v4023_v13 = vld [vmem:[%s4144_s24 + $0x38] sm:$0xff] }
 0x9e3   : > { %v3095_v33 = vpop.permute.xlu2 %3094 }
 0x9eb   : > { %v2967_v9 = vpop.permute.xlu0 %2966  ;;  %v3110_v53 = vpop.permute.xlu2 %3109 }
 0x9ec   : > { %v3005_v41 = vsel %vm3002_vm3, %v2996_v51, %v2967_v9 }
 0x9ed   : > { %3701 = vmatmul.msk.f32.gmra.mxu0 %vm549_vm0, %v3005_v41  ;;  %v4020_v41 = vld [vmem:[%s4144_s24 + $0x20] sm:$0xff] }
 0x9f3   : > { %v2969_v8 = vpop.permute.xlu0 %2968 }
 0x9f4   : > { %v3006_v32 = vsel %vm3002_vm3, %v2997_v18, %v2969_v8  ;;  %v3120_v18 = vpop.permute.xlu2 %3119 }
 0x9f5   : > { %3702 = vmatmul.msk.f32.gmra.mxu0 %vm549_vm0, %v3006_v32  ;;  %v3100_v52 = vpop.permute.xlu1 %3099  ;;  %v4021_v32 = vld [vmem:[%s4144_s24 + $0x28] sm:$0xff] }
 0x9fb   : > { %v2971_v49 = vpop.permute.xlu0 %2970 }
 0x9fc   : > { %v3007_v16 = vsel %vm3002_vm3, %v2998_v57, %v2971_v49 }
 0x9fd   : > { %3703 = vmatmul.msk.f32.gmra.mxu0 %vm549_vm0, %v3007_v16  ;;  %v3115_v9 = vpop.permute.xlu1 %3114 }
 0xa03   : > { %v2973_v30 = vpop.permute.xlu0 %2972 }
 0xa04   : > { %v3008_v60 = vsel %vm3002_vm3, %v2999_v5, %v2973_v30 }
 0xa05   : > { %3704 = vmatmul.msk.f32.gmra.mxu0 %vm549_vm0, %v3008_v60 }
 0xa0b   : > { %v2975_v21 = vpop.permute.xlu0 %2974 }
 0xa0c   : > { %v3009_v14 = vsel %vm3002_vm3, %v3000_v26, %v2975_v21 }
 0xa0d   : > { %3705 = vmatmul.msk.f32.gmra.mxu0 %vm549_vm0, %v3009_v14 }
 0xa13   : > { %v2977_v10 = vpop.permute.xlu0 %2976 }
 0xa14   : > { %v3010_v17 = vsel %vm3002_vm3, %v3001_v61, %v2977_v10 }
 0xa15   : > { %3706 = vmatmul.msk.f32.gmra.mxu0 %vm549_vm0, %v3010_v17 }
 0xa1b   : > { %v3105_v0 = vpop.permute.xlu0 %3104 }
 0xa22   : > { %v3060_v47 = vpop.f32.mrf.mxu0 }
 0xa23   : > { %v3061_v31 = vadd.f32 %v3849_v40, %v3060_v47  ;;  %v3125_v16 = vpop.permute.xlu0 %3124 }
 0xa25   : > { %v3132_v28 = vmul.f32 %v3095_v33, %v3061_v31 }
 0xa27   : > { %v5177_v44 = vadd.f32 %v4016_v1, %v3132_v28 }
 0xa29   : > { %v3150_v45 = vsel %vm549_vm0, %v5177_v44, 0.0 }
 0xa2a   : > { %3151 = vadd.xlane.f32.xlu1 %v3150_v45 }
 0xa2b   : > { %v3130_v14 = vpop.permute.xlu0 %3129 }
 0xa42   : > { %v3063_v25 = vpop.f32.mrf.mxu0 }
 0xa43   : > { %v3064_v19 = vadd.f32 %v3849_v40, %v3063_v25 }
 0xa45   : > { %v3133_v55 = vmul.f32 %v3100_v52, %v3064_v19 }
 0xa47   : > { %v5182_v43 = vadd.f32 %v4017_v23, %v3133_v55 }
 0xa49   : > { %v3153_v59 = vsel %vm549_vm0, %v5182_v43, 0.0 }
 0xa4a   : > { %3154 = vadd.xlane.f32.xlu2 %v3153_v59 }
 0xa6a   : > { %v3066_v35 = vpop.f32.mrf.mxu0 }
 0xa6b   : > { %v3067_v46 = vadd.f32 %v3849_v40, %v3066_v35 }
 0xa6d   : > { %v3134_v3 = vmul.f32 %v3105_v0, %v3067_v46 }
 0xa6f   : > { %v5187_v54 = vadd.f32 %v4018_v7, %v3134_v3 }
 0xa71   : > { %v3156_v34 = vsel %vm549_vm0, %v5187_v54, 0.0 }
 0xa72   : > { %3157 = vadd.xlane.f32.xlu0 %v3156_v34  ;;  %v3069_v62 = vpop.f32.mrf.mxu0 }
 0xa73   : > { %v3070_v2 = vadd.f32 %v3849_v40, %v3069_v62 }
 0xa75   : > { %v3135_v48 = vmul.f32 %v3110_v53, %v3070_v2 }
 0xa77   : > { %v5192_v15 = vadd.f32 %v4019_v4, %v3135_v48 }
 0xa79   : > { %v3159_v42 = vsel %vm549_vm0, %v5192_v15, 0.0 }
 0xa7a   : > { %3160 = vadd.xlane.f32.xlu1 %v3159_v42  ;;  %v3072_v24 = vpop.f32.mrf.mxu0 }
 0xa7b   : > { %v3073_v36 = vadd.f32 %v3849_v40, %v3072_v24 }
 0xa7d   : > { %v3136_v51 = vmul.f32 %v3115_v9, %v3073_v36 }
 0xa7f   : > { %v5197_v29 = vadd.f32 %v4020_v41, %v3136_v51  ;;  %v3351_v41 = vld [vmem:[%s5422_s11 + $0x18] sm:$0xff] }
 0xa80   : > { %3392 = vmatpush.msrb.mxu1 %v3351_v41 }
 0xa81   : > { %v3162_v50 = vsel %vm549_vm0, %v5197_v29, 0.0 }
 0xa82   : > { %v3075_v6 = vpop.f32.mrf.mxu0  ;;  %3163 = vadd.xlane.f32.xlu2 %v3162_v50  ;;  %v3350_v50 = vld [vmem:[%s5422_s11 + $0x10] sm:$0xff] }
 0xa83   : > { %v3076_v8 = vadd.f32 %v3849_v40, %v3075_v6  ;;  %v3349_v6 = vld [vmem:[%s5422_s11 + $0x8] sm:$0xff]  ;;  %3393 = vmatpush.msrb.mxu1 %v3350_v50 }
 0xa85   : > { %v3137_v27 = vmul.f32 %v3120_v18, %v3076_v8  ;;  %v3348_v8 = vld [vmem:[%s5422_s11] sm:$0xff]  ;;  %3394 = vmatpush.msrb.mxu1 %v3349_v6 }
 0xa87   : > { %v5202_v20 = vadd.f32 %v4021_v32, %v3137_v27  ;;  %3395 = vmatpush.msrb.mxu1 %v3348_v8 }
 0xa89   : > { %v3165_v39 = vsel %vm549_vm0, %v5202_v20, 0.0 }
 0xa8a   : > { %3166 = vadd.xlane.f32.xlu1 %v3165_v39  ;;  %v3078_v49 = vpop.f32.mrf.mxu0 }
 0xa8b   : > { %v3079_v57 = vadd.f32 %v3849_v40, %v3078_v49 }
 0xa8d   : > { %v3138_v56 = vmul.f32 %v3125_v16, %v3079_v57 }
 0xa8f   : > { %v5207_v38 = vadd.f32 %v4022_v11, %v3138_v56 }
 0xa91   : > { %v3168_v30 = vsel %vm549_vm0, %v5207_v38, 0.0 }
 0xa92   : > { %3169 = vadd.xlane.f32.xlu1 %v3168_v30  ;;  %v3081_v5 = vpop.f32.mrf.mxu0 }
 0xa93   : > { %v3082_v63 = vadd.f32 %v3849_v40, %v3081_v5 }
 0xa95   : > { %v3139_v58 = vmul.f32 %v3130_v14, %v3082_v63 }
 0xa97   : > { %v5219_v10 = vadd.f32 %v4023_v13, %v3139_v58 }
 0xa99   : > { %v3171_v61 = vsel %vm549_vm0, %v5219_v10, 0.0 }
 0xa9d   : > { %v3152_v60 = vpop.xlane.xlu1 %3151 }
 0xa9e   : > { %v3174_v37 = vmul.f32 %v3152_v60, %v4162_v22 }
 0xaa0   : > { %v5213_v21 = vsub.f32 %v5177_v44, %v3174_v37 }
 0xaa2   : > { %v3190_v26 = vmul.f32 %v5213_v21, %v5213_v21 }
 0xaa4   : > { %v3198_v12 = vsel %vm549_vm0, %v3190_v26, 0.0  ;;  %v5288_v26 = vld [vmem:[%s5420_s9] ss:$0 sm:$0xff] }
 0xaa5   : > { %3199 = vadd.xlane.f32.xlu2 %v3198_v12  ;;  %v5294_v12 = vld [vmem:[%s5421_s10] ss:$0 sm:$0xff] }
 0xaad   : > { %3172 = vadd.xlane.f32.xlu2 %v3171_v61 }
 0xabd   : > { %v3155_v17 = vpop.xlane.xlu2 %3154 }
 0xabe   : > { %v3175_v40 = vmul.f32 %v3155_v17, %v4162_v22 }
 0xac0   : > { %v5225_v47 = vsub.f32 %v5182_v43, %v3175_v40 }
 0xac2   : > { %v3191_v31 = vmul.f32 %v5225_v47, %v5225_v47 }
 0xac4   : > { %v3201_v33 = vsel %vm549_vm0, %v3191_v31, 0.0 }
 0xac5   : > { %3202 = vadd.xlane.f32.xlu0 %v3201_v33 }
 0xae5   : > { %v3158_v28 = vpop.xlane.xlu0 %3157 }
 0xae6   : > { %v3176_v1 = vmul.f32 %v3158_v28, %v4162_v22 }
 0xae8   : > { %v5232_v45 = vsub.f32 %v5187_v54, %v3176_v1 }
 0xaea   : > { %v3192_v25 = vmul.f32 %v5232_v45, %v5232_v45 }
 0xaec   : > { %v3204_v52 = vsel %vm549_vm0, %v3192_v25, 0.0 }
 0xaed   : > { %3205 = vadd.xlane.f32.xlu1 %v3204_v52  ;;  %v3161_v19 = vpop.xlane.xlu1 %3160 }
 0xaee   : > { %v3177_v55 = vmul.f32 %v3161_v19, %v4162_v22 }
 0xaf0   : > { %v5239_v23 = vsub.f32 %v5192_v15, %v3177_v55 }
 0xaf2   : > { %v3193_v59 = vmul.f32 %v5239_v23, %v5239_v23 }
 0xaf4   : > { %v3207_v35 = vsel %vm549_vm0, %v3193_v59, 0.0 }
 0xaf5   : > { %v3164_v0 = vpop.xlane.xlu2 %3163  ;;  %3208 = vadd.xlane.f32.xlu0 %v3207_v35 }
 0xaf6   : > { %v3178_v46 = vmul.f32 %v3164_v0, %v4162_v22 }
 0xaf8   : > { %v5246_v3 = vsub.f32 %v5197_v29, %v3178_v46 }
 0xafa   : > { %v3194_v7 = vmul.f32 %v5246_v3, %v5246_v3 }
 0xafc   : > { %v3210_v34 = vsel %vm549_vm0, %v3194_v7, 0.0 }
 0xafd   : > { %3211 = vadd.xlane.f32.xlu2 %v3210_v34  ;;  %v3167_v62 = vpop.xlane.xlu1 %3166 }
 0xafe   : > { %v3179_v2 = vmul.f32 %v3167_v62, %v4162_v22 }
 0xb00   : > { %v5253_v53 = vsub.f32 %v5202_v20, %v3179_v2 }
 0xb02   : > { %v3195_v48 = vmul.f32 %v5253_v53, %v5253_v53 }
 0xb04   : > { %v3213_v4 = vsel %vm549_vm0, %v3195_v48, 0.0 }
 0xb05   : > { %3214 = vadd.xlane.f32.xlu1 %v3213_v4  ;;  %v3170_v42 = vpop.xlane.xlu1 %3169 }
 0xb06   : > { %v3180_v24 = vmul.f32 %v3170_v42, %v4162_v22 }
 0xb08   : > { %v5260_v36 = vsub.f32 %v5207_v38, %v3180_v24 }
 0xb0a   : > { %v3196_v9 = vmul.f32 %v5260_v36, %v5260_v36 }
 0xb0c   : > { %v3216_v51 = vsel %vm549_vm0, %v3196_v9, 0.0 }
 0xb0d   : > { %3217 = vadd.xlane.f32.xlu0 %v3216_v51 }
 0xb18   : > { %v3200_v18 = vpop.xlane.xlu2 %3199 }
 0xb19   : > { %v3222_v27 = vmul.f32 %v3200_v18, %v4162_v22 }
 0xb1b   : > { %v3230_v32 = vadd.f32 1e-12, %v3222_v27 }
 0xb1d   : > { %4000 = vrsqrt.f32 %v3230_v32  ;;  %vm3244_vm14 = vweird.f32 %v3230_v32 }
 0xb20   : > { %v3173_v39 = vpop.xlane.xlu2 %3172 }
 0xb21   : > { %v3181_v49 = vmul.f32 %v3173_v39, %v4162_v22  ;;  %v3444_v39 = vld [vmem:[%s5424_s13 + $0x78] sm:$0xff] }
 0xb22   : > { %3449 = vmatpush.msrb.mxu2 %v3444_v39  ;;  %3723 = vmatpush.msrb.mxu3 %v3444_v39 }
 0xb23   : > { %v4001_v57 = vpop.eup %4000  ;;  %v5280_v16 = vsub.f32 %v5219_v10, %v3181_v49  ;;  %v3443_v49 = vld [vmem:[%s5424_s13 + $0x70] sm:$0xff] }
 0xb24   : > { %v3239_v56 = vmul.f32 %v4001_v57, %v3230_v32  ;;  %vm3245_vm11 = vweird.f32 %v4001_v57  ;;  %3450 = vmatpush.msrb.mxu2 %v3443_v49  ;;  %3724 = vmatpush.msrb.mxu3 %v3443_v49 }
 0xb25   : > { %v3197_v11 = vmul.f32 %v5280_v16, %v5280_v16  ;;  %vm3246_vm15 = vmor %vm3244_vm14, %vm3245_vm11 }
 0xb26   : > { %v3240_v30 = vmul.f32 %v4001_v57, %v3239_v56 }
 0xb27   : > { %v3219_v5 = vsel %vm549_vm0, %v3197_v11, 0.0 }
 0xb28   : > { %v3241_v60 = vmul.f32 0.5, %v3240_v30  ;;  %3220 = vadd.xlane.f32.xlu2 %v3219_v5 }
 0xb2a   : > { %v3242_v37 = vsub.f32 1.5, %v3241_v60 }
 0xb2c   : > { %v3243_v63 = vmul.f32 %v4001_v57, %v3242_v37 }
 0xb2e   : > { %v3247_v14 = vsel %vm3246_vm15, %v4001_v57, %v3243_v63 }
 0xb2f   : > { %v3318_v58 = vmul.f32 %v3247_v14, %v5213_v21 }
 0xb31   : > { %v3329_v13 = vmul.f32 %v5288_v26, %v3318_v58 }
 0xb33   : > { %v3340_v61 = vadd.f32 %v5294_v12, %v3329_v13 }
 0xb35   : > { %3707 = vmatmul.msk.f32.vlgmr.msrb.gmra.mxu1 %vm549_vm0, %v3340_v61  ;;  %v3442_v61 = vld [vmem:[%s5424_s13 + $0x68] sm:$0xff] }
 0xb36   : > { %3451 = vmatpush.msrb.mxu2 %v3442_v61  ;;  %3725 = vmatpush.msrb.mxu3 %v3442_v61 }
 0xb38   : > { %v3203_v17 = vpop.xlane.xlu0 %3202 }
 0xb39   : > { %v3223_v40 = vmul.f32 %v3203_v17, %v4162_v22 }
 0xb3b   : > { %v3231_v31 = vadd.f32 1e-12, %v3223_v40 }
 0xb3d   : > { %4002 = vrsqrt.f32 %v3231_v31  ;;  %vm3254_vm4 = vweird.f32 %v3231_v31 }
 0xb43   : > { %v4003_v33 = vpop.eup %4002 }
 0xb44   : > { %v3249_v28 = vmul.f32 %v4003_v33, %v3231_v31  ;;  %vm3255_vm1 = vweird.f32 %v4003_v33 }
 0xb45   : > { %vm3256_vm6 = vmor %vm3254_vm4, %vm3255_vm1 }
 0xb46   : > { %v3250_v1 = vmul.f32 %v4003_v33, %v3249_v28 }
 0xb48   : > { %v3251_v21 = vmul.f32 0.5, %v3250_v1 }
 0xb4a   : > { %v3252_v25 = vsub.f32 1.5, %v3251_v21 }
 0xb4c   : > { %v3253_v52 = vmul.f32 %v4003_v33, %v3252_v25 }
 0xb4e   : > { %v3257_v19 = vsel %vm3256_vm6, %v4003_v33, %v3253_v52  ;;  %v3441_v33 = vld [vmem:[%s5424_s13 + $0x60] sm:$0xff] }
 0xb4f   : > { %v3319_v55 = vmul.f32 %v3257_v19, %v5225_v47  ;;  %3452 = vmatpush.msrb.mxu2 %v3441_v33  ;;  %3726 = vmatpush.msrb.mxu3 %v3441_v33  ;;  %v3852_v33 = vld [vmem:[%s5423_s12] ss:$0 sm:$0xff] }
 0xb51   : > { %v3330_v59 = vmul.f32 %v5288_v26, %v3319_v55 }
 0xb53   : > { %v3341_v35 = vadd.f32 %v5294_v12, %v3330_v59 }
 0xb55   : > { %3708 = vmatmul.msk.f32.gmra.mxu1 %vm549_vm0, %v3341_v35  ;;  %v3439_v35 = vld [vmem:[%s5424_s13 + $0x50] sm:$0xff] }
 0xb60   : > { %v3206_v0 = vpop.xlane.xlu1 %3205 }
 0xb61   : > { %v3224_v46 = vmul.f32 %v3206_v0, %v4162_v22 }
 0xb63   : > { %v3232_v7 = vadd.f32 1e-12, %v3224_v46 }
 0xb65   : > { %4004 = vrsqrt.f32 %v3232_v7  ;;  %vm3264_vm2 = vweird.f32 %v3232_v7 }
 0xb68   : > { %v3209_v34 = vpop.xlane.xlu0 %3208 }
 0xb69   : > { %v3225_v62 = vmul.f32 %v3209_v34, %v4162_v22 }
 0xb6b   : > { %v4005_v2 = vpop.eup %4004  ;;  %v3233_v4 = vadd.f32 1e-12, %v3225_v62 }
 0xb6c   : > { %v3259_v48 = vmul.f32 %v4005_v2, %v3232_v7  ;;  %vm3265_vm7 = vweird.f32 %v4005_v2  ;;  %v3438_v7 = vld [vmem:[%s5424_s13 + $0x48] sm:$0xff] }
 0xb6d   : > { %4006 = vrsqrt.f32 %v3233_v4  ;;  %vm3266_vm8 = vmor %vm3264_vm2, %vm3265_vm7  ;;  %vm3274_vm5 = vweird.f32 %v3233_v4 }
 0xb6e   : > { %v3260_v42 = vmul.f32 %v4005_v2, %v3259_v48 }
 0xb70   : > { %v3261_v47 = vmul.f32 0.5, %v3260_v42  ;;  %v3212_v24 = vpop.xlane.xlu2 %3211  ;;  %v3436_v42 = vld [vmem:[%s5424_s13 + $0x38] sm:$0xff] }
 0xb71   : > { %v3226_v51 = vmul.f32 %v3212_v24, %v4162_v22 }
 0xb72   : > { %v3262_v9 = vsub.f32 1.5, %v3261_v47 }
 0xb73   : > { %v4007_v41 = vpop.eup %4006  ;;  %v3234_v6 = vadd.f32 1e-12, %v3226_v51  ;;  %v3435_v51 = vld [vmem:[%s5424_s13 + $0x30] sm:$0xff] }
 0xb74   : > { %v3263_v50 = vmul.f32 %v4005_v2, %v3262_v9  ;;  %v3269_v8 = vmul.f32 %v4007_v41, %v3233_v4  ;;  %vm3275_vm9 = vweird.f32 %v4007_v41 }
 0xb75   : > { %4008 = vrsqrt.f32 %v3234_v6  ;;  %vm3276_vm10 = vmor %vm3274_vm5, %vm3275_vm9  ;;  %vm3284_vm12 = vweird.f32 %v3234_v6 }
 0xb76   : > { %v3267_v18 = vsel %vm3266_vm8, %v4005_v2, %v3263_v50  ;;  %v3270_v27 = vmul.f32 %v4007_v41, %v3269_v8  ;;  %v3437_v2 = vld [vmem:[%s5424_s13 + $0x40] sm:$0xff] }
 0xb77   : > { %v3320_v32 = vmul.f32 %v3267_v18, %v5232_v45 }
 0xb78   : > { %v3271_v57 = vmul.f32 0.5, %v3270_v27  ;;  %v3215_v56 = vpop.xlane.xlu1 %3214  ;;  %v3433_v27 = vld [vmem:[%s5424_s13 + $0x20] sm:$0xff] }
 0xb79   : > { %v3331_v11 = vmul.f32 %v5288_v26, %v3320_v32  ;;  %v3227_v30 = vmul.f32 %v3215_v56, %v4162_v22  ;;  %v3432_v32 = vld [vmem:[%s5424_s13 + $0x18] sm:$0xff] }
 0xb7a   : > { %v3272_v5 = vsub.f32 1.5, %v3271_v57 }
 0xb7b   : > { %v3342_v45 = vadd.f32 %v5294_v12, %v3331_v11  ;;  %v4009_v60 = vpop.eup %4008  ;;  %v3235_v37 = vadd.f32 1e-12, %v3227_v30  ;;  %v3430_v11 = vld [vmem:[%s5424_s13 + $0x8] sm:$0xff] }
 0xb7c   : > { %v3273_v63 = vmul.f32 %v4007_v41, %v3272_v5  ;;  %v3279_v14 = vmul.f32 %v4009_v60, %v3234_v6  ;;  %vm3285_vm13 = vweird.f32 %v4009_v60  ;;  %v3434_v6 = vld [vmem:[%s5424_s13 + $0x28] sm:$0xff]  ;;  %v3429_v5 = vld [vmem:[%s5424_s13] sm:$0xff] }
 0xb7d   : > { %3709 = vmatmul.msk.f32.gmra.mxu1 %vm549_vm0, %v3342_v45  ;;  %4010 = vrsqrt.f32 %v3235_v37  ;;  %vm3286_vm3 = vmor %vm3284_vm12, %vm3285_vm13  ;;  %vm3294_vm14 = vweird.f32 %v3235_v37 }
 0xb7e   : > { %v3277_v58 = vsel %vm3276_vm10, %v4007_v41, %v3273_v63  ;;  %v3280_v13 = vmul.f32 %v4009_v60, %v3279_v14 }
 0xb7f   : > { %v3321_v17 = vmul.f32 %v3277_v58, %v5239_v23  ;;  %v3440_v23 = vld [vmem:[%s5424_s13 + $0x58] sm:$0xff] }
 0xb80   : > { %v3281_v40 = vmul.f32 0.5, %v3280_v13  ;;  %v3218_v31 = vpop.xlane.xlu0 %3217  ;;  %3453 = vmatpush.msrb.mxu2 %v3440_v23  ;;  %3727 = vmatpush.msrb.mxu3 %v3440_v23 }
 0xb81   : > { %v3228_v28 = vmul.f32 %v3218_v31, %v4162_v22  ;;  %v3332_v1 = vmul.f32 %v5288_v26, %v3321_v17 }
 0xb82   : > { %v3282_v21 = vsub.f32 1.5, %v3281_v40  ;;  %3454 = vmatpush.msrb.mxu2 %v3439_v35  ;;  %3728 = vmatpush.msrb.mxu3 %v3439_v35 }
 0xb83   : > { %v4011_v25 = vpop.eup %4010  ;;  %v3236_v52 = vadd.f32 1e-12, %v3228_v28  ;;  %v3343_v19 = vadd.f32 %v5294_v12, %v3332_v1 }
 0xb84   : > { %v3283_v55 = vmul.f32 %v4009_v60, %v3282_v21  ;;  %v3289_v59 = vmul.f32 %v4011_v25, %v3235_v37  ;;  %3455 = vmatpush.msrb.mxu2 %v3438_v7  ;;  %3729 = vmatpush.msrb.mxu3 %v3438_v7  ;;  %vm3295_vm11 = vweird.f32 %v4011_v25 }
 0xb85   : > { %4012 = vrsqrt.f32 %v3236_v52  ;;  %3710 = vmatmul.msk.f32.gmra.mxu1 %vm549_vm0, %v3343_v19  ;;  %vm3296_vm15 = vmor %vm3294_vm14, %vm3295_vm11  ;;  %vm3304_vm4 = vweird.f32 %v3236_v52 }
 0xb86   : > { %v3287_v0 = vsel %vm3286_vm3, %v4009_v60, %v3283_v55  ;;  %v3290_v46 = vmul.f32 %v4011_v25, %v3289_v59  ;;  %3456 = vmatpush.msrb.mxu2 %v3437_v2  ;;  %3730 = vmatpush.msrb.mxu3 %v3437_v2 }
 0xb87   : > { %v3322_v34 = vmul.f32 %v3287_v0, %v5246_v3 }
 0xb88   : > { %v3291_v62 = vmul.f32 0.5, %v3290_v46  ;;  %3457 = vmatpush.msrb.mxu2 %v3436_v42  ;;  %3731 = vmatpush.msrb.mxu3 %v3436_v42 }
 0xb89   : > { %v3333_v48 = vmul.f32 %v5288_v26, %v3322_v34 }
 0xb8a   : > { %v3292_v4 = vsub.f32 1.5, %v3291_v62  ;;  %3458 = vmatpush.msrb.mxu2 %v3435_v51  ;;  %3732 = vmatpush.msrb.mxu3 %v3435_v51  ;;  %v3853_v51 = vld [vmem:[%s5425_s14] ss:$0 sm:$0xff] }
 0xb8b   : > { %v4013_v47 = vpop.eup %4012  ;;  %v3344_v3 = vadd.f32 %v5294_v12, %v3333_v48 }
 0xb8c   : > { %v3293_v24 = vmul.f32 %v4011_v25, %v3292_v4  ;;  %v3299_v9 = vmul.f32 %v4013_v47, %v3236_v52  ;;  %3459 = vmatpush.msrb.mxu2 %v3434_v6  ;;  %3733 = vmatpush.msrb.mxu3 %v3434_v6  ;;  %vm3305_vm1 = vweird.f32 %v4013_v47 }
 0xb8d   : > { %3711 = vmatmul.msk.f32.gmra.mxu1 %vm549_vm0, %v3344_v3  ;;  %vm3306_vm6 = vmor %vm3304_vm4, %vm3305_vm1 }
 0xb8e   : > { %v3297_v41 = vsel %vm3296_vm15, %v4011_v25, %v3293_v24  ;;  %v3300_v50 = vmul.f32 %v4013_v47, %v3299_v9  ;;  %3460 = vmatpush.msrb.mxu2 %v3433_v27  ;;  %3734 = vmatpush.msrb.mxu3 %v3433_v27 }
 0xb8f   : > { %v3323_v8 = vmul.f32 %v3297_v41, %v5253_v53  ;;  %v3431_v53 = vld [vmem:[%s5424_s13 + $0x10] sm:$0xff] }
 0xb90   : > { %v3301_v18 = vmul.f32 0.5, %v3300_v50  ;;  %3461 = vmatpush.msrb.mxu2 %v3432_v32  ;;  %3735 = vmatpush.msrb.mxu3 %v3432_v32 }
 0xb91   : > { %v3334_v39 = vmul.f32 %v5288_v26, %v3323_v8 }
 0xb92   : > { %v3302_v49 = vsub.f32 1.5, %v3301_v18  ;;  %3462 = vmatpush.msrb.mxu2 %v3431_v53  ;;  %3736 = vmatpush.msrb.mxu3 %v3431_v53 }
 0xb93   : > { %v3345_v57 = vadd.f32 %v5294_v12, %v3334_v39 }
 0xb94   : > { %v3303_v56 = vmul.f32 %v4013_v47, %v3302_v49  ;;  %3463 = vmatpush.msrb.mxu2 %v3430_v11  ;;  %3737 = vmatpush.msrb.mxu3 %v3430_v11 }
 0xb95   : > { %3712 = vmatmul.msk.f32.gmra.mxu1 %vm549_vm0, %v3345_v57 }
 0xb96   : > { %v3307_v30 = vsel %vm3306_vm6, %v4013_v47, %v3303_v56  ;;  %3464 = vmatpush.msrb.mxu2 %v3429_v5  ;;  %3738 = vmatpush.msrb.mxu3 %v3429_v5 }
 0xb97   : > { %v3324_v45 = vmul.f32 %v3307_v30, %v5260_v36 }
 0xb99   : > { %v3335_v37 = vmul.f32 %v5288_v26, %v3324_v45 }
 0xb9b   : > { %v3221_v60 = vpop.xlane.xlu2 %3220  ;;  %v3346_v14 = vadd.f32 %v5294_v12, %v3335_v37 }
 0xb9c   : > { %v3229_v63 = vmul.f32 %v3221_v60, %v4162_v22 }
 0xb9d   : > { %3713 = vmatmul.msk.f32.gmra.mxu1 %vm549_vm0, %v3346_v14 }
 0xb9e   : > { %v3237_v58 = vadd.f32 1e-12, %v3229_v63 }
 0xba0   : > { %4014 = vrsqrt.f32 %v3237_v58  ;;  %vm3314_vm2 = vweird.f32 %v3237_v58 }
 0xba6   : > { %v4015_v13 = vpop.eup %4014 }
 0xba7   : > { %v3309_v61 = vmul.f32 %v4015_v13, %v3237_v58  ;;  %vm3315_vm7 = vweird.f32 %v4015_v13 }
 0xba8   : > { %vm3316_vm8 = vmor %vm3314_vm2, %vm3315_vm7 }
 0xba9   : > { %v3310_v17 = vmul.f32 %v4015_v13, %v3309_v61 }
 0xbab   : > { %v3311_v40 = vmul.f32 0.5, %v3310_v17 }
 0xbad   : > { %v3312_v36 = vsub.f32 1.5, %v3311_v40 }
 0xbaf   : > { %v3313_v31 = vmul.f32 %v4015_v13, %v3312_v36 }
 0xbb1   : > { %v3317_v22 = vsel %vm3316_vm8, %v4015_v13, %v3313_v31 }
 0xbb2   : > { %v3325_v28 = vmul.f32 %v3317_v22, %v5280_v16  ;;  %v3397_v1 = vpop.f32.mrf.mxu1 }
 0xbb3   : > { %v3398_v21 = vadd.f32 %v3852_v33, %v3397_v1 }
 0xbb4   : > { %v3336_v23 = vmul.f32 %v5288_v26, %v3325_v28 }
 0xbb5   : > { %v3421_v25 = vmax.f32 %v3398_v21, 0.0 }
 0xbb6   : > { %v3347_v52 = vadd.f32 %v5294_v12, %v3336_v23 }
 0xbb7   : > { %3465 = vmatmul.f32.vlgmr.msrb.gmra.mxu2 %v3421_v25 }
 0xbb8   : > { %3714 = vmatmul.msk.f32.gmra.mxu1 %vm549_vm0, %v3347_v52 }
 0xbd2   : > { %v3400_v19 = vpop.f32.mrf.mxu1 }
 0xbd3   : > { %v3401_v55 = vadd.f32 %v3852_v33, %v3400_v19 }
 0xbd5   : > { %v3422_v59 = vmax.f32 %v3401_v55, 0.0 }
 0xbd7   : > { %3468 = vmatmul.f32.gmra.mxu2 %v3422_v59 }
 0xbfa   : > { %v3403_v35 = vpop.f32.mrf.mxu1 }
 0xbfb   : > { %v3404_v0 = vadd.f32 %v3852_v33, %v3403_v35 }
 0xbfd   : > { %v3423_v46 = vmax.f32 %v3404_v0, 0.0 }
 0xbff   : > { %3471 = vmatmul.f32.gmra.mxu2 %v3423_v46 }
 0xc02   : > { %v3406_v7 = vpop.f32.mrf.mxu1 }
 0xc03   : > { %v3407_v16 = vadd.f32 %v3852_v33, %v3406_v7 }
 0xc05   : > { %v3424_v34 = vmax.f32 %v3407_v16, 0.0 }
 0xc07   : > { %3474 = vmatmul.f32.gmra.mxu2 %v3424_v34 }
 0xc0a   : > { %v3409_v62 = vpop.f32.mrf.mxu1 }
 0xc0b   : > { %v3410_v26 = vadd.f32 %v3852_v33, %v3409_v62 }
 0xc0d   : > { %v3425_v2 = vmax.f32 %v3410_v26, 0.0 }
 0xc0f   : > { %3477 = vmatmul.f32.gmra.mxu2 %v3425_v2 }
 0xc12   : > { %v3412_v12 = vpop.f32.mrf.mxu1 }
 0xc13   : > { %v3413_v48 = vadd.f32 %v3852_v33, %v3412_v12 }
 0xc15   : > { %v3426_v4 = vmax.f32 %v3413_v48, 0.0 }
 0xc17   : > { %3480 = vmatmul.f32.vlgmr.msrb.gmra.mxu3 %v3426_v4 }
 0xc1a   : > { %v3415_v42 = vpop.f32.mrf.mxu1 }
 0xc1b   : > { %v3416_v47 = vadd.f32 %v3852_v33, %v3415_v42 }
 0xc1d   : > { %v3427_v3 = vmax.f32 %v3416_v47, 0.0 }
 0xc1f   : > { %3483 = vmatmul.f32.gmra.mxu3 %v3427_v3 }
 0xc35   : > { %v3418_v24 = vpop.f32.mrf.mxu1 }
 0xc36   : > { %v3419_v9 = vadd.f32 %v3852_v33, %v3418_v24 }
 0xc38   : > { %v3428_v41 = vmax.f32 %v3419_v9, 0.0 }
 0xc3a   : > { %v3466_v50 = vpop.f32.mrf.mxu2  ;;  %3486 = vmatmul.f32.gmra.mxu3 %v3428_v41 }
 0xc3b   : > { %v3467_v6 = vadd.f32 %v3853_v51, %v3466_v50 }
 0xc3d   : > { %v3490_v8 = vadd.f32 %v3467_v6, %v5177_v44 }
 0xc3f   : > { %3498 = vst.msk [vmem:[%s537_s20] sm:$0xff] %vm549_vm0, %v3490_v8 }
 0xc5a   : > { %v3469_v18 = vpop.f32.mrf.mxu2 }
 0xc5b   : > { %v3470_v27 = vadd.f32 %v3853_v51, %v3469_v18 }
 0xc5d   : > { %v3491_v32 = vadd.f32 %v3470_v27, %v5182_v43 }
 0xc5f   : > { %3499 = vst.msk [vmem:[%s537_s20 + $0x8] sm:$0xff] %vm549_vm0, %v3491_v32 }
 0xc82   : > { %v3472_v39 = vpop.f32.mrf.mxu2 }
 0xc83   : > { %v3473_v49 = vadd.f32 %v3853_v51, %v3472_v39 }
 0xc85   : > { %v3492_v57 = vadd.f32 %v3473_v49, %v5187_v54 }
 0xc87   : > { %3500 = vst.msk [vmem:[%s537_s20 + $0x10] sm:$0xff] %vm549_vm0, %v3492_v57 }
 0xc8a   : > { %v3475_v53 = vpop.f32.mrf.mxu2 }
 0xc8b   : > { %v3476_v56 = vadd.f32 %v3853_v51, %v3475_v53 }
 0xc8d   : > { %v3493_v11 = vadd.f32 %v3476_v56, %v5192_v15 }
 0xc8f   : > { %3501 = vst.msk [vmem:[%s537_s20 + $0x18] sm:$0xff] %vm549_vm0, %v3493_v11 }
 0xc92   : > { %v3478_v44 = vpop.f32.mrf.mxu2 }
 0xc93   : > { %v3479_v30 = vadd.f32 %v3853_v51, %v3478_v44 }
 0xc95   : > { %v3494_v5 = vadd.f32 %v3479_v30, %v5197_v29 }
 0xc97   : > { %3502 = vst.msk [vmem:[%s537_s20 + $0x20] sm:$0xff] %vm549_vm0, %v3494_v5 }
 0xc9a   : > { %v3481_v43 = vpop.f32.mrf.mxu3 }
 0xc9b   : > { %v3482_v45 = vadd.f32 %v3853_v51, %v3481_v43 }
 0xc9d   : > { %v3495_v60 = vadd.f32 %v3482_v45, %v5202_v20 }
 0xc9f   : > { %3503 = vst.msk [vmem:[%s537_s20 + $0x28] sm:$0xff] %vm549_vm0, %v3495_v60 }
 0xca2   : > { %v3484_v54 = vpop.f32.mrf.mxu3 }
 0xca3   : > { %v3485_v37 = vadd.f32 %v3853_v51, %v3484_v54 }
 0xca5   : > { %v3496_v63 = vadd.f32 %v3485_v37, %v5207_v38 }
 0xca7   : > { %3504 = vst.msk [vmem:[%s537_s20 + $0x30] sm:$0xff] %vm549_vm0, %v3496_v63 }
 0xcbd   : > { %v3487_v15 = vpop.f32.mrf.mxu3 }
 0xcbe   : > { %v3488_v14 = vadd.f32 %v3853_v51, %v3487_v15 }
 0xcc0   : > { %v3497_v58 = vadd.f32 %v3488_v14, %v5219_v10 }
 0xcc2   : > { %3505 = vst.msk [vmem:[%s537_s20 + $0x38] sm:$0xff] %vm549_vm0, %v3497_v58 }
 0xcc3 PF: > { %s25_s18 = sadd.s32 1, %s4030_s18  }
 0xcc4   : > { %p22_p5 = scmp.ge.s32.totalorder %s25_s18, 4  }
 0xcc6   :  { %24 = sbr.rel (!%p22_p5) target bundleno = 1 (0x1), region = 116 }

</bundles_post_ra>
